<compile_context>
chip_gen: v7x
topology: tpu7x:2x2x1
jax: 0.10.0
libtpu: 0.0.40
codegen_flags: <defaults>
</compile_context>

<pallas_src>
import functools

import jax
import jax.numpy as jnp
from jax.experimental import pallas as pl
from jax.experimental.pallas import tpu as pltpu


# ----------------------------------------------------------------------------
# Fused kernel: [LSTM layer]*L -> Linear(H,H) -> Tanh -> Linear(H,1)
# All shapes below are already padded: B = 8*k sublanes, H = 128 lanes.
# ----------------------------------------------------------------------------
def fused_lstm_mlp_kernel(*refs, num_layers, seq_len, batch_pad, hidden_pad):
    L, S, B, H = num_layers, seq_len, batch_pad, hidden_pad

    # --- parse refs: x, L*(w_ih_t, w_hh_t, bias), w1, b1, w2, b2, out ---
    x_ref = refs[0]                                    # (S*B, in_dim)
    pos = 1
    layer_refs = []
    for _ in range(L):
        layer_refs.append(refs[pos:pos + 3])
        pos += 3
    w1_ref, b1_ref, w2_ref, b2_ref = refs[pos:pos + 4]
    out_ref = refs[pos + 4]                            # (S*B, 128)

    # Weights as values (loaded once at trace time).
    w_ih = [layer_refs[l][0][...] for l in range(L)]   # (in_l, 4H)
    w_hh = [layer_refs[l][1][...] for l in range(L)]   # (H,   4H)
    bias = [layer_refs[l][2][...] for l in range(L)]   # (1,   4H)

    # Hoisted layer-0 input projection: one MXU matmul for ALL timesteps,
    # off the serial recurrence path.
    xp0 = jnp.dot(x_ref[...], w_ih[0],
                  preferred_element_type=jnp.float32) + bias[0]   # (S*B, 4H)

    def cell(gates, c_prev):
        # PyTorch gate order [i, f, g, o]; slices are whole 128-lane tiles.
        i_g = jax.nn.sigmoid(gates[:, 0 * H:1 * H])
        f_g = jax.nn.sigmoid(gates[:, 1 * H:2 * H])
        g_g = jnp.tanh(gates[:, 2 * H:3 * H])
        o_g = jax.nn.sigmoid(gates[:, 3 * H:4 * H])
        c_new = f_g * c_prev + i_g * g_g
        h_new = o_g * jnp.tanh(c_new)
        return h_new, c_new

    h = [jnp.zeros((B, H), jnp.float32) for _ in range(L)]
    c = [jnp.zeros((B, H), jnp.float32) for _ in range(L)]
    top_h = []

    # Single unrolled time loop advancing ALL layers per step (wavefront):
    # layer l@t depends on layer l-1@t and layer l@t-1 only, so layer 0@t+1 can
    # overlap layer 1..L-1@t in the scheduler.
    # TODO(synk): for large S, switch to lax.fori_loop(..., unroll=4) with
    # pl.ds(pl.multiple_of(t*B, B), B) slices to bound live ranges.
    for t in range(S):
        g0 = xp0[t * B:(t + 1) * B, :] + jnp.dot(
            h[0], w_hh[0], preferred_element_type=jnp.float32)
        h[0], c[0] = cell(g0, c[0])
        inp = h[0]
        for l in range(1, L):
            gl = (jnp.dot(inp, w_ih[l], preferred_element_type=jnp.float32)
                  + jnp.dot(h[l], w_hh[l], preferred_element_type=jnp.float32)
                  + bias[l])
            h[l], c[l] = cell(gl, c[l])
            inp = h[l]
        top_h.append(inp)

    cur = jnp.concatenate(top_h, axis=0)               # (S*B, H), stays in vregs

    # --- MLP head ---
    h1 = jnp.tanh(jnp.dot(cur, w1_ref[...],
                          preferred_element_type=jnp.float32) + b1_ref[...])
    # Second Linear as (S*B,H)x(H,128) matmul; real weights live in lane 0 so
    # the output store is lane-dense and unmasked.
    y = jnp.dot(h1, w2_ref[...],
                preferred_element_type=jnp.float32) + b2_ref[...]
    out_ref[...] = y


# ----------------------------------------------------------------------------
# Wrapper: pads batch->8 sublanes, hidden->128 lanes, builds the pallas_call.
# ----------------------------------------------------------------------------
def lstm_model_forward(x, params):
    """x: (S, B, input_size) -> (S, B, 1), matching the PyTorch module."""
    S, B, in_dim = x.shape
    H = params["w1"].shape[0]
    L = len(params["lstm_layers"])

    HP = 128                                   # lane-tile padded hidden size
    BP = max(8, ((B + 7) // 8) * 8)            # sublane-tile padded batch
    NP = S * BP

    # Zero-padded input, seq-major flatten (row = t*BP + b).
    x_p = jnp.zeros((S, BP, in_dim), jnp.float32).at[:, :B, :].set(
        x.astype(jnp.float32)).reshape(NP, in_dim)

    flat_inputs = [x_p]
    for li, (w_ih, w_hh, b_ih, b_hh) in enumerate(params["lstm_layers"]):
        in_real = in_dim if li == 0 else H
        in_pad = in_dim if li == 0 else HP
        w_ih_t = jnp.zeros((in_pad, 4 * HP), jnp.float32)
        w_hh_t = jnp.zeros((HP, 4 * HP), jnp.float32)
        b = jnp.zeros((1, 4 * HP), jnp.float32)
        for g in range(4):                     # embed each gate block (i,f,g,o)
            w_ih_t = w_ih_t.at[:in_real, g * HP:g * HP + H].set(
                jnp.transpose(w_ih[g * H:(g + 1) * H, :]))
            w_hh_t = w_hh_t.at[:H, g * HP:g * HP + H].set(
                jnp.transpose(w_hh[g * H:(g + 1) * H, :]))
            b = b.at[0, g * HP:g * HP + H].set(
                b_ih[g * H:(g + 1) * H] + b_hh[g * H:(g + 1) * H])
        flat_inputs += [w_ih_t, w_hh_t, b]

    w1_t = jnp.zeros((HP, HP), jnp.float32).at[:H, :H].set(
        jnp.transpose(params["w1"]))
    b1_r = jnp.zeros((1, HP), jnp.float32).at[0, :H].set(params["b1"])
    w2_t = jnp.zeros((HP, 128), jnp.float32).at[:H, 0].set(params["w2"][0])
    b2_r = jnp.zeros((1, 128), jnp.float32).at[0, 0].set(params["b2"][0])
    flat_inputs += [w1_t, b1_r, w2_t, b2_r]

    kernel = functools.partial(fused_lstm_mlp_kernel, num_layers=L,
                               seq_len=S, batch_pad=BP, hidden_pad=HP)

    y = pl.pallas_call(
        kernel,
        out_shape=jax.ShapeDtypeStruct((NP, 128), jnp.float32),
        in_specs=[pl.BlockSpec(memory_space=pltpu.MemorySpace.VMEM)
                  for _ in flat_inputs],
        out_specs=pl.BlockSpec(memory_space=pltpu.MemorySpace.VMEM),
    )(*flat_inputs)

    # Drop batch padding, take the real (lane-0) output column.
    return y.reshape(S, BP, 128)[:, :B, 0:1]


# ----------------------------------------------------------------------------
# Pure-JAX reference (mirrors the PyTorch module) for a correctness check.
# ----------------------------------------------------------------------------
def reference_forward(x, params):
    S, B, _ = x.shape
    H = params["w1"].shape[0]
    hp = jax.lax.Precision.HIGHEST
    h_in = x
    for (w_ih, w_hh, b_ih, b_hh) in params["lstm_layers"]:
        h = jnp.zeros((B, H), jnp.float32)
        c = jnp.zeros((B, H), jnp.float32)
        outs = []
        for t in range(S):
            gates = (jnp.dot(h_in[t], w_ih.T, precision=hp)
                     + jnp.dot(h, w_hh.T, precision=hp) + b_ih + b_hh)
            i = jax.nn.sigmoid(gates[:, 0 * H:1 * H])
            f = jax.nn.sigmoid(gates[:, 1 * H:2 * H])
            g = jnp.tanh(gates[:, 2 * H:3 * H])
            o = jax.nn.sigmoid(gates[:, 3 * H:4 * H])
            c = f * c + i * g
            h = o * jnp.tanh(c)
            outs.append(h)
        h_in = jnp.stack(outs, axis=0)
    flat = h_in.reshape(S * B, H)
    h1 = jnp.tanh(jnp.dot(flat, params["w1"].T, precision=hp) + params["b1"])
    out = jnp.dot(h1, params["w2"].T, precision=hp) + params["b2"]
    return out.reshape(S, B, 1)


# ----------------------------------------------------------------------------
# Deterministic parameter init (PyTorch-style uniform(-1/sqrt(H), 1/sqrt(H))).
# ----------------------------------------------------------------------------
def init_params(key, input_size, hidden_size, num_layers):
    H = hidden_size
    bound = 1.0 / jnp.sqrt(jnp.float32(H))
    params = {"lstm_layers": []}
    for layer in range(num_layers):
        in_dim = input_size if layer == 0 else H
        key, k1, k2, k3, k4 = jax.random.split(key, 5)
        w_ih = jax.random.uniform(k1, (4 * H, in_dim), jnp.float32, -bound, bound)
        w_hh = jax.random.uniform(k2, (4 * H, H), jnp.float32, -bound, bound)
        b_ih = jax.random.uniform(k3, (4 * H,), jnp.float32, -bound, bound)
        b_hh = jax.random.uniform(k4, (4 * H,), jnp.float32, -bound, bound)
        params["lstm_layers"].append((w_ih, w_hh, b_ih, b_hh))
    key, k1, k2, k3, k4 = jax.random.split(key, 5)
    params["w1"] = jax.random.uniform(k1, (H, H), jnp.float32, -bound, bound)
    params["b1"] = jax.random.uniform(k2, (H,), jnp.float32, -bound, bound)
    params["w2"] = jax.random.uniform(k3, (1, H), jnp.float32, -bound, bound)
    params["b2"] = jax.random.uniform(k4, (1,), jnp.float32, -bound, bound)
    return params


if __name__ == "__main__":
    SEQ, BATCH, INPUT, HIDDEN, LAYERS = 8, 2, 8, 32, 2

    key = jax.random.PRNGKey(0)
    key, xkey = jax.random.split(key)
    x = jax.random.normal(xkey, (SEQ, BATCH, INPUT), dtype=jnp.float32)
    params = init_params(key, INPUT, HIDDEN, LAYERS)

    out = lstm_model_forward(x, params)
    out = jax.block_until_ready(out)
    assert out.shape == (SEQ, BATCH, 1)

    ref = jax.block_until_ready(reference_forward(x, params))
    assert jnp.allclose(out, ref, atol=1e-2, rtol=1e-2), (
        "kernel output mismatch vs reference")

    print("KERNEL_OK")
</pallas_src>

<mosaic_0001>
module attributes {stable_mosaic.version = 11 : i64} {
  func.func @fused_lstm_mlp_kernel(%arg0: memref<64x8xf32, #tpu.memory_space<vmem>>, %arg1: memref<8x512xf32, #tpu.memory_space<vmem>>, %arg2: memref<128x512xf32, #tpu.memory_space<vmem>>, %arg3: memref<1x512xf32, #tpu.memory_space<vmem>>, %arg4: memref<128x512xf32, #tpu.memory_space<vmem>>, %arg5: memref<128x512xf32, #tpu.memory_space<vmem>>, %arg6: memref<1x512xf32, #tpu.memory_space<vmem>>, %arg7: memref<128x128xf32, #tpu.memory_space<vmem>>, %arg8: memref<1x128xf32, #tpu.memory_space<vmem>>, %arg9: memref<128x128xf32, #tpu.memory_space<vmem>>, %arg10: memref<1x128xf32, #tpu.memory_space<vmem>>, %arg11: memref<64x128xf32, #tpu.memory_space<vmem>>) attributes {dimension_semantics = [], scalar_prefetch = 0 : i64, scratch_operands = 0 : i64, tpu.core_type = #tpu.core_type<tc>} {
    %c0 = arith.constant 0 : index
    %c0_0 = arith.constant 0 : index
    %0 = vector.load %arg1[%c0, %c0_0] : memref<8x512xf32, #tpu.memory_space<vmem>>, vector<8x512xf32>
    %c0_1 = arith.constant 0 : index
    %c0_2 = arith.constant 0 : index
    %1 = vector.load %arg4[%c0_1, %c0_2] : memref<128x512xf32, #tpu.memory_space<vmem>>, vector<128x512xf32>
    %c0_3 = arith.constant 0 : index
    %c0_4 = arith.constant 0 : index
    %2 = vector.load %arg2[%c0_3, %c0_4] : memref<128x512xf32, #tpu.memory_space<vmem>>, vector<128x512xf32>
    %c0_5 = arith.constant 0 : index
    %c0_6 = arith.constant 0 : index
    %3 = vector.load %arg5[%c0_5, %c0_6] : memref<128x512xf32, #tpu.memory_space<vmem>>, vector<128x512xf32>
    %c0_7 = arith.constant 0 : index
    %c0_8 = arith.constant 0 : index
    %4 = vector.load %arg3[%c0_7, %c0_8] : memref<1x512xf32, #tpu.memory_space<vmem>>, vector<1x512xf32>
    %c0_9 = arith.constant 0 : index
    %c0_10 = arith.constant 0 : index
    %5 = vector.load %arg6[%c0_9, %c0_10] : memref<1x512xf32, #tpu.memory_space<vmem>>, vector<1x512xf32>
    %c0_11 = arith.constant 0 : index
    %c0_12 = arith.constant 0 : index
    %6 = vector.load %arg0[%c0_11, %c0_12] : memref<64x8xf32, #tpu.memory_space<vmem>>, vector<64x8xf32>
    %cst = arith.constant dense<0.000000e+00> : vector<64x512xf32>
    %7 = tpu.matmul %6, %0, %cst {dimension_numbers = #tpu.dot_dimension_numbers<[1], [0], [0], [1], [0, 0, 1, 1], [], []>} : vector<64x8xf32>, vector<8x512xf32>, vector<64x512xf32> -> vector<64x512xf32>
    %8 = vector.broadcast %4 : vector<1x512xf32> to vector<64x512xf32>
    %9 = arith.addf %7, %8 : vector<64x512xf32>
    %cst_13 = arith.constant 0.000000e+00 : f32
    %10 = vector.broadcast %cst_13 : f32 to vector<8x128xf32>
    %cst_14 = arith.constant 0.000000e+00 : f32
    %11 = vector.broadcast %cst_14 : f32 to vector<8x128xf32>
    %cst_15 = arith.constant 0.000000e+00 : f32
    %12 = vector.broadcast %cst_15 : f32 to vector<8x128xf32>
    %cst_16 = arith.constant 0.000000e+00 : f32
    %13 = vector.broadcast %cst_16 : f32 to vector<8x128xf32>
    %14 = vector.extract_strided_slice %9 {offsets = [0, 0], sizes = [8, 512], strides = [1, 1]} : vector<64x512xf32> to vector<8x512xf32>
    %cst_17 = arith.constant dense<0.000000e+00> : vector<8x512xf32>
    %15 = tpu.matmul %10, %2, %cst_17 {dimension_numbers = #tpu.dot_dimension_numbers<[1], [0], [0], [1], [0, 0, 1, 1], [], []>} : vector<8x128xf32>, vector<128x512xf32>, vector<8x512xf32> -> vector<8x512xf32>
    %16 = arith.addf %14, %15 : vector<8x512xf32>
    %17 = vector.extract_strided_slice %16 {offsets = [0, 0], sizes = [8, 128], strides = [1, 1]} : vector<8x512xf32> to vector<8x128xf32>
    %18 = arith.negf %17 : vector<8x128xf32>
    %19 = math.exp %18 : vector<8x128xf32>
    %cst_18 = arith.constant 1.000000e+00 : f32
    %20 = vector.broadcast %cst_18 : f32 to vector<8x128xf32>
    %21 = arith.addf %20, %19 : vector<8x128xf32>
    %22 = arith.divf %20, %21 : vector<8x128xf32>
    %23 = vector.extract_strided_slice %16 {offsets = [0, 128], sizes = [8, 128], strides = [1, 1]} : vector<8x512xf32> to vector<8x128xf32>
    %24 = arith.negf %23 : vector<8x128xf32>
    %25 = math.exp %24 : vector<8x128xf32>
    %cst_19 = arith.constant 1.000000e+00 : f32
    %26 = vector.broadcast %cst_19 : f32 to vector<8x128xf32>
    %27 = arith.addf %26, %25 : vector<8x128xf32>
    %28 = arith.divf %26, %27 : vector<8x128xf32>
    %29 = vector.extract_strided_slice %16 {offsets = [0, 256], sizes = [8, 128], strides = [1, 1]} : vector<8x512xf32> to vector<8x128xf32>
    %30 = math.tanh %29 : vector<8x128xf32>
    %31 = vector.extract_strided_slice %16 {offsets = [0, 384], sizes = [8, 128], strides = [1, 1]} : vector<8x512xf32> to vector<8x128xf32>
    %32 = arith.negf %31 : vector<8x128xf32>
    %33 = math.exp %32 : vector<8x128xf32>
    %cst_20 = arith.constant 1.000000e+00 : f32
    %34 = vector.broadcast %cst_20 : f32 to vector<8x128xf32>
    %35 = arith.addf %34, %33 : vector<8x128xf32>
    %36 = arith.divf %34, %35 : vector<8x128xf32>
    %37 = arith.mulf %28, %12 : vector<8x128xf32>
    %38 = arith.mulf %22, %30 : vector<8x128xf32>
    %39 = arith.addf %37, %38 : vector<8x128xf32>
    %40 = math.tanh %39 : vector<8x128xf32>
    %41 = arith.mulf %36, %40 : vector<8x128xf32>
    %cst_21 = arith.constant dense<0.000000e+00> : vector<8x512xf32>
    %42 = tpu.matmul %41, %1, %cst_21 {dimension_numbers = #tpu.dot_dimension_numbers<[1], [0], [0], [1], [0, 0, 1, 1], [], []>} : vector<8x128xf32>, vector<128x512xf32>, vector<8x512xf32> -> vector<8x512xf32>
    %cst_22 = arith.constant dense<0.000000e+00> : vector<8x512xf32>
    %43 = tpu.matmul %11, %3, %cst_22 {dimension_numbers = #tpu.dot_dimension_numbers<[1], [0], [0], [1], [0, 0, 1, 1], [], []>} : vector<8x128xf32>, vector<128x512xf32>, vector<8x512xf32> -> vector<8x512xf32>
    %44 = arith.addf %42, %43 : vector<8x512xf32>
    %45 = vector.broadcast %5 : vector<1x512xf32> to vector<8x512xf32>
    %46 = arith.addf %44, %45 : vector<8x512xf32>
    %47 = vector.extract_strided_slice %46 {offsets = [0, 0], sizes = [8, 128], strides = [1, 1]} : vector<8x512xf32> to vector<8x128xf32>
    %48 = arith.negf %47 : vector<8x128xf32>
    %49 = math.exp %48 : vector<8x128xf32>
    %cst_23 = arith.constant 1.000000e+00 : f32
    %50 = vector.broadcast %cst_23 : f32 to vector<8x128xf32>
    %51 = arith.addf %50, %49 : vector<8x128xf32>
    %52 = arith.divf %50, %51 : vector<8x128xf32>
    %53 = vector.extract_strided_slice %46 {offsets = [0, 128], sizes = [8, 128], strides = [1, 1]} : vector<8x512xf32> to vector<8x128xf32>
    %54 = arith.negf %53 : vector<8x128xf32>
    %55 = math.exp %54 : vector<8x128xf32>
    %cst_24 = arith.constant 1.000000e+00 : f32
    %56 = vector.broadcast %cst_24 : f32 to vector<8x128xf32>
    %57 = arith.addf %56, %55 : vector<8x128xf32>
    %58 = arith.divf %56, %57 : vector<8x128xf32>
    %59 = vector.extract_strided_slice %46 {offsets = [0, 256], sizes = [8, 128], strides = [1, 1]} : vector<8x512xf32> to vector<8x128xf32>
    %60 = math.tanh %59 : vector<8x128xf32>
    %61 = vector.extract_strided_slice %46 {offsets = [0, 384], sizes = [8, 128], strides = [1, 1]} : vector<8x512xf32> to vector<8x128xf32>
    %62 = arith.negf %61 : vector<8x128xf32>
    %63 = math.exp %62 : vector<8x128xf32>
    %cst_25 = arith.constant 1.000000e+00 : f32
    %64 = vector.broadcast %cst_25 : f32 to vector<8x128xf32>
    %65 = arith.addf %64, %63 : vector<8x128xf32>
    %66 = arith.divf %64, %65 : vector<8x128xf32>
    %67 = arith.mulf %58, %13 : vector<8x128xf32>
    %68 = arith.mulf %52, %60 : vector<8x128xf32>
    %69 = arith.addf %67, %68 : vector<8x128xf32>
    %70 = math.tanh %69 : vector<8x128xf32>
    %71 = arith.mulf %66, %70 : vector<8x128xf32>
    %72 = vector.extract_strided_slice %9 {offsets = [8, 0], sizes = [8, 512], strides = [1, 1]} : vector<64x512xf32> to vector<8x512xf32>
    %cst_26 = arith.constant dense<0.000000e+00> : vector<8x512xf32>
    %73 = tpu.matmul %41, %2, %cst_26 {dimension_numbers = #tpu.dot_dimension_numbers<[1], [0], [0], [1], [0, 0, 1, 1], [], []>} : vector<8x128xf32>, vector<128x512xf32>, vector<8x512xf32> -> vector<8x512xf32>
    %74 = arith.addf %72, %73 : vector<8x512xf32>
    %75 = vector.extract_strided_slice %74 {offsets = [0, 0], sizes = [8, 128], strides = [1, 1]} : vector<8x512xf32> to vector<8x128xf32>
    %76 = arith.negf %75 : vector<8x128xf32>
    %77 = math.exp %76 : vector<8x128xf32>
    %cst_27 = arith.constant 1.000000e+00 : f32
    %78 = vector.broadcast %cst_27 : f32 to vector<8x128xf32>
    %79 = arith.addf %78, %77 : vector<8x128xf32>
    %80 = arith.divf %78, %79 : vector<8x128xf32>
    %81 = vector.extract_strided_slice %74 {offsets = [0, 128], sizes = [8, 128], strides = [1, 1]} : vector<8x512xf32> to vector<8x128xf32>
    %82 = arith.negf %81 : vector<8x128xf32>
    %83 = math.exp %82 : vector<8x128xf32>
    %cst_28 = arith.constant 1.000000e+00 : f32
    %84 = vector.broadcast %cst_28 : f32 to vector<8x128xf32>
    %85 = arith.addf %84, %83 : vector<8x128xf32>
    %86 = arith.divf %84, %85 : vector<8x128xf32>
    %87 = vector.extract_strided_slice %74 {offsets = [0, 256], sizes = [8, 128], strides = [1, 1]} : vector<8x512xf32> to vector<8x128xf32>
    %88 = math.tanh %87 : vector<8x128xf32>
    %89 = vector.extract_strided_slice %74 {offsets = [0, 384], sizes = [8, 128], strides = [1, 1]} : vector<8x512xf32> to vector<8x128xf32>
    %90 = arith.negf %89 : vector<8x128xf32>
    %91 = math.exp %90 : vector<8x128xf32>
    %cst_29 = arith.constant 1.000000e+00 : f32
    %92 = vector.broadcast %cst_29 : f32 to vector<8x128xf32>
    %93 = arith.addf %92, %91 : vector<8x128xf32>
    %94 = arith.divf %92, %93 : vector<8x128xf32>
    %95 = arith.mulf %86, %39 : vector<8x128xf32>
    %96 = arith.mulf %80, %88 : vector<8x128xf32>
    %97 = arith.addf %95, %96 : vector<8x128xf32>
    %98 = math.tanh %97 : vector<8x128xf32>
    %99 = arith.mulf %94, %98 : vector<8x128xf32>
    %cst_30 = arith.constant dense<0.000000e+00> : vector<8x512xf32>
    %100 = tpu.matmul %99, %1, %cst_30 {dimension_numbers = #tpu.dot_dimension_numbers<[1], [0], [0], [1], [0, 0, 1, 1], [], []>} : vector<8x128xf32>, vector<128x512xf32>, vector<8x512xf32> -> vector<8x512xf32>
    %cst_31 = arith.constant dense<0.000000e+00> : vector<8x512xf32>
    %101 = tpu.matmul %71, %3, %cst_31 {dimension_numbers = #tpu.dot_dimension_numbers<[1], [0], [0], [1], [0, 0, 1, 1], [], []>} : vector<8x128xf32>, vector<128x512xf32>, vector<8x512xf32> -> vector<8x512xf32>
    %102 = arith.addf %100, %101 : vector<8x512xf32>
    %103 = vector.broadcast %5 : vector<1x512xf32> to vector<8x512xf32>
    %104 = arith.addf %102, %103 : vector<8x512xf32>
    %105 = vector.extract_strided_slice %104 {offsets = [0, 0], sizes = [8, 128], strides = [1, 1]} : vector<8x512xf32> to vector<8x128xf32>
    %106 = arith.negf %105 : vector<8x128xf32>
    %107 = math.exp %106 : vector<8x128xf32>
    %cst_32 = arith.constant 1.000000e+00 : f32
    %108 = vector.broadcast %cst_32 : f32 to vector<8x128xf32>
    %109 = arith.addf %108, %107 : vector<8x128xf32>
    %110 = arith.divf %108, %109 : vector<8x128xf32>
    %111 = vector.extract_strided_slice %104 {offsets = [0, 128], sizes = [8, 128], strides = [1, 1]} : vector<8x512xf32> to vector<8x128xf32>
    %112 = arith.negf %111 : vector<8x128xf32>
    %113 = math.exp %112 : vector<8x128xf32>
    %cst_33 = arith.constant 1.000000e+00 : f32
    %114 = vector.broadcast %cst_33 : f32 to vector<8x128xf32>
    %115 = arith.addf %114, %113 : vector<8x128xf32>
    %116 = arith.divf %114, %115 : vector<8x128xf32>
    %117 = vector.extract_strided_slice %104 {offsets = [0, 256], sizes = [8, 128], strides = [1, 1]} : vector<8x512xf32> to vector<8x128xf32>
    %118 = math.tanh %117 : vector<8x128xf32>
    %119 = vector.extract_strided_slice %104 {offsets = [0, 384], sizes = [8, 128], strides = [1, 1]} : vector<8x512xf32> to vector<8x128xf32>
    %120 = arith.negf %119 : vector<8x128xf32>
    %121 = math.exp %120 : vector<8x128xf32>
    %cst_34 = arith.constant 1.000000e+00 : f32
    %122 = vector.broadcast %cst_34 : f32 to vector<8x128xf32>
    %123 = arith.addf %122, %121 : vector<8x128xf32>
    %124 = arith.divf %122, %123 : vector<8x128xf32>
    %125 = arith.mulf %116, %69 : vector<8x128xf32>
    %126 = arith.mulf %110, %118 : vector<8x128xf32>
    %127 = arith.addf %125, %126 : vector<8x128xf32>
    %128 = math.tanh %127 : vector<8x128xf32>
    %129 = arith.mulf %124, %128 : vector<8x128xf32>
    %130 = vector.extract_strided_slice %9 {offsets = [16, 0], sizes = [8, 512], strides = [1, 1]} : vector<64x512xf32> to vector<8x512xf32>
    %cst_35 = arith.constant dense<0.000000e+00> : vector<8x512xf32>
    %131 = tpu.matmul %99, %2, %cst_35 {dimension_numbers = #tpu.dot_dimension_numbers<[1], [0], [0], [1], [0, 0, 1, 1], [], []>} : vector<8x128xf32>, vector<128x512xf32>, vector<8x512xf32> -> vector<8x512xf32>
    %132 = arith.addf %130, %131 : vector<8x512xf32>
    %133 = vector.extract_strided_slice %132 {offsets = [0, 0], sizes = [8, 128], strides = [1, 1]} : vector<8x512xf32> to vector<8x128xf32>
    %134 = arith.negf %133 : vector<8x128xf32>
    %135 = math.exp %134 : vector<8x128xf32>
    %cst_36 = arith.constant 1.000000e+00 : f32
    %136 = vector.broadcast %cst_36 : f32 to vector<8x128xf32>
    %137 = arith.addf %136, %135 : vector<8x128xf32>
    %138 = arith.divf %136, %137 : vector<8x128xf32>
    %139 = vector.extract_strided_slice %132 {offsets = [0, 128], sizes = [8, 128], strides = [1, 1]} : vector<8x512xf32> to vector<8x128xf32>
    %140 = arith.negf %139 : vector<8x128xf32>
    %141 = math.exp %140 : vector<8x128xf32>
    %cst_37 = arith.constant 1.000000e+00 : f32
    %142 = vector.broadcast %cst_37 : f32 to vector<8x128xf32>
    %143 = arith.addf %142, %141 : vector<8x128xf32>
    %144 = arith.divf %142, %143 : vector<8x128xf32>
    %145 = vector.extract_strided_slice %132 {offsets = [0, 256], sizes = [8, 128], strides = [1, 1]} : vector<8x512xf32> to vector<8x128xf32>
    %146 = math.tanh %145 : vector<8x128xf32>
    %147 = vector.extract_strided_slice %132 {offsets = [0, 384], sizes = [8, 128], strides = [1, 1]} : vector<8x512xf32> to vector<8x128xf32>
    %148 = arith.negf %147 : vector<8x128xf32>
    %149 = math.exp %148 : vector<8x128xf32>
    %cst_38 = arith.constant 1.000000e+00 : f32
    %150 = vector.broadcast %cst_38 : f32 to vector<8x128xf32>
    %151 = arith.addf %150, %149 : vector<8x128xf32>
    %152 = arith.divf %150, %151 : vector<8x128xf32>
    %153 = arith.mulf %144, %97 : vector<8x128xf32>
    %154 = arith.mulf %138, %146 : vector<8x128xf32>
    %155 = arith.addf %153, %154 : vector<8x128xf32>
    %156 = math.tanh %155 : vector<8x128xf32>
    %157 = arith.mulf %152, %156 : vector<8x128xf32>
    %cst_39 = arith.constant dense<0.000000e+00> : vector<8x512xf32>
    %158 = tpu.matmul %157, %1, %cst_39 {dimension_numbers = #tpu.dot_dimension_numbers<[1], [0], [0], [1], [0, 0, 1, 1], [], []>} : vector<8x128xf32>, vector<128x512xf32>, vector<8x512xf32> -> vector<8x512xf32>
    %cst_40 = arith.constant dense<0.000000e+00> : vector<8x512xf32>
    %159 = tpu.matmul %129, %3, %cst_40 {dimension_numbers = #tpu.dot_dimension_numbers<[1], [0], [0], [1], [0, 0, 1, 1], [], []>} : vector<8x128xf32>, vector<128x512xf32>, vector<8x512xf32> -> vector<8x512xf32>
    %160 = arith.addf %158, %159 : vector<8x512xf32>
    %161 = vector.broadcast %5 : vector<1x512xf32> to vector<8x512xf32>
    %162 = arith.addf %160, %161 : vector<8x512xf32>
    %163 = vector.extract_strided_slice %162 {offsets = [0, 0], sizes = [8, 128], strides = [1, 1]} : vector<8x512xf32> to vector<8x128xf32>
    %164 = arith.negf %163 : vector<8x128xf32>
    %165 = math.exp %164 : vector<8x128xf32>
    %cst_41 = arith.constant 1.000000e+00 : f32
    %166 = vector.broadcast %cst_41 : f32 to vector<8x128xf32>
    %167 = arith.addf %166, %165 : vector<8x128xf32>
    %168 = arith.divf %166, %167 : vector<8x128xf32>
    %169 = vector.extract_strided_slice %162 {offsets = [0, 128], sizes = [8, 128], strides = [1, 1]} : vector<8x512xf32> to vector<8x128xf32>
    %170 = arith.negf %169 : vector<8x128xf32>
    %171 = math.exp %170 : vector<8x128xf32>
    %cst_42 = arith.constant 1.000000e+00 : f32
    %172 = vector.broadcast %cst_42 : f32 to vector<8x128xf32>
    %173 = arith.addf %172, %171 : vector<8x128xf32>
    %174 = arith.divf %172, %173 : vector<8x128xf32>
    %175 = vector.extract_strided_slice %162 {offsets = [0, 256], sizes = [8, 128], strides = [1, 1]} : vector<8x512xf32> to vector<8x128xf32>
    %176 = math.tanh %175 : vector<8x128xf32>
    %177 = vector.extract_strided_slice %162 {offsets = [0, 384], sizes = [8, 128], strides = [1, 1]} : vector<8x512xf32> to vector<8x128xf32>
    %178 = arith.negf %177 : vector<8x128xf32>
    %179 = math.exp %178 : vector<8x128xf32>
    %cst_43 = arith.constant 1.000000e+00 : f32
    %180 = vector.broadcast %cst_43 : f32 to vector<8x128xf32>
    %181 = arith.addf %180, %179 : vector<8x128xf32>
    %182 = arith.divf %180, %181 : vector<8x128xf32>
    %183 = arith.mulf %174, %127 : vector<8x128xf32>
    %184 = arith.mulf %168, %176 : vector<8x128xf32>
    %185 = arith.addf %183, %184 : vector<8x128xf32>
    %186 = math.tanh %185 : vector<8x128xf32>
    %187 = arith.mulf %182, %186 : vector<8x128xf32>
    %188 = vector.extract_strided_slice %9 {offsets = [24, 0], sizes = [8, 512], strides = [1, 1]} : vector<64x512xf32> to vector<8x512xf32>
    %cst_44 = arith.constant dense<0.000000e+00> : vector<8x512xf32>
    %189 = tpu.matmul %157, %2, %cst_44 {dimension_numbers = #tpu.dot_dimension_numbers<[1], [0], [0], [1], [0, 0, 1, 1], [], []>} : vector<8x128xf32>, vector<128x512xf32>, vector<8x512xf32> -> vector<8x512xf32>
    %190 = arith.addf %188, %189 : vector<8x512xf32>
    %191 = vector.extract_strided_slice %190 {offsets = [0, 0], sizes = [8, 128], strides = [1, 1]} : vector<8x512xf32> to vector<8x128xf32>
    %192 = arith.negf %191 : vector<8x128xf32>
    %193 = math.exp %192 : vector<8x128xf32>
    %cst_45 = arith.constant 1.000000e+00 : f32
    %194 = vector.broadcast %cst_45 : f32 to vector<8x128xf32>
    %195 = arith.addf %194, %193 : vector<8x128xf32>
    %196 = arith.divf %194, %195 : vector<8x128xf32>
    %197 = vector.extract_strided_slice %190 {offsets = [0, 128], sizes = [8, 128], strides = [1, 1]} : vector<8x512xf32> to vector<8x128xf32>
    %198 = arith.negf %197 : vector<8x128xf32>
    %199 = math.exp %198 : vector<8x128xf32>
    %cst_46 = arith.constant 1.000000e+00 : f32
    %200 = vector.broadcast %cst_46 : f32 to vector<8x128xf32>
    %201 = arith.addf %200, %199 : vector<8x128xf32>
    %202 = arith.divf %200, %201 : vector<8x128xf32>
    %203 = vector.extract_strided_slice %190 {offsets = [0, 256], sizes = [8, 128], strides = [1, 1]} : vector<8x512xf32> to vector<8x128xf32>
    %204 = math.tanh %203 : vector<8x128xf32>
    %205 = vector.extract_strided_slice %190 {offsets = [0, 384], sizes = [8, 128], strides = [1, 1]} : vector<8x512xf32> to vector<8x128xf32>
    %206 = arith.negf %205 : vector<8x128xf32>
    %207 = math.exp %206 : vector<8x128xf32>
    %cst_47 = arith.constant 1.000000e+00 : f32
    %208 = vector.broadcast %cst_47 : f32 to vector<8x128xf32>
    %209 = arith.addf %208, %207 : vector<8x128xf32>
    %210 = arith.divf %208, %209 : vector<8x128xf32>
    %211 = arith.mulf %202, %155 : vector<8x128xf32>
    %212 = arith.mulf %196, %204 : vector<8x128xf32>
    %213 = arith.addf %211, %212 : vector<8x128xf32>
    %214 = math.tanh %213 : vector<8x128xf32>
    %215 = arith.mulf %210, %214 : vector<8x128xf32>
    %cst_48 = arith.constant dense<0.000000e+00> : vector<8x512xf32>
    %216 = tpu.matmul %215, %1, %cst_48 {dimension_numbers = #tpu.dot_dimension_numbers<[1], [0], [0], [1], [0, 0, 1, 1], [], []>} : vector<8x128xf32>, vector<128x512xf32>, vector<8x512xf32> -> vector<8x512xf32>
    %cst_49 = arith.constant dense<0.000000e+00> : vector<8x512xf32>
    %217 = tpu.matmul %187, %3, %cst_49 {dimension_numbers = #tpu.dot_dimension_numbers<[1], [0], [0], [1], [0, 0, 1, 1], [], []>} : vector<8x128xf32>, vector<128x512xf32>, vector<8x512xf32> -> vector<8x512xf32>
    %218 = arith.addf %216, %217 : vector<8x512xf32>
    %219 = vector.broadcast %5 : vector<1x512xf32> to vector<8x512xf32>
    %220 = arith.addf %218, %219 : vector<8x512xf32>
    %221 = vector.extract_strided_slice %220 {offsets = [0, 0], sizes = [8, 128], strides = [1, 1]} : vector<8x512xf32> to vector<8x128xf32>
    %222 = arith.negf %221 : vector<8x128xf32>
    %223 = math.exp %222 : vector<8x128xf32>
    %cst_50 = arith.constant 1.000000e+00 : f32
    %224 = vector.broadcast %cst_50 : f32 to vector<8x128xf32>
    %225 = arith.addf %224, %223 : vector<8x128xf32>
    %226 = arith.divf %224, %225 : vector<8x128xf32>
    %227 = vector.extract_strided_slice %220 {offsets = [0, 128], sizes = [8, 128], strides = [1, 1]} : vector<8x512xf32> to vector<8x128xf32>
    %228 = arith.negf %227 : vector<8x128xf32>
    %229 = math.exp %228 : vector<8x128xf32>
    %cst_51 = arith.constant 1.000000e+00 : f32
    %230 = vector.broadcast %cst_51 : f32 to vector<8x128xf32>
    %231 = arith.addf %230, %229 : vector<8x128xf32>
    %232 = arith.divf %230, %231 : vector<8x128xf32>
    %233 = vector.extract_strided_slice %220 {offsets = [0, 256], sizes = [8, 128], strides = [1, 1]} : vector<8x512xf32> to vector<8x128xf32>
    %234 = math.tanh %233 : vector<8x128xf32>
    %235 = vector.extract_strided_slice %220 {offsets = [0, 384], sizes = [8, 128], strides = [1, 1]} : vector<8x512xf32> to vector<8x128xf32>
    %236 = arith.negf %235 : vector<8x128xf32>
    %237 = math.exp %236 : vector<8x128xf32>
    %cst_52 = arith.constant 1.000000e+00 : f32
    %238 = vector.broadcast %cst_52 : f32 to vector<8x128xf32>
    %239 = arith.addf %238, %237 : vector<8x128xf32>
    %240 = arith.divf %238, %239 : vector<8x128xf32>
    %241 = arith.mulf %232, %185 : vector<8x128xf32>
    %242 = arith.mulf %226, %234 : vector<8x128xf32>
    %243 = arith.addf %241, %242 : vector<8x128xf32>
    %244 = math.tanh %243 : vector<8x128xf32>
    %245 = arith.mulf %240, %244 : vector<8x128xf32>
    %246 = vector.extract_strided_slice %9 {offsets = [32, 0], sizes = [8, 512], strides = [1, 1]} : vector<64x512xf32> to vector<8x512xf32>
    %cst_53 = arith.constant dense<0.000000e+00> : vector<8x512xf32>
    %247 = tpu.matmul %215, %2, %cst_53 {dimension_numbers = #tpu.dot_dimension_numbers<[1], [0], [0], [1], [0, 0, 1, 1], [], []>} : vector<8x128xf32>, vector<128x512xf32>, vector<8x512xf32> -> vector<8x512xf32>
    %248 = arith.addf %246, %247 : vector<8x512xf32>
    %249 = vector.extract_strided_slice %248 {offsets = [0, 0], sizes = [8, 128], strides = [1, 1]} : vector<8x512xf32> to vector<8x128xf32>
    %250 = arith.negf %249 : vector<8x128xf32>
    %251 = math.exp %250 : vector<8x128xf32>
    %cst_54 = arith.constant 1.000000e+00 : f32
    %252 = vector.broadcast %cst_54 : f32 to vector<8x128xf32>
    %253 = arith.addf %252, %251 : vector<8x128xf32>
    %254 = arith.divf %252, %253 : vector<8x128xf32>
    %255 = vector.extract_strided_slice %248 {offsets = [0, 128], sizes = [8, 128], strides = [1, 1]} : vector<8x512xf32> to vector<8x128xf32>
    %256 = arith.negf %255 : vector<8x128xf32>
    %257 = math.exp %256 : vector<8x128xf32>
    %cst_55 = arith.constant 1.000000e+00 : f32
    %258 = vector.broadcast %cst_55 : f32 to vector<8x128xf32>
    %259 = arith.addf %258, %257 : vector<8x128xf32>
    %260 = arith.divf %258, %259 : vector<8x128xf32>
    %261 = vector.extract_strided_slice %248 {offsets = [0, 256], sizes = [8, 128], strides = [1, 1]} : vector<8x512xf32> to vector<8x128xf32>
    %262 = math.tanh %261 : vector<8x128xf32>
    %263 = vector.extract_strided_slice %248 {offsets = [0, 384], sizes = [8, 128], strides = [1, 1]} : vector<8x512xf32> to vector<8x128xf32>
    %264 = arith.negf %263 : vector<8x128xf32>
    %265 = math.exp %264 : vector<8x128xf32>
    %cst_56 = arith.constant 1.000000e+00 : f32
    %266 = vector.broadcast %cst_56 : f32 to vector<8x128xf32>
    %267 = arith.addf %266, %265 : vector<8x128xf32>
    %268 = arith.divf %266, %267 : vector<8x128xf32>
    %269 = arith.mulf %260, %213 : vector<8x128xf32>
    %270 = arith.mulf %254, %262 : vector<8x128xf32>
    %271 = arith.addf %269, %270 : vector<8x128xf32>
    %272 = math.tanh %271 : vector<8x128xf32>
    %273 = arith.mulf %268, %272 : vector<8x128xf32>
    %cst_57 = arith.constant dense<0.000000e+00> : vector<8x512xf32>
    %274 = tpu.matmul %273, %1, %cst_57 {dimension_numbers = #tpu.dot_dimension_numbers<[1], [0], [0], [1], [0, 0, 1, 1], [], []>} : vector<8x128xf32>, vector<128x512xf32>, vector<8x512xf32> -> vector<8x512xf32>
    %cst_58 = arith.constant dense<0.000000e+00> : vector<8x512xf32>
    %275 = tpu.matmul %245, %3, %cst_58 {dimension_numbers = #tpu.dot_dimension_numbers<[1], [0], [0], [1], [0, 0, 1, 1], [], []>} : vector<8x128xf32>, vector<128x512xf32>, vector<8x512xf32> -> vector<8x512xf32>
    %276 = arith.addf %274, %275 : vector<8x512xf32>
    %277 = vector.broadcast %5 : vector<1x512xf32> to vector<8x512xf32>
    %278 = arith.addf %276, %277 : vector<8x512xf32>
    %279 = vector.extract_strided_slice %278 {offsets = [0, 0], sizes = [8, 128], strides = [1, 1]} : vector<8x512xf32> to vector<8x128xf32>
    %280 = arith.negf %279 : vector<8x128xf32>
    %281 = math.exp %280 : vector<8x128xf32>
    %cst_59 = arith.constant 1.000000e+00 : f32
    %282 = vector.broadcast %cst_59 : f32 to vector<8x128xf32>
    %283 = arith.addf %282, %281 : vector<8x128xf32>
    %284 = arith.divf %282, %283 : vector<8x128xf32>
    %285 = vector.extract_strided_slice %278 {offsets = [0, 128], sizes = [8, 128], strides = [1, 1]} : vector<8x512xf32> to vector<8x128xf32>
    %286 = arith.negf %285 : vector<8x128xf32>
    %287 = math.exp %286 : vector<8x128xf32>
    %cst_60 = arith.constant 1.000000e+00 : f32
    %288 = vector.broadcast %cst_60 : f32 to vector<8x128xf32>
    %289 = arith.addf %288, %287 : vector<8x128xf32>
    %290 = arith.divf %288, %289 : vector<8x128xf32>
    %291 = vector.extract_strided_slice %278 {offsets = [0, 256], sizes = [8, 128], strides = [1, 1]} : vector<8x512xf32> to vector<8x128xf32>
    %292 = math.tanh %291 : vector<8x128xf32>
    %293 = vector.extract_strided_slice %278 {offsets = [0, 384], sizes = [8, 128], strides = [1, 1]} : vector<8x512xf32> to vector<8x128xf32>
    %294 = arith.negf %293 : vector<8x128xf32>
    %295 = math.exp %294 : vector<8x128xf32>
    %cst_61 = arith.constant 1.000000e+00 : f32
    %296 = vector.broadcast %cst_61 : f32 to vector<8x128xf32>
    %297 = arith.addf %296, %295 : vector<8x128xf32>
    %298 = arith.divf %296, %297 : vector<8x128xf32>
    %299 = arith.mulf %290, %243 : vector<8x128xf32>
    %300 = arith.mulf %284, %292 : vector<8x128xf32>
    %301 = arith.addf %299, %300 : vector<8x128xf32>
    %302 = math.tanh %301 : vector<8x128xf32>
    %303 = arith.mulf %298, %302 : vector<8x128xf32>
    %304 = vector.extract_strided_slice %9 {offsets = [40, 0], sizes = [8, 512], strides = [1, 1]} : vector<64x512xf32> to vector<8x512xf32>
    %cst_62 = arith.constant dense<0.000000e+00> : vector<8x512xf32>
    %305 = tpu.matmul %273, %2, %cst_62 {dimension_numbers = #tpu.dot_dimension_numbers<[1], [0], [0], [1], [0, 0, 1, 1], [], []>} : vector<8x128xf32>, vector<128x512xf32>, vector<8x512xf32> -> vector<8x512xf32>
    %306 = arith.addf %304, %305 : vector<8x512xf32>
    %307 = vector.extract_strided_slice %306 {offsets = [0, 0], sizes = [8, 128], strides = [1, 1]} : vector<8x512xf32> to vector<8x128xf32>
    %308 = arith.negf %307 : vector<8x128xf32>
    %309 = math.exp %308 : vector<8x128xf32>
    %cst_63 = arith.constant 1.000000e+00 : f32
    %310 = vector.broadcast %cst_63 : f32 to vector<8x128xf32>
    %311 = arith.addf %310, %309 : vector<8x128xf32>
    %312 = arith.divf %310, %311 : vector<8x128xf32>
    %313 = vector.extract_strided_slice %306 {offsets = [0, 128], sizes = [8, 128], strides = [1, 1]} : vector<8x512xf32> to vector<8x128xf32>
    %314 = arith.negf %313 : vector<8x128xf32>
    %315 = math.exp %314 : vector<8x128xf32>
    %cst_64 = arith.constant 1.000000e+00 : f32
    %316 = vector.broadcast %cst_64 : f32 to vector<8x128xf32>
    %317 = arith.addf %316, %315 : vector<8x128xf32>
    %318 = arith.divf %316, %317 : vector<8x128xf32>
    %319 = vector.extract_strided_slice %306 {offsets = [0, 256], sizes = [8, 128], strides = [1, 1]} : vector<8x512xf32> to vector<8x128xf32>
    %320 = math.tanh %319 : vector<8x128xf32>
    %321 = vector.extract_strided_slice %306 {offsets = [0, 384], sizes = [8, 128], strides = [1, 1]} : vector<8x512xf32> to vector<8x128xf32>
    %322 = arith.negf %321 : vector<8x128xf32>
    %323 = math.exp %322 : vector<8x128xf32>
    %cst_65 = arith.constant 1.000000e+00 : f32
    %324 = vector.broadcast %cst_65 : f32 to vector<8x128xf32>
    %325 = arith.addf %324, %323 : vector<8x128xf32>
    %326 = arith.divf %324, %325 : vector<8x128xf32>
    %327 = arith.mulf %318, %271 : vector<8x128xf32>
    %328 = arith.mulf %312, %320 : vector<8x128xf32>
    %329 = arith.addf %327, %328 : vector<8x128xf32>
    %330 = math.tanh %329 : vector<8x128xf32>
    %331 = arith.mulf %326, %330 : vector<8x128xf32>
    %cst_66 = arith.constant dense<0.000000e+00> : vector<8x512xf32>
    %332 = tpu.matmul %331, %1, %cst_66 {dimension_numbers = #tpu.dot_dimension_numbers<[1], [0], [0], [1], [0, 0, 1, 1], [], []>} : vector<8x128xf32>, vector<128x512xf32>, vector<8x512xf32> -> vector<8x512xf32>
    %cst_67 = arith.constant dense<0.000000e+00> : vector<8x512xf32>
    %333 = tpu.matmul %303, %3, %cst_67 {dimension_numbers = #tpu.dot_dimension_numbers<[1], [0], [0], [1], [0, 0, 1, 1], [], []>} : vector<8x128xf32>, vector<128x512xf32>, vector<8x512xf32> -> vector<8x512xf32>
    %334 = arith.addf %332, %333 : vector<8x512xf32>
    %335 = vector.broadcast %5 : vector<1x512xf32> to vector<8x512xf32>
    %336 = arith.addf %334, %335 : vector<8x512xf32>
    %337 = vector.extract_strided_slice %336 {offsets = [0, 0], sizes = [8, 128], strides = [1, 1]} : vector<8x512xf32> to vector<8x128xf32>
    %338 = arith.negf %337 : vector<8x128xf32>
    %339 = math.exp %338 : vector<8x128xf32>
    %cst_68 = arith.constant 1.000000e+00 : f32
    %340 = vector.broadcast %cst_68 : f32 to vector<8x128xf32>
    %341 = arith.addf %340, %339 : vector<8x128xf32>
    %342 = arith.divf %340, %341 : vector<8x128xf32>
    %343 = vector.extract_strided_slice %336 {offsets = [0, 128], sizes = [8, 128], strides = [1, 1]} : vector<8x512xf32> to vector<8x128xf32>
    %344 = arith.negf %343 : vector<8x128xf32>
    %345 = math.exp %344 : vector<8x128xf32>
    %cst_69 = arith.constant 1.000000e+00 : f32
    %346 = vector.broadcast %cst_69 : f32 to vector<8x128xf32>
    %347 = arith.addf %346, %345 : vector<8x128xf32>
    %348 = arith.divf %346, %347 : vector<8x128xf32>
    %349 = vector.extract_strided_slice %336 {offsets = [0, 256], sizes = [8, 128], strides = [1, 1]} : vector<8x512xf32> to vector<8x128xf32>
    %350 = math.tanh %349 : vector<8x128xf32>
    %351 = vector.extract_strided_slice %336 {offsets = [0, 384], sizes = [8, 128], strides = [1, 1]} : vector<8x512xf32> to vector<8x128xf32>
    %352 = arith.negf %351 : vector<8x128xf32>
    %353 = math.exp %352 : vector<8x128xf32>
    %cst_70 = arith.constant 1.000000e+00 : f32
    %354 = vector.broadcast %cst_70 : f32 to vector<8x128xf32>
    %355 = arith.addf %354, %353 : vector<8x128xf32>
    %356 = arith.divf %354, %355 : vector<8x128xf32>
    %357 = arith.mulf %348, %301 : vector<8x128xf32>
    %358 = arith.mulf %342, %350 : vector<8x128xf32>
    %359 = arith.addf %357, %358 : vector<8x128xf32>
    %360 = math.tanh %359 : vector<8x128xf32>
    %361 = arith.mulf %356, %360 : vector<8x128xf32>
    %362 = vector.extract_strided_slice %9 {offsets = [48, 0], sizes = [8, 512], strides = [1, 1]} : vector<64x512xf32> to vector<8x512xf32>
    %cst_71 = arith.constant dense<0.000000e+00> : vector<8x512xf32>
    %363 = tpu.matmul %331, %2, %cst_71 {dimension_numbers = #tpu.dot_dimension_numbers<[1], [0], [0], [1], [0, 0, 1, 1], [], []>} : vector<8x128xf32>, vector<128x512xf32>, vector<8x512xf32> -> vector<8x512xf32>
    %364 = arith.addf %362, %363 : vector<8x512xf32>
    %365 = vector.extract_strided_slice %364 {offsets = [0, 0], sizes = [8, 128], strides = [1, 1]} : vector<8x512xf32> to vector<8x128xf32>
    %366 = arith.negf %365 : vector<8x128xf32>
    %367 = math.exp %366 : vector<8x128xf32>
    %cst_72 = arith.constant 1.000000e+00 : f32
    %368 = vector.broadcast %cst_72 : f32 to vector<8x128xf32>
    %369 = arith.addf %368, %367 : vector<8x128xf32>
    %370 = arith.divf %368, %369 : vector<8x128xf32>
    %371 = vector.extract_strided_slice %364 {offsets = [0, 128], sizes = [8, 128], strides = [1, 1]} : vector<8x512xf32> to vector<8x128xf32>
    %372 = arith.negf %371 : vector<8x128xf32>
    %373 = math.exp %372 : vector<8x128xf32>
    %cst_73 = arith.constant 1.000000e+00 : f32
    %374 = vector.broadcast %cst_73 : f32 to vector<8x128xf32>
    %375 = arith.addf %374, %373 : vector<8x128xf32>
    %376 = arith.divf %374, %375 : vector<8x128xf32>
    %377 = vector.extract_strided_slice %364 {offsets = [0, 256], sizes = [8, 128], strides = [1, 1]} : vector<8x512xf32> to vector<8x128xf32>
    %378 = math.tanh %377 : vector<8x128xf32>
    %379 = vector.extract_strided_slice %364 {offsets = [0, 384], sizes = [8, 128], strides = [1, 1]} : vector<8x512xf32> to vector<8x128xf32>
    %380 = arith.negf %379 : vector<8x128xf32>
    %381 = math.exp %380 : vector<8x128xf32>
    %cst_74 = arith.constant 1.000000e+00 : f32
    %382 = vector.broadcast %cst_74 : f32 to vector<8x128xf32>
    %383 = arith.addf %382, %381 : vector<8x128xf32>
    %384 = arith.divf %382, %383 : vector<8x128xf32>
    %385 = arith.mulf %376, %329 : vector<8x128xf32>
    %386 = arith.mulf %370, %378 : vector<8x128xf32>
    %387 = arith.addf %385, %386 : vector<8x128xf32>
    %388 = math.tanh %387 : vector<8x128xf32>
    %389 = arith.mulf %384, %388 : vector<8x128xf32>
    %cst_75 = arith.constant dense<0.000000e+00> : vector<8x512xf32>
    %390 = tpu.matmul %389, %1, %cst_75 {dimension_numbers = #tpu.dot_dimension_numbers<[1], [0], [0], [1], [0, 0, 1, 1], [], []>} : vector<8x128xf32>, vector<128x512xf32>, vector<8x512xf32> -> vector<8x512xf32>
    %cst_76 = arith.constant dense<0.000000e+00> : vector<8x512xf32>
    %391 = tpu.matmul %361, %3, %cst_76 {dimension_numbers = #tpu.dot_dimension_numbers<[1], [0], [0], [1], [0, 0, 1, 1], [], []>} : vector<8x128xf32>, vector<128x512xf32>, vector<8x512xf32> -> vector<8x512xf32>
    %392 = arith.addf %390, %391 : vector<8x512xf32>
    %393 = vector.broadcast %5 : vector<1x512xf32> to vector<8x512xf32>
    %394 = arith.addf %392, %393 : vector<8x512xf32>
    %395 = vector.extract_strided_slice %394 {offsets = [0, 0], sizes = [8, 128], strides = [1, 1]} : vector<8x512xf32> to vector<8x128xf32>
    %396 = arith.negf %395 : vector<8x128xf32>
    %397 = math.exp %396 : vector<8x128xf32>
    %cst_77 = arith.constant 1.000000e+00 : f32
    %398 = vector.broadcast %cst_77 : f32 to vector<8x128xf32>
    %399 = arith.addf %398, %397 : vector<8x128xf32>
    %400 = arith.divf %398, %399 : vector<8x128xf32>
    %401 = vector.extract_strided_slice %394 {offsets = [0, 128], sizes = [8, 128], strides = [1, 1]} : vector<8x512xf32> to vector<8x128xf32>
    %402 = arith.negf %401 : vector<8x128xf32>
    %403 = math.exp %402 : vector<8x128xf32>
    %cst_78 = arith.constant 1.000000e+00 : f32
    %404 = vector.broadcast %cst_78 : f32 to vector<8x128xf32>
    %405 = arith.addf %404, %403 : vector<8x128xf32>
    %406 = arith.divf %404, %405 : vector<8x128xf32>
    %407 = vector.extract_strided_slice %394 {offsets = [0, 256], sizes = [8, 128], strides = [1, 1]} : vector<8x512xf32> to vector<8x128xf32>
    %408 = math.tanh %407 : vector<8x128xf32>
    %409 = vector.extract_strided_slice %394 {offsets = [0, 384], sizes = [8, 128], strides = [1, 1]} : vector<8x512xf32> to vector<8x128xf32>
    %410 = arith.negf %409 : vector<8x128xf32>
    %411 = math.exp %410 : vector<8x128xf32>
    %cst_79 = arith.constant 1.000000e+00 : f32
    %412 = vector.broadcast %cst_79 : f32 to vector<8x128xf32>
    %413 = arith.addf %412, %411 : vector<8x128xf32>
    %414 = arith.divf %412, %413 : vector<8x128xf32>
    %415 = arith.mulf %406, %359 : vector<8x128xf32>
    %416 = arith.mulf %400, %408 : vector<8x128xf32>
    %417 = arith.addf %415, %416 : vector<8x128xf32>
    %418 = math.tanh %417 : vector<8x128xf32>
    %419 = arith.mulf %414, %418 : vector<8x128xf32>
    %420 = vector.extract_strided_slice %9 {offsets = [56, 0], sizes = [8, 512], strides = [1, 1]} : vector<64x512xf32> to vector<8x512xf32>
    %cst_80 = arith.constant dense<0.000000e+00> : vector<8x512xf32>
    %421 = tpu.matmul %389, %2, %cst_80 {dimension_numbers = #tpu.dot_dimension_numbers<[1], [0], [0], [1], [0, 0, 1, 1], [], []>} : vector<8x128xf32>, vector<128x512xf32>, vector<8x512xf32> -> vector<8x512xf32>
    %422 = arith.addf %420, %421 : vector<8x512xf32>
    %423 = vector.extract_strided_slice %422 {offsets = [0, 0], sizes = [8, 128], strides = [1, 1]} : vector<8x512xf32> to vector<8x128xf32>
    %424 = arith.negf %423 : vector<8x128xf32>
    %425 = math.exp %424 : vector<8x128xf32>
    %cst_81 = arith.constant 1.000000e+00 : f32
    %426 = vector.broadcast %cst_81 : f32 to vector<8x128xf32>
    %427 = arith.addf %426, %425 : vector<8x128xf32>
    %428 = arith.divf %426, %427 : vector<8x128xf32>
    %429 = vector.extract_strided_slice %422 {offsets = [0, 128], sizes = [8, 128], strides = [1, 1]} : vector<8x512xf32> to vector<8x128xf32>
    %430 = arith.negf %429 : vector<8x128xf32>
    %431 = math.exp %430 : vector<8x128xf32>
    %cst_82 = arith.constant 1.000000e+00 : f32
    %432 = vector.broadcast %cst_82 : f32 to vector<8x128xf32>
    %433 = arith.addf %432, %431 : vector<8x128xf32>
    %434 = arith.divf %432, %433 : vector<8x128xf32>
    %435 = vector.extract_strided_slice %422 {offsets = [0, 256], sizes = [8, 128], strides = [1, 1]} : vector<8x512xf32> to vector<8x128xf32>
    %436 = math.tanh %435 : vector<8x128xf32>
    %437 = vector.extract_strided_slice %422 {offsets = [0, 384], sizes = [8, 128], strides = [1, 1]} : vector<8x512xf32> to vector<8x128xf32>
    %438 = arith.negf %437 : vector<8x128xf32>
    %439 = math.exp %438 : vector<8x128xf32>
    %cst_83 = arith.constant 1.000000e+00 : f32
    %440 = vector.broadcast %cst_83 : f32 to vector<8x128xf32>
    %441 = arith.addf %440, %439 : vector<8x128xf32>
    %442 = arith.divf %440, %441 : vector<8x128xf32>
    %443 = arith.mulf %434, %387 : vector<8x128xf32>
    %444 = arith.mulf %428, %436 : vector<8x128xf32>
    %445 = arith.addf %443, %444 : vector<8x128xf32>
    %446 = math.tanh %445 : vector<8x128xf32>
    %447 = arith.mulf %442, %446 : vector<8x128xf32>
    %cst_84 = arith.constant dense<0.000000e+00> : vector<8x512xf32>
    %448 = tpu.matmul %447, %1, %cst_84 {dimension_numbers = #tpu.dot_dimension_numbers<[1], [0], [0], [1], [0, 0, 1, 1], [], []>} : vector<8x128xf32>, vector<128x512xf32>, vector<8x512xf32> -> vector<8x512xf32>
    %cst_85 = arith.constant dense<0.000000e+00> : vector<8x512xf32>
    %449 = tpu.matmul %419, %3, %cst_85 {dimension_numbers = #tpu.dot_dimension_numbers<[1], [0], [0], [1], [0, 0, 1, 1], [], []>} : vector<8x128xf32>, vector<128x512xf32>, vector<8x512xf32> -> vector<8x512xf32>
    %450 = arith.addf %448, %449 : vector<8x512xf32>
    %451 = vector.broadcast %5 : vector<1x512xf32> to vector<8x512xf32>
    %452 = arith.addf %450, %451 : vector<8x512xf32>
    %453 = vector.extract_strided_slice %452 {offsets = [0, 0], sizes = [8, 128], strides = [1, 1]} : vector<8x512xf32> to vector<8x128xf32>
    %454 = arith.negf %453 : vector<8x128xf32>
    %455 = math.exp %454 : vector<8x128xf32>
    %cst_86 = arith.constant 1.000000e+00 : f32
    %456 = vector.broadcast %cst_86 : f32 to vector<8x128xf32>
    %457 = arith.addf %456, %455 : vector<8x128xf32>
    %458 = arith.divf %456, %457 : vector<8x128xf32>
    %459 = vector.extract_strided_slice %452 {offsets = [0, 128], sizes = [8, 128], strides = [1, 1]} : vector<8x512xf32> to vector<8x128xf32>
    %460 = arith.negf %459 : vector<8x128xf32>
    %461 = math.exp %460 : vector<8x128xf32>
    %cst_87 = arith.constant 1.000000e+00 : f32
    %462 = vector.broadcast %cst_87 : f32 to vector<8x128xf32>
    %463 = arith.addf %462, %461 : vector<8x128xf32>
    %464 = arith.divf %462, %463 : vector<8x128xf32>
    %465 = vector.extract_strided_slice %452 {offsets = [0, 256], sizes = [8, 128], strides = [1, 1]} : vector<8x512xf32> to vector<8x128xf32>
    %466 = math.tanh %465 : vector<8x128xf32>
    %467 = vector.extract_strided_slice %452 {offsets = [0, 384], sizes = [8, 128], strides = [1, 1]} : vector<8x512xf32> to vector<8x128xf32>
    %468 = arith.negf %467 : vector<8x128xf32>
    %469 = math.exp %468 : vector<8x128xf32>
    %cst_88 = arith.constant 1.000000e+00 : f32
    %470 = vector.broadcast %cst_88 : f32 to vector<8x128xf32>
    %471 = arith.addf %470, %469 : vector<8x128xf32>
    %472 = arith.divf %470, %471 : vector<8x128xf32>
    %473 = arith.mulf %464, %417 : vector<8x128xf32>
    %474 = arith.mulf %458, %466 : vector<8x128xf32>
    %475 = arith.addf %473, %474 : vector<8x128xf32>
    %476 = math.tanh %475 : vector<8x128xf32>
    %477 = arith.mulf %472, %476 : vector<8x128xf32>
    %478 = tpu.concatenate %71, %129, %187, %245, %303, %361, %419, %477 in 0 : vector<8x128xf32>, vector<8x128xf32>, vector<8x128xf32>, vector<8x128xf32>, vector<8x128xf32>, vector<8x128xf32>, vector<8x128xf32>, vector<8x128xf32> -> vector<64x128xf32>
    %c0_89 = arith.constant 0 : index
    %c0_90 = arith.constant 0 : index
    %479 = vector.load %arg7[%c0_89, %c0_90] : memref<128x128xf32, #tpu.memory_space<vmem>>, vector<128x128xf32>
    %cst_91 = arith.constant dense<0.000000e+00> : vector<64x128xf32>
    %480 = tpu.matmul %478, %479, %cst_91 {dimension_numbers = #tpu.dot_dimension_numbers<[1], [0], [0], [1], [0, 0, 1, 1], [], []>} : vector<64x128xf32>, vector<128x128xf32>, vector<64x128xf32> -> vector<64x128xf32>
    %c0_92 = arith.constant 0 : index
    %c0_93 = arith.constant 0 : index
    %481 = vector.load %arg8[%c0_92, %c0_93] : memref<1x128xf32, #tpu.memory_space<vmem>>, vector<1x128xf32>
    %482 = vector.broadcast %481 : vector<1x128xf32> to vector<64x128xf32>
    %483 = arith.addf %480, %482 : vector<64x128xf32>
    %484 = math.tanh %483 : vector<64x128xf32>
    %c0_94 = arith.constant 0 : index
    %c0_95 = arith.constant 0 : index
    %485 = vector.load %arg9[%c0_94, %c0_95] : memref<128x128xf32, #tpu.memory_space<vmem>>, vector<128x128xf32>
    %cst_96 = arith.constant dense<0.000000e+00> : vector<64x128xf32>
    %486 = tpu.matmul %484, %485, %cst_96 {dimension_numbers = #tpu.dot_dimension_numbers<[1], [0], [0], [1], [0, 0, 1, 1], [], []>} : vector<64x128xf32>, vector<128x128xf32>, vector<64x128xf32> -> vector<64x128xf32>
    %c0_97 = arith.constant 0 : index
    %c0_98 = arith.constant 0 : index
    %487 = vector.load %arg10[%c0_97, %c0_98] : memref<1x128xf32, #tpu.memory_space<vmem>>, vector<1x128xf32>
    %488 = vector.broadcast %487 : vector<1x128xf32> to vector<64x128xf32>
    %489 = arith.addf %486, %488 : vector<64x128xf32>
    %c0_99 = arith.constant 0 : index
    %c0_100 = arith.constant 0 : index
    %490 = vector.load %arg11[%c0_99, %c0_100] : memref<64x128xf32, #tpu.memory_space<vmem>>, vector<64x128xf32>
    tpu.vector_store %arg11[%c0_99, %c0_100], %489 {strides = array<i32>} : memref<64x128xf32, #tpu.memory_space<vmem>>, vector<64x128xf32>,
    return
  }
}

</mosaic_0001>

<bundles_post_ra>
// kernel: tpu_custom_call.1
= control target key start
LH: loop header
LB: loop body
LE: loop exit
PB: predicated region body
PF: predicated region fallthrough
CT: control target
= control target key end

     0   :  { %16 = vsyncpa [#allocation3], 0  ;;  %s8534_s0 = inlined_call_operand.vmem [shape: f32[64,8], index: 0, kind: input, shape index: {}]   ;;  %s8535_s1 = inlined_call_operand.vmem [shape: f32[8,512], index: 1, kind: input, shape index: {}]   ;;  %s8536_s2 = inlined_call_operand.hbm [shape: f32[128,512], index: 2, kind: input, shape index: {}]   ;;  %s8537_s3 = inlined_call_operand.vmem [shape: f32[1,512], index: 3, kind: input, shape index: {}]   ;;  %s8538_s4 = inlined_call_operand.hbm [shape: f32[128,512], index: 4, kind: input, shape index: {}]   ;;  %s8539_s5 = inlined_call_operand.hbm [shape: f32[128,512], index: 5, kind: input, shape index: {}]   ;;  %s8540_s6 = inlined_call_operand.vmem [shape: f32[1,512], index: 6, kind: input, shape index: {}]   ;;  %s8541_s7 = inlined_call_operand.hbm [shape: f32[128,128], index: 7, kind: input, shape index: {}]   ;;  %s8542_s8 = inlined_call_operand.vmem [shape: f32[1,128], index: 8, kind: input, shape index: {}]   ;;  %s8543_s9 = inlined_call_operand.hbm [shape: f32[128,128], index: 9, kind: input, shape index: {}]   ;;  %s8544_s10 = inlined_call_operand.vmem [shape: f32[1,128], index: 10, kind: input, shape index: {}]   ;;  %s8545_s11 = inlined_call_operand.hbm [shape: f32[64,128], index: 11, kind: output, shape index: {}]  }
   0x1   :  { %17 = vsyncpa [#allocation6], 0 }
   0x2   :  { %18 = vsyncpa [#allocation9], 0 }
   0x3   :  { %19 = vsyncpa [#allocation4], 0  ;;  %s7074_s17 = smov [#allocation5]   ;;  %s7075_s19 = smov [#allocation8]  }
   0x4   :  { %s43_s18 = sshll.u32 %s7074_s17, 4  ;;  %s69_s20 = sshll.u32 %s7075_s19, 4  ;;  %s44_s18 = int_to_ptr.vmem [resolvable:$true] %s43_s18  ;;  %s7145_s20 = int_to_ptr.vmem [resolvable:$true] %s69_s20 }
   0x5   :  { %s6934_s23 = scalar_lea.hbm %s8538_s4, 8192 }
   0x6   :  { %p6935_p0 = scmp.ne.s32.totalorder %s8538_s4, %s6934_s23  ;;  %p6938_p1 = scmp.lt.u32.totalorder %s6934_s23, %s8538_s4 }
   0x8   :  { %p6940_p2 = pnand %p6938_p1, %p6935_p0 }
   0xa   :  { %6943 = shalt.err (!%p6940_p2)
}
   0xb   :  { %s6944_s28 = scalar_lea.vmem %s44_s18, 8192  ;;  %p6949_p4 = scmp.lt.s32.totalorder %s44_s18, %s44_s18 }
   0xc   :  { %p6945_p3 = scmp.ne.s32.totalorder %s44_s18, %s6944_s28  ;;  %p6950_p5 = scmp.lt.s32.totalorder %s6944_s28, %s6944_s28 }
   0xe   :  { %p6951_p6 = por %p6950_p5, %p6949_p4 }
  0x10   :  { %p6952_p7 = pnand %p6951_p6, %p6945_p3 }
  0x12   :  { %6955 = shalt.err (!%p6952_p7)
}
  0x13   :  { %s7076_s29 = smov 512   ;;  %s7077_s30 = smov 32  }
  0x14   :  { %49 = dma.hbm_to_vmem [thread:$0]  %s8538_s4, 8192, %s44_s18, [#allocation6], %s7076_s29, %s7076_s29, %s7077_s30  }
  0x15   :  { %s6956_s16 = scalar_lea.hbm %s8541_s7, 2048 }
  0x16   :  { %p6957_p8 = scmp.ne.s32.totalorder %s8541_s7, %s6956_s16  ;;  %p6960_p9 = scmp.lt.u32.totalorder %s6956_s16, %s8541_s7 }
  0x18   :  { %p6962_p10 = pnand %p6960_p9, %p6957_p8 }
  0x1a   :  { %6965 = shalt.err (!%p6962_p10)
}
  0x1b   :  { %s6966_s23 = scalar_lea.vmem %s7145_s20, 2048  ;;  %p6971_p12 = scmp.lt.s32.totalorder %s7145_s20, %s7145_s20 }
  0x1c   :  { %p6967_p11 = scmp.ne.s32.totalorder %s7145_s20, %s6966_s23  ;;  %p6972_p13 = scmp.lt.s32.totalorder %s6966_s23, %s6966_s23 }
  0x1e   :  { %p6973_p0 = por %p6972_p13, %p6971_p12 }
  0x20   :  { %p6974_p1 = pnand %p6973_p0, %p6967_p11 }
  0x22   :  { %6977 = shalt.err (!%p6974_p1)
}
  0x23   :  { %s7078_s4 = smov 128   ;;  %s7079_s18 = smov 8  }
  0x24   :  { %75 = dma.hbm_to_vmem [thread:$0]  %s8541_s7, 2048, %s7145_s20, [#allocation9], %s7078_s4, %s7078_s4, %s7079_s18  }
  0x25   :  { %s7080_s26 = smov [#allocation2]   ;;  %s7081_s28 = smov [#allocation7]  }
  0x26   :  { %s29_s27 = sshll.u32 %s7080_s26, 4  ;;  %s55_s12 = sshll.u32 %s7081_s28, 4  ;;  %s30_s27 = int_to_ptr.vmem [resolvable:$true] %s29_s27  ;;  %s7182_s12 = int_to_ptr.vmem [resolvable:$true] %s55_s12 }
  0x27   :  { %s6978_s15 = scalar_lea.hbm %s8536_s2, 8192 }
  0x28   :  { %p6979_p2 = scmp.ne.s32.totalorder %s8536_s2, %s6978_s15  ;;  %p6982_p3 = scmp.lt.u32.totalorder %s6978_s15, %s8536_s2 }
  0x2a   :  { %p6984_p4 = pnand %p6982_p3, %p6979_p2 }
  0x2c   :  { %6987 = shalt.err (!%p6984_p4)
}
  0x2d   :  { %s6988_s7 = scalar_lea.vmem %s30_s27, 8192  ;;  %p6993_p6 = scmp.lt.s32.totalorder %s30_s27, %s30_s27 }
  0x2e   :  { %p6989_p5 = scmp.ne.s32.totalorder %s30_s27, %s6988_s7  ;;  %p6994_p7 = scmp.lt.s32.totalorder %s6988_s7, %s6988_s7 }
  0x30   :  { %p6995_p8 = por %p6994_p7, %p6993_p6 }
  0x32   :  { %p6996_p9 = pnand %p6995_p8, %p6989_p5 }
  0x34   :  { %6999 = shalt.err (!%p6996_p9)
}
  0x35   :  { %35 = dma.hbm_to_vmem [thread:$0]  %s8536_s2, 8192, %s30_s27, [#allocation3], %s7076_s29, %s7076_s29, %s7077_s30  }
  0x36   :  { %s7000_s25 = scalar_lea.hbm %s8539_s5, 8192 }
  0x37   :  { %p7001_p10 = scmp.ne.s32.totalorder %s8539_s5, %s7000_s25  ;;  %p7004_p11 = scmp.lt.u32.totalorder %s7000_s25, %s8539_s5 }
  0x39   :  { %p7006_p12 = pnand %p7004_p11, %p7001_p10 }
  0x3b   :  { %7009 = shalt.err (!%p7006_p12)
}
  0x3c   :  { %s7010_s15 = scalar_lea.vmem %s7182_s12, 8192  ;;  %p7015_p0 = scmp.lt.s32.totalorder %s7182_s12, %s7182_s12 }
  0x3d   :  { %p7011_p13 = scmp.ne.s32.totalorder %s7182_s12, %s7010_s15  ;;  %p7016_p1 = scmp.lt.s32.totalorder %s7010_s15, %s7010_s15 }
  0x3f   :  { %p7017_p2 = por %p7016_p1, %p7015_p0 }
  0x41   :  { %p7018_p3 = pnand %p7017_p2, %p7011_p13 }
  0x43   :  { %7021 = shalt.err (!%p7018_p3)
}
  0x44   :  { %61 = dma.hbm_to_vmem [thread:$0]  %s8539_s5, 8192, %s7182_s12, [#allocation6], %s7076_s29, %s7076_s29, %s7077_s30  }
  0x45   :  { %s7082_s16 = smov [#allocation10]   ;;  %s7022_s7 = scalar_lea.hbm %s8543_s9, 2048 }
  0x46   :  { %s83_s17 = sshll.u32 %s7082_s16, 4  ;;  %p7023_p4 = scmp.ne.s32.totalorder %s8543_s9, %s7022_s7  ;;  %s84_s17 = int_to_ptr.vmem [resolvable:$true] %s83_s17 }
  0x47   :  { %p7026_p5 = scmp.lt.u32.totalorder %s7022_s7, %s8543_s9 }
  0x49   :  { %p7028_p6 = pnand %p7026_p5, %p7023_p4 }
  0x4b   :  { %7031 = shalt.err (!%p7028_p6)
}
  0x4c   :  { %s7032_s25 = scalar_lea.vmem %s84_s17, 2048  ;;  %p7037_p8 = scmp.lt.s32.totalorder %s84_s17, %s84_s17 }
  0x4d   :  { %p7033_p7 = scmp.ne.s32.totalorder %s84_s17, %s7032_s25  ;;  %p7038_p9 = scmp.lt.s32.totalorder %s7032_s25, %s7032_s25 }
  0x4f   :  { %p7039_p10 = por %p7038_p9, %p7037_p8 }
  0x51   :  { %p7040_p11 = pnand %p7039_p10, %p7033_p7 }
  0x53   :  { %7043 = shalt.err (!%p7040_p11)
}
  0x54   :  { %89 = dma.hbm_to_vmem [thread:$0]  %s8543_s9, 2048, %s84_s17, [#allocation9], %s7078_s4, %s7078_s4, %s7079_s18  }
  0x55   :  { %7066 = dma.done.wait [#allocation3], 8192  }
  0x56   :  { %7067 = vsyncadd [#allocation3], 4294959104 }
  0x57   :  { %7068 = dma.done.wait [#allocation6], 16384  }
  0x58   :  { %7069 = vsyncadd [#allocation6], 4294950912 }
  0x59   :  { %7070 = dma.done.wait [#allocation9], 4096  }
  0x5a   :  { %7071 = vsyncadd [#allocation9], 4294963200  ;;  %v8546_v0 = vmov 0.0   ;;  %v108_v1 = vld [vmem:[%s8535_s1 + $0x8] sm:$0xff]  ;;  %v110_v2 = vld [vmem:[%s8535_s1 + $0x18] sm:$0xff]  ;;  %vm334_vm0 = vcmask 64512  }
  0x5b   :  { %423 = vmatprep.mubr.f32.mxu0 %v8546_v0  ;;  %536 = vmatprep.mubr.f32.mxu1 %v8546_v0  ;;  %v107_v3 = vld [vmem:[%s8535_s1] sm:$0xff]  ;;  %v109_v4 = vld [vmem:[%s8535_s1 + $0x10] sm:$0xff]  ;;  %v176_v6 = vld [vmem:[#allocation2 + $0x8] sm:$0xff] }
  0x5c   :  { %359 = vmatprep.subr.mxu0 %v108_v1  ;;  %472 = vmatprep.subr.mxu1 %v110_v2  ;;  %v305_v5 = vld [vmem:[%s8534_s0] sm:$0xff]  ;;  %v180_v7 = vld [vmem:[#allocation2 + $0x28] sm:$0xff]  ;;  %v178_v8 = vld [vmem:[#allocation2 + $0x18] sm:$0xff] }
  0x5d   :  { %360 = vmatpush1.msra.mxu0 %v107_v3  ;;  %473 = vmatpush1.msra.mxu1 %v109_v4  ;;  %v182_v9 = vld [vmem:[#allocation2 + $0x38] sm:$0xff]  ;;  %v7253_v10 = vpack.c.bf16 %v180_v7, %v176_v6  ;;  %v175_v12 = vld [vmem:[#allocation2] sm:$0xff]  ;;  %v177_v14 = vld [vmem:[#allocation2 + $0x10] sm:$0xff] }
  0x5e   :  { %4753 = vmatmul.mubr.msk.f32.vlgmr.msra.gmra.mrb[0].mxu0 %vm334_vm0, %v305_v5  ;;  %4761 = vmatmul.mubr.msk.f32.vlgmr.msra.gmra.mrb[0].mxu1 %vm334_vm0, %v305_v5  ;;  %v7255_v11 = vpack.c.bf16 %v182_v9, %v178_v8  ;;  %v179_v13 = vld [vmem:[#allocation2 + $0x20] sm:$0xff]  ;;  %v181_v16 = vld [vmem:[#allocation2 + $0x30] sm:$0xff]  ;;  %v306_v17 = vld [vmem:[%s8534_s0 + $0x8] sm:$0xff] }
  0x5f   :  { %8749 = vst [vmem:[#allocation16_spill] sm:$0xff] %v7253_v10  ;;  %v7257_v15 = vpack.c.bf16 %v179_v13, %v175_v12  ;;  %429 = vmatprep.mubr.f32.mxu0 %v8546_v0  ;;  %542 = vmatprep.mubr.f32.mxu1 %v8546_v0  ;;  %v184_v18 = vld [vmem:[#allocation2 + $0x48] sm:$0xff]  ;;  %v7266_v19 = vpack.c.bf16 %v181_v16, %v177_v14  ;;  %v186_v21 = vld [vmem:[#allocation2 + $0x58] sm:$0xff]  ;;  %v183_v25 = vld [vmem:[#allocation2 + $0x40] sm:$0xff] }
  0x60   :  { %8750 = vst [vmem:[#allocation17_spill] sm:$0xff] %v7255_v11  ;;  %4956 = vmatprep.subr.bf16.mxu0 %v7253_v10  ;;  %4988 = vmatprep.subr.bf16.mxu1 %v7255_v11  ;;  %v188_v20 = vld [vmem:[#allocation2 + $0x68] sm:$0xff]  ;;  %v190_v22 = vld [vmem:[#allocation2 + $0x78] sm:$0xff]  ;;  %v187_v26 = vld [vmem:[#allocation2 + $0x60] sm:$0xff] }
  0x61   :  { %4958 = vmatpush1.bf16.msra.mxu0 %v7257_v15  ;;  %v7269_v23 = vpack.c.bf16 %v188_v20, %v184_v18  ;;  %v7271_v24 = vpack.c.bf16 %v190_v22, %v186_v21  ;;  %v185_v27 = vld [vmem:[#allocation2 + $0x50] sm:$0xff]  ;;  %4990 = vmatpush1.bf16.msra.mxu1 %v7266_v19  ;;  %v7275_v28 = vpack.c.bf16 %v187_v26, %v183_v25  ;;  %v192_v31 = vld [vmem:[#allocation2 + $0x88] sm:$0xff]  ;;  %v194_v34 = vld [vmem:[#allocation2 + $0x98] sm:$0xff] }
  0x62   :  { %4754 = vmatmul.mubr.msk.f32.gmra.mrb[2].mxu0 %vm334_vm0, %v306_v17  ;;  %v189_v29 = vld [vmem:[#allocation2 + $0x70] sm:$0xff]  ;;  %4762 = vmatmul.mubr.msk.f32.gmra.mrb[2].mxu1 %vm334_vm0, %v306_v17  ;;  %v196_v33 = vld [vmem:[#allocation2 + $0xa8] sm:$0xff]  ;;  %v198_v35 = vld [vmem:[#allocation2 + $0xb8] sm:$0xff] }
  0x63   :  { %v307_v30 = vld [vmem:[%s8534_s0 + $0x10] sm:$0xff]  ;;  %4960 = vmatprep.subr.bf16.mxu0 %v7269_v23  ;;  %v7282_v32 = vpack.c.bf16 %v189_v29, %v185_v27  ;;  %4992 = vmatprep.subr.bf16.mxu1 %v7271_v24  ;;  %v7286_v36 = vpack.c.bf16 %v196_v33, %v192_v31  ;;  %v7288_v37 = vpack.c.bf16 %v198_v35, %v194_v34  ;;  %v191_v38 = vld [vmem:[#allocation2 + $0x80] sm:$0xff]  ;;  %v308_v43 = vld [vmem:[%s8534_s0 + $0x18] sm:$0xff] }
  0x64   :  { %435 = vmatprep.mubr.f32.mxu0 %v8546_v0  ;;  %v195_v39 = vld [vmem:[#allocation2 + $0xa0] sm:$0xff]  ;;  %v193_v40 = vld [vmem:[#allocation2 + $0x90] sm:$0xff]  ;;  %548 = vmatprep.mubr.f32.mxu1 %v8546_v0  ;;  %v200_v44 = vld [vmem:[#allocation2 + $0xc8] sm:$0xff] }
  0x65   :  { %8751 = vst [vmem:[#allocation18_spill] sm:$0xff] %v7286_v36  ;;  %8752 = vst [vmem:[#allocation19_spill] sm:$0xff] %v7288_v37  ;;  %4962 = vmatpush1.bf16.msra.mxu0 %v7275_v28  ;;  %v7292_v41 = vpack.c.bf16 %v195_v39, %v191_v38  ;;  %v197_v42 = vld [vmem:[#allocation2 + $0xb0] sm:$0xff]  ;;  %4994 = vmatpush1.bf16.msra.mxu1 %v7282_v32  ;;  %v204_v46 = vld [vmem:[#allocation2 + $0xe8] sm:$0xff] }
  0x66   :  { %4755 = vmatmul.mubr.msk.f32.gmra.mrb[4].mxu0 %vm334_vm0, %v307_v30  ;;  %v7299_v45 = vpack.c.bf16 %v197_v42, %v193_v40  ;;  %v202_v47 = vld [vmem:[#allocation2 + $0xd8] sm:$0xff]  ;;  %4763 = vmatmul.mubr.msk.f32.gmra.mrb[4].mxu1 %vm334_vm0, %v307_v30  ;;  %v7303_v49 = vpack.c.bf16 %v204_v46, %v200_v44  ;;  %v199_v50 = vld [vmem:[#allocation2 + $0xc0] sm:$0xff]  ;;  %v201_v52 = vld [vmem:[#allocation2 + $0xd0] sm:$0xff] }
  0x67   :  { %8753 = vst [vmem:[#allocation20_spill] sm:$0xff] %v7292_v41  ;;  %v206_v48 = vld [vmem:[#allocation2 + $0xf8] sm:$0xff]  ;;  %4964 = vmatprep.subr.bf16.mxu0 %v7286_v36  ;;  %v203_v51 = vld [vmem:[#allocation2 + $0xe0] sm:$0xff]  ;;  %4996 = vmatprep.subr.bf16.mxu1 %v7288_v37  ;;  %v205_v54 = vld [vmem:[#allocation2 + $0xf0] sm:$0xff] }
  0x68   :  { %8754 = vst [vmem:[#allocation21_spill] sm:$0xff] %v7299_v45  ;;  %8755 = vst [vmem:[#allocation22_spill] sm:$0xff] %v7303_v49  ;;  %441 = vmatprep.mubr.f32.mxu0 %v8546_v0  ;;  %v7307_v53 = vpack.c.bf16 %v206_v48, %v202_v47  ;;  %v208_v55 = vld [vmem:[#allocation2 + $0x108] sm:$0xff]  ;;  %554 = vmatprep.mubr.f32.mxu1 %v8546_v0  ;;  %v7311_v56 = vpack.c.bf16 %v203_v51, %v199_v50  ;;  %v210_v58 = vld [vmem:[#allocation2 + $0x118] sm:$0xff] }
  0x69   :  { %4966 = vmatpush1.bf16.msra.mxu0 %v7292_v41  ;;  %v212_v57 = vld [vmem:[#allocation2 + $0x128] sm:$0xff]  ;;  %v214_v59 = vld [vmem:[#allocation2 + $0x138] sm:$0xff]  ;;  %4998 = vmatpush1.bf16.msra.mxu1 %v7299_v45  ;;  %v7315_v60 = vpack.c.bf16 %v205_v54, %v201_v52  ;;  %v207_v61 = vld [vmem:[#allocation2 + $0x100] sm:$0xff] }
  0x6a   :  { %8756 = vst [vmem:[#allocation23_spill] sm:$0xff] %v7307_v53  ;;  %8757 = vst [vmem:[#allocation24_spill] sm:$0xff] %v7311_v56  ;;  %4756 = vmatmul.mubr.msk.f32.gmra.mrb[6].mxu0 %vm334_vm0, %v308_v43  ;;  %v211_v62 = vld [vmem:[#allocation2 + $0x120] sm:$0xff]  ;;  %4764 = vmatmul.mubr.msk.f32.gmra.mrb[6].mxu1 %vm334_vm0, %v308_v43  ;;  %v7322_v1 = vpack.c.bf16 %v212_v57, %v208_v55  ;;  %v209_v2 = vld [vmem:[#allocation2 + $0x110] sm:$0xff]  ;;  %v7326_v4 = vpack.c.bf16 %v214_v59, %v210_v58 }
  0x6b   :  { %8758 = vst [vmem:[#allocation25_spill] sm:$0xff] %v7315_v60  ;;  %4968 = vmatprep.subr.bf16.mxu0 %v7303_v49  ;;  %v309_v63 = vld [vmem:[%s8534_s0 + $0x20] sm:$0xff]  ;;  %v213_v3 = vld [vmem:[#allocation2 + $0x130] sm:$0xff]  ;;  %5000 = vmatprep.subr.bf16.mxu1 %v7307_v53  ;;  %v216_v5 = vld [vmem:[#allocation2 + $0x148] sm:$0xff]  ;;  %v7330_v7 = vpack.c.bf16 %v211_v62, %v207_v61 }
  0x6c   :  { %8759 = vst [vmem:[#allocation26_spill] sm:$0xff] %v7322_v1  ;;  %447 = vmatprep.mubr.f32.mxu0 %v8546_v0  ;;  %8760 = vst [vmem:[#allocation27_spill] sm:$0xff] %v7326_v4  ;;  %v220_v6 = vld [vmem:[#allocation2 + $0x168] sm:$0xff]  ;;  %560 = vmatprep.mubr.f32.mxu1 %v8546_v0  ;;  %v218_v8 = vld [vmem:[#allocation2 + $0x158] sm:$0xff]  ;;  %v7334_v12 = vpack.c.bf16 %v213_v3, %v209_v2 }
  0x6d   :  { %4970 = vmatpush1.bf16.msra.mxu0 %v7311_v56  ;;  %8761 = vst [vmem:[#allocation28_spill] sm:$0xff] %v7330_v7  ;;  %v222_v9 = vld [vmem:[#allocation2 + $0x178] sm:$0xff]  ;;  %5002 = vmatpush1.bf16.msra.mxu1 %v7315_v60  ;;  %v215_v13 = vld [vmem:[#allocation2 + $0x140] sm:$0xff]  ;;  %v310_v16 = vld [vmem:[%s8534_s0 + $0x28] sm:$0xff]  ;;  %v7341_v17 = vpack.c.bf16 %v220_v6, %v216_v5 }
  0x6e   :  { %4757 = vmatmul.mubr.msk.f32.gmra.mrb[8].mxu0 %vm334_vm0, %v309_v63  ;;  %8762 = vst [vmem:[#allocation29_spill] sm:$0xff] %v7334_v12  ;;  %v219_v14 = vld [vmem:[#allocation2 + $0x160] sm:$0xff]  ;;  %4765 = vmatmul.mubr.msk.f32.gmra.mrb[8].mxu1 %vm334_vm0, %v309_v63  ;;  %v217_v18 = vld [vmem:[#allocation2 + $0x150] sm:$0xff]  ;;  %v7345_v21 = vpack.c.bf16 %v222_v9, %v218_v8  ;;  %v224_v22 = vld [vmem:[#allocation2 + $0x188] sm:$0xff] }
  0x6f   :  { %4972 = vmatprep.subr.bf16.mxu0 %v7322_v1  ;;  %8763 = vst [vmem:[#allocation30_spill] sm:$0xff] %v7341_v17  ;;  %v221_v20 = vld [vmem:[#allocation2 + $0x170] sm:$0xff]  ;;  %5004 = vmatprep.subr.bf16.mxu1 %v7326_v4  ;;  %v228_v25 = vld [vmem:[#allocation2 + $0x1a8] sm:$0xff]  ;;  %v7349_v26 = vpack.c.bf16 %v219_v14, %v215_v13  ;;  %v226_v27 = vld [vmem:[#allocation2 + $0x198] sm:$0xff] }
  0x70   :  { %453 = vmatprep.mubr.f32.mxu0 %v8546_v0  ;;  %8764 = vst [vmem:[#allocation31_spill] sm:$0xff] %v7345_v21  ;;  %566 = vmatprep.mubr.f32.mxu1 %v8546_v0  ;;  %v230_v29 = vld [vmem:[#allocation2 + $0x1b8] sm:$0xff]  ;;  %v7353_v30 = vpack.c.bf16 %v221_v20, %v217_v18  ;;  %v223_v31 = vld [vmem:[#allocation2 + $0x180] sm:$0xff]  ;;  %v311_v34 = vld [vmem:[%s8534_s0 + $0x30] sm:$0xff]  ;;  %v7360_v35 = vpack.c.bf16 %v228_v25, %v224_v22 }
  0x71   :  { %4974 = vmatpush1.bf16.msra.mxu0 %v7330_v7  ;;  %8765 = vst [vmem:[#allocation32_spill] sm:$0xff] %v7349_v26  ;;  %5006 = vmatpush1.bf16.msra.mxu1 %v7334_v12  ;;  %v227_v33 = vld [vmem:[#allocation2 + $0x1a0] sm:$0xff]  ;;  %v225_v38 = vld [vmem:[#allocation2 + $0x190] sm:$0xff]  ;;  %v7364_v40 = vpack.c.bf16 %v230_v29, %v226_v27  ;;  %v232_v42 = vld [vmem:[#allocation2 + $0x1c8] sm:$0xff] }
  0x72   :  { %4758 = vmatmul.mubr.msk.f32.gmra.mrb[10].mxu0 %vm334_vm0, %v310_v16  ;;  %8766 = vst [vmem:[#allocation33_spill] sm:$0xff] %v7353_v30  ;;  %4766 = vmatmul.mubr.msk.f32.gmra.mrb[10].mxu1 %vm334_vm0, %v310_v16  ;;  %8767 = vst [vmem:[#allocation34_spill] sm:$0xff] %v7360_v35  ;;  %v229_v39 = vld [vmem:[#allocation2 + $0x1b0] sm:$0xff]  ;;  %v236_v43 = vld [vmem:[#allocation2 + $0x1e8] sm:$0xff]  ;;  %v7368_v44 = vpack.c.bf16 %v227_v33, %v223_v31 }
  0x73   :  { %4976 = vmatprep.subr.bf16.mxu0 %v7341_v17  ;;  %5008 = vmatprep.subr.bf16.mxu1 %v7345_v21  ;;  %8768 = vst [vmem:[#allocation35_spill] sm:$0xff] %v7364_v40  ;;  %v312_v46 = vld [vmem:[%s8534_s0 + $0x38] sm:$0xff]  ;;  %v7375_v50 = vpack.c.bf16 %v229_v39, %v225_v38  ;;  %v231_v51 = vld [vmem:[#allocation2 + $0x1c0] sm:$0xff]  ;;  %v233_v54 = vld [vmem:[#allocation2 + $0x1d0] sm:$0xff]  ;;  %v7379_v55 = vpack.c.bf16 %v236_v43, %v232_v42 }
  0x74   :  { %459 = vmatprep.mubr.f32.mxu0 %v8546_v0  ;;  %572 = vmatprep.mubr.f32.mxu1 %v8546_v0  ;;  %8769 = vst [vmem:[#allocation36_spill] sm:$0xff] %v7368_v44  ;;  %v234_v47 = vld [vmem:[#allocation2 + $0x1d8] sm:$0xff]  ;;  %v235_v52 = vld [vmem:[#allocation2 + $0x1e0] sm:$0xff]  ;;  %v237_v57 = vld [vmem:[#allocation2 + $0x1f0] sm:$0xff] }
  0x75   :  { %4978 = vmatpush1.bf16.msra.mxu0 %v7349_v26  ;;  %v238_v48 = vld [vmem:[#allocation2 + $0x1f8] sm:$0xff]  ;;  %5010 = vmatpush1.bf16.msra.mxu1 %v7353_v30  ;;  %8770 = vst [vmem:[#allocation37_spill] sm:$0xff] %v7375_v50  ;;  %8771 = vst [vmem:[#allocation38_spill] sm:$0xff] %v7379_v55  ;;  %v240_v58 = vld [vmem:[#allocation7 + $0x8] sm:$0xff]  ;;  %v7387_v2 = vpack.c.bf16 %v235_v52, %v231_v51  ;;  %v7391_v3 = vpack.c.bf16 %v237_v57, %v233_v54 }
  0x76   :  { %4759 = vmatmul.mubr.msk.f32.gmra.mrb[12].mxu0 %vm334_vm0, %v311_v34  ;;  %4767 = vmatmul.mubr.msk.f32.gmra.mrb[12].mxu1 %vm334_vm0, %v311_v34  ;;  %v244_v59 = vld [vmem:[#allocation7 + $0x28] sm:$0xff]  ;;  %v7383_v61 = vpack.c.bf16 %v238_v48, %v234_v47  ;;  %v242_v62 = vld [vmem:[#allocation7 + $0x18] sm:$0xff]  ;;  %v239_v6 = vld [vmem:[#allocation7] sm:$0xff] }
  0x77   :  { %4980 = vmatprep.subr.bf16.mxu0 %v7360_v35  ;;  %5012 = vmatprep.subr.bf16.mxu1 %v7364_v40  ;;  %v246_v63 = vld [vmem:[#allocation7 + $0x38] sm:$0xff]  ;;  %8773 = vst [vmem:[#allocation40_spill] sm:$0xff] %v7387_v2  ;;  %8774 = vst [vmem:[#allocation41_spill] sm:$0xff] %v7391_v3  ;;  %v7393_v5 = vpack.c.bf16 %v244_v59, %v240_v58  ;;  %v243_v8 = vld [vmem:[#allocation7 + $0x20] sm:$0xff] }
  0x78   :  { %465 = vmatprep.mubr.f32.mxu0 %v8546_v0  ;;  %8772 = vst [vmem:[#allocation39_spill] sm:$0xff] %v7383_v61  ;;  %578 = vmatprep.mubr.f32.mxu1 %v8546_v0  ;;  %v241_v9 = vld [vmem:[#allocation7 + $0x10] sm:$0xff]  ;;  %v7397_v13 = vpack.c.bf16 %v246_v63, %v242_v62  ;;  %v248_v16 = vld [vmem:[#allocation7 + $0x48] sm:$0xff]  ;;  %v250_v20 = vld [vmem:[#allocation7 + $0x58] sm:$0xff]  ;;  %v7403_v25 = vpack.c.bf16 %v243_v8, %v239_v6 }
  0x79   :  { %4982 = vmatpush1.bf16.msra.mxu0 %v7368_v44  ;;  %5014 = vmatpush1.bf16.msra.mxu1 %v7375_v50  ;;  %8775 = vst [vmem:[#allocation42_spill] sm:$0xff] %v7393_v5  ;;  %v245_v14 = vld [vmem:[#allocation7 + $0x30] sm:$0xff]  ;;  %v252_v18 = vld [vmem:[#allocation7 + $0x68] sm:$0xff]  ;;  %v254_v22 = vld [vmem:[#allocation7 + $0x78] sm:$0xff] }
  0x7a   :  { %4760 = vmatmul.mubr.msk.f32.gmra.mrb[14].mxu0 %vm334_vm0, %v312_v46  ;;  %4768 = vmatmul.mubr.msk.f32.gmra.mrb[14].mxu1 %vm334_vm0, %v312_v46  ;;  %8776 = vst [vmem:[#allocation43_spill] sm:$0xff] %v7397_v13  ;;  %8777 = vst [vmem:[#allocation44_spill] sm:$0xff] %v7403_v25  ;;  %v7407_v27 = vpack.c.bf16 %v245_v14, %v241_v9  ;;  %v7409_v29 = vpack.c.bf16 %v252_v18, %v248_v16  ;;  %v247_v31 = vld [vmem:[#allocation7 + $0x40] sm:$0xff]  ;;  %v249_v34 = vld [vmem:[#allocation7 + $0x50] sm:$0xff] }
  0x7b   :  { %4984 = vmatprep.subr.bf16.mxu0 %v7379_v55  ;;  %5016 = vmatprep.subr.bf16.mxu1 %v7383_v61  ;;  %v251_v33 = vld [vmem:[#allocation7 + $0x60] sm:$0xff]  ;;  %v7412_v38 = vpack.c.bf16 %v254_v22, %v250_v20  ;;  %v253_v39 = vld [vmem:[#allocation7 + $0x70] sm:$0xff]  ;;  %v256_v42 = vld [vmem:[#allocation7 + $0x88] sm:$0xff] }
  0x7c   :  { %649 = vmatprep.mubr.f32.mxu0 %v8546_v0  ;;  %720 = vmatprep.mubr.f32.mxu1 %v8546_v0  ;;  %8778 = vst [vmem:[#allocation45_spill] sm:$0xff] %v7407_v27  ;;  %8779 = vst [vmem:[#allocation46_spill] sm:$0xff] %v7409_v29  ;;  %v260_v43 = vld [vmem:[#allocation7 + $0xa8] sm:$0xff]  ;;  %v258_v46 = vld [vmem:[#allocation7 + $0x98] sm:$0xff]  ;;  %v7417_v48 = vpack.c.bf16 %v251_v33, %v247_v31  ;;  %v7421_v51 = vpack.c.bf16 %v253_v39, %v249_v34 }
  0x7d   :  { %4986 = vmatpush1.bf16.msra.mxu0 %v7387_v2  ;;  %5018 = vmatpush1.bf16.msra.mxu1 %v7391_v3  ;;  %8780 = vst [vmem:[#allocation47_spill] sm:$0xff] %v7412_v38  ;;  %v262_v47 = vld [vmem:[#allocation7 + $0xb8] sm:$0xff]  ;;  %v7423_v52 = vpack.c.bf16 %v260_v43, %v256_v42  ;;  %v255_v54 = vld [vmem:[#allocation7 + $0x80] sm:$0xff]  ;;  %v257_v58 = vld [vmem:[#allocation7 + $0x90] sm:$0xff] }
  0x7e   :  { %5020 = vmatprep.subr.bf16.mxu0 %v7393_v5  ;;  %5052 = vmatprep.subr.bf16.mxu1 %v7397_v13  ;;  %8781 = vst [vmem:[#allocation48_spill] sm:$0xff] %v7417_v48  ;;  %8782 = vst [vmem:[#allocation49_spill] sm:$0xff] %v7421_v51  ;;  %v259_v57 = vld [vmem:[#allocation7 + $0xa0] sm:$0xff]  ;;  %v7426_v59 = vpack.c.bf16 %v262_v47, %v258_v46  ;;  %v261_v62 = vld [vmem:[#allocation7 + $0xb0] sm:$0xff] }
  0x7f   :  { %8783 = vst [vmem:[#allocation50_spill] sm:$0xff] %v7423_v52  ;;  %v264_v63 = vld [vmem:[#allocation7 + $0xc8] sm:$0xff]  ;;  %v266_v8 = vld [vmem:[#allocation7 + $0xd8] sm:$0xff]  ;;  %v7431_v14 = vpack.c.bf16 %v259_v57, %v255_v54  ;;  %v7435_v16 = vpack.c.bf16 %v261_v62, %v257_v58  ;;  %v263_v20 = vld [vmem:[#allocation7 + $0xc0] sm:$0xff] }
  0x80   :  { %650 = vmatmul.mubr.f32.vlgmr.msra.gmra.mrb[0].mxu0 %v8546_v0  ;;  %721 = vmatmul.mubr.f32.vlgmr.msra.gmra.mrb[0].mxu1 %v8546_v0  ;;  %8784 = vst [vmem:[#allocation51_spill] sm:$0xff] %v7426_v59  ;;  %v268_v6 = vld [vmem:[#allocation7 + $0xe8] sm:$0xff]  ;;  %v270_v9 = vld [vmem:[#allocation7 + $0xf8] sm:$0xff]  ;;  %v267_v22 = vld [vmem:[#allocation7 + $0xe0] sm:$0xff] }
  0x81   :  { %5022 = vmatpush1.bf16.msra.mxu0 %v7403_v25  ;;  %5054 = vmatpush1.bf16.msra.mxu1 %v7407_v27  ;;  %8785 = vst [vmem:[#allocation52_spill] sm:$0xff] %v7431_v14  ;;  %8786 = vst [vmem:[#allocation53_spill] sm:$0xff] %v7435_v16  ;;  %v7437_v18 = vpack.c.bf16 %v268_v6, %v264_v63  ;;  %v265_v31 = vld [vmem:[#allocation7 + $0xd0] sm:$0xff]  ;;  %v7440_v33 = vpack.c.bf16 %v270_v9, %v266_v8  ;;  %v272_v39 = vld [vmem:[#allocation7 + $0x108] sm:$0xff] }
  0x82   :  { %5024 = vmatprep.subr.bf16.mxu0 %v7409_v29  ;;  %5056 = vmatprep.subr.bf16.mxu1 %v7412_v38  ;;  %v269_v34 = vld [vmem:[#allocation7 + $0xf0] sm:$0xff]  ;;  %v276_v42 = vld [vmem:[#allocation7 + $0x128] sm:$0xff]  ;;  %v274_v43 = vld [vmem:[#allocation7 + $0x118] sm:$0xff]  ;;  %v7443_v47 = vpack.c.bf16 %v267_v22, %v263_v20 }
  0x83   :  { %819 = vmatprep.mubr.f32.mxu0 %v8546_v0  ;;  %890 = vmatprep.mubr.f32.mxu1 %v8546_v0  ;;  %8787 = vst [vmem:[#allocation54_spill] sm:$0xff] %v7437_v18  ;;  %8788 = vst [vmem:[#allocation55_spill] sm:$0xff] %v7440_v33  ;;  %v278_v46 = vld [vmem:[#allocation7 + $0x138] sm:$0xff]  ;;  %v7447_v54 = vpack.c.bf16 %v269_v34, %v265_v31  ;;  %v7449_v57 = vpack.c.bf16 %v276_v42, %v272_v39  ;;  %v271_v58 = vld [vmem:[#allocation7 + $0x100] sm:$0xff] }
  0x84   :  { %8789 = vst [vmem:[#allocation56_spill] sm:$0xff] %v7443_v47  ;;  %v275_v62 = vld [vmem:[#allocation7 + $0x120] sm:$0xff]  ;;  %v7452_v63 = vpack.c.bf16 %v278_v46, %v274_v43  ;;  %v273_v6 = vld [vmem:[#allocation7 + $0x110] sm:$0xff]  ;;  %v280_v22 = vld [vmem:[#allocation7 + $0x148] sm:$0xff] }
  0x85   :  { %5026 = vmatpush1.bf16.msra.mxu0 %v7417_v48  ;;  %5058 = vmatpush1.bf16.msra.mxu1 %v7421_v51  ;;  %8790 = vst [vmem:[#allocation57_spill] sm:$0xff] %v7447_v54  ;;  %8791 = vst [vmem:[#allocation58_spill] sm:$0xff] %v7449_v57  ;;  %v277_v8 = vld [vmem:[#allocation7 + $0x130] sm:$0xff]  ;;  %v7455_v9 = vpack.c.bf16 %v275_v62, %v271_v58  ;;  %v284_v31 = vld [vmem:[#allocation7 + $0x168] sm:$0xff] }
  0x86   :  { %5028 = vmatprep.subr.bf16.mxu0 %v7423_v52  ;;  %5060 = vmatprep.subr.bf16.mxu1 %v7426_v59  ;;  %8792 = vst [vmem:[#allocation59_spill] sm:$0xff] %v7452_v63  ;;  %v7459_v20 = vpack.c.bf16 %v277_v8, %v273_v6  ;;  %v282_v34 = vld [vmem:[#allocation7 + $0x158] sm:$0xff]  ;;  %v7464_v39 = vpack.c.bf16 %v284_v31, %v280_v22  ;;  %v279_v43 = vld [vmem:[#allocation7 + $0x140] sm:$0xff]  ;;  %v281_v6 = vld [vmem:[#allocation7 + $0x150] sm:$0xff] }
  0x87   :  { %8793 = vst [vmem:[#allocation60_spill] sm:$0xff] %v7455_v9  ;;  %v286_v42 = vld [vmem:[#allocation7 + $0x178] sm:$0xff]  ;;  %v283_v46 = vld [vmem:[#allocation7 + $0x160] sm:$0xff]  ;;  %v285_v8 = vld [vmem:[#allocation7 + $0x170] sm:$0xff] }
  0x88   :  { %8794 = vst [vmem:[#allocation61_spill] sm:$0xff] %v7459_v20  ;;  %8795 = vst [vmem:[#allocation62_spill] sm:$0xff] %v7464_v39  ;;  %v7466_v58 = vpack.c.bf16 %v286_v42, %v282_v34  ;;  %v7468_v62 = vpack.c.bf16 %v283_v46, %v279_v43  ;;  %v7471_v0 = vpack.c.bf16 %v285_v8, %v281_v6  ;;  %v292_v22 = vld [vmem:[#allocation7 + $0x1a8] sm:$0xff]  ;;  %v290_v31 = vld [vmem:[#allocation7 + $0x198] sm:$0xff] }
  0x89   :  { %5030 = vmatpush1.bf16.msra.mxu0 %v7431_v14  ;;  %5062 = vmatpush1.bf16.msra.mxu1 %v7435_v16  ;;  %v294_v34 = vld [vmem:[#allocation7 + $0x1b8] sm:$0xff]  ;;  %v287_v42 = vld [vmem:[#allocation7 + $0x180] sm:$0xff]  ;;  %v289_v6 = vld [vmem:[#allocation7 + $0x190] sm:$0xff] }
  0x8a   :  { %5032 = vmatprep.subr.bf16.mxu0 %v7437_v18  ;;  %5064 = vmatprep.subr.bf16.mxu1 %v7440_v33  ;;  %8796 = vst [vmem:[#allocation63_spill] sm:$0xff] %v7466_v58  ;;  %8797 = vst [vmem:[#allocation64_spill] sm:$0xff] %v7468_v62  ;;  %v291_v43 = vld [vmem:[#allocation7 + $0x1a0] sm:$0xff]  ;;  %v7478_v46 = vpack.c.bf16 %v294_v34, %v290_v31  ;;  %v293_v8 = vld [vmem:[#allocation7 + $0x1b0] sm:$0xff] }
  0x8b   :  { %8798 = vst [vmem:[#allocation65_spill] sm:$0xff] %v7471_v0  ;;  %v302_v31 = vld [vmem:[#allocation7 + $0x1f8] sm:$0xff]  ;;  %v295_v34 = vld [vmem:[#allocation7 + $0x1c0] sm:$0xff] }
  0x8c   :  { %8800 = vst [vmem:[#allocation67_spill] sm:$0xff] %v7478_v46 }
  0x8d   :  { %5034 = vmatpush1.bf16.msra.mxu0 %v7443_v47  ;;  %5066 = vmatpush1.bf16.msra.mxu1 %v7447_v54  ;;  %v164_v54 = vld [vmem:[#allocation5 + $0x1a8] sm:$0xff]  ;;  %v166_v47 = vld [vmem:[#allocation5 + $0x1b8] sm:$0xff] }
  0x8e   :  { %5036 = vmatprep.subr.bf16.mxu0 %v7449_v57  ;;  %5068 = vmatprep.subr.bf16.mxu1 %v7452_v63  ;;  %v7480_v63 = vpack.c.bf16 %v291_v43, %v287_v42  ;;  %v299_v42 = vld [vmem:[#allocation7 + $0x1e0] sm:$0xff] }
  0x90   :  { %8801 = vst [vmem:[#allocation68_spill] sm:$0xff] %v7480_v63 }
  0x91   :  { %5038 = vmatpush1.bf16.msra.mxu0 %v7455_v9  ;;  %5070 = vmatpush1.bf16.msra.mxu1 %v7459_v20  ;;  %v288_v20 = vld [vmem:[#allocation7 + $0x188] sm:$0xff] }
  0x92   :  { %5040 = vmatprep.subr.bf16.mxu0 %v7464_v39  ;;  %5072 = vmatprep.subr.bf16.mxu1 %v7466_v58  ;;  %v7476_v9 = vpack.c.bf16 %v292_v22, %v288_v20  ;;  %v7483_v58 = vpack.c.bf16 %v293_v8, %v289_v6  ;;  %v300_v20 = vld [vmem:[#allocation7 + $0x1e8] sm:$0xff]  ;;  %v298_v22 = vld [vmem:[#allocation7 + $0x1d8] sm:$0xff]  ;;  %v7492_v39 = vpack.c.bf16 %v299_v42, %v295_v34  ;;  %v297_v6 = vld [vmem:[#allocation7 + $0x1d0] sm:$0xff] }
  0x93   :  { %v7490_v43 = vpack.c.bf16 %v302_v31, %v298_v22  ;;  %v301_v8 = vld [vmem:[#allocation7 + $0x1f0] sm:$0xff]  ;;  %v118_v22 = vld [vmem:[#allocation5 + $0x38] sm:$0xff]  ;;  %v111_v31 = vld [vmem:[#allocation5] sm:$0xff] }
  0x94   :  { %8799 = vst [vmem:[#allocation66_spill] sm:$0xff] %v7476_v9  ;;  %8802 = vst [vmem:[#allocation69_spill] sm:$0xff] %v7483_v58  ;;  %v115_v34 = vld [vmem:[#allocation5 + $0x20] sm:$0xff] }
  0x95   :  { %5042 = vmatpush1.bf16.msra.mxu0 %v7468_v62  ;;  %5074 = vmatpush1.bf16.msra.mxu1 %v7471_v0  ;;  %v296_v0 = vld [vmem:[#allocation7 + $0x1c8] sm:$0xff]  ;;  %8804 = vst [vmem:[#allocation71_spill] sm:$0xff] %v7490_v43  ;;  %8805 = vst [vmem:[#allocation72_spill] sm:$0xff] %v7492_v39 }
  0x96   :  { %5044 = vmatprep.subr.bf16.mxu0 %v7476_v9  ;;  %5076 = vmatprep.subr.bf16.mxu1 %v7478_v46  ;;  %v7488_v62 = vpack.c.bf16 %v300_v20, %v296_v0  ;;  %v7495_v46 = vpack.c.bf16 %v301_v8, %v297_v6  ;;  %v116_v0 = vld [vmem:[#allocation5 + $0x28] sm:$0xff]  ;;  %v114_v20 = vld [vmem:[#allocation5 + $0x18] sm:$0xff]  ;;  %v7504_v9 = vpack.c.bf16 %v115_v34, %v111_v31  ;;  %v113_v6 = vld [vmem:[#allocation5 + $0x10] sm:$0xff] }
  0x97   :  { %v7502_v42 = vpack.c.bf16 %v118_v22, %v114_v20  ;;  %v117_v8 = vld [vmem:[#allocation5 + $0x30] sm:$0xff]  ;;  %v126_v22 = vld [vmem:[#allocation5 + $0x78] sm:$0xff]  ;;  %v119_v31 = vld [vmem:[#allocation5 + $0x40] sm:$0xff] }
  0x98   :  { %8803 = vst [vmem:[#allocation70_spill] sm:$0xff] %v7488_v62  ;;  %8806 = vst [vmem:[#allocation73_spill] sm:$0xff] %v7495_v46  ;;  %v123_v34 = vld [vmem:[#allocation5 + $0x60] sm:$0xff] }
  0x99   :  { %5046 = vmatpush1.bf16.msra.mxu0 %v7480_v63  ;;  %5078 = vmatpush1.bf16.msra.mxu1 %v7483_v58  ;;  %v112_v58 = vld [vmem:[#allocation5 + $0x8] sm:$0xff]  ;;  %8808 = vst [vmem:[#allocation75_spill] sm:$0xff] %v7502_v42  ;;  %8809 = vst [vmem:[#allocation76_spill] sm:$0xff] %v7504_v9 }
  0x9a   :  { %5048 = vmatprep.subr.bf16.mxu0 %v7488_v62  ;;  %5080 = vmatprep.subr.bf16.mxu1 %v7490_v43  ;;  %v7500_v63 = vpack.c.bf16 %v116_v0, %v112_v58  ;;  %v8810_v43 = vmov 0.0   ;;  %v120_v58 = vld [vmem:[#allocation5 + $0x48] sm:$0xff] }
  0x9b   :  { %v124_v0 = vld [vmem:[#allocation5 + $0x68] sm:$0xff] }
  0x9c   :  { %8807 = vst [vmem:[#allocation74_spill] sm:$0xff] %v7500_v63  ;;  %v7514_v20 = vpack.c.bf16 %v124_v0, %v120_v58  ;;  %v128_v58 = vld [vmem:[#allocation5 + $0x88] sm:$0xff] }
  0x9d   :  { %5050 = vmatpush1.bf16.msra.mxu0 %v7492_v39  ;;  %5082 = vmatpush1.bf16.msra.mxu1 %v7495_v46  ;;  %v7508_v39 = vpack.c.bf16 %v117_v8, %v113_v6  ;;  %v122_v46 = vld [vmem:[#allocation5 + $0x58] sm:$0xff]  ;;  %v7518_v6 = vpack.c.bf16 %v123_v34, %v119_v31  ;;  %v121_v8 = vld [vmem:[#allocation5 + $0x50] sm:$0xff]  ;;  %v132_v0 = vld [vmem:[#allocation5 + $0xa8] sm:$0xff] }
  0x9e   :  { %5084 = vmatprep.subr.bf16.mxu0 %v7500_v63  ;;  %5116 = vmatprep.subr.bf16.mxu1 %v7502_v42  ;;  %8812 = vst [vmem:[#allocation78_spill] sm:$0xff] %v7514_v20  ;;  %v7516_v63 = vpack.c.bf16 %v126_v22, %v122_v46  ;;  %v125_v42 = vld [vmem:[#allocation5 + $0x70] sm:$0xff]  ;;  %v7528_v46 = vpack.c.bf16 %v132_v0, %v128_v58  ;;  %v134_v22 = vld [vmem:[#allocation5 + $0xb8] sm:$0xff]  ;;  %v127_v31 = vld [vmem:[#allocation5 + $0x80] sm:$0xff] }
  0x9f   :  { %8811 = vst [vmem:[#allocation77_spill] sm:$0xff] %v7508_v39  ;;  %8814 = vst [vmem:[#allocation80_spill] sm:$0xff] %v7518_v6  ;;  %v131_v34 = vld [vmem:[#allocation5 + $0xa0] sm:$0xff] }
  0xa0   :  { %820 = vmatmul.mubr.f32.vlgmr.msra.gmra.mrb[16].mxu0 %v8810_v43  ;;  %891 = vmatmul.mubr.f32.vlgmr.msra.gmra.mrb[16].mxu1 %v8810_v43  ;;  %8813 = vst [vmem:[#allocation79_spill] sm:$0xff] %v7516_v63  ;;  %8816 = vst [vmem:[#allocation82_spill] sm:$0xff] %v7528_v46  ;;  %v7532_v57 = vpack.c.bf16 %v131_v34, %v127_v31  ;;  %v135_v0 = vld [vmem:[#allocation5 + $0xc0] sm:$0xff] }
  0xa1   :  { %5086 = vmatpush1.bf16.msra.mxu0 %v7504_v9  ;;  %5118 = vmatpush1.bf16.msra.mxu1 %v7508_v39  ;;  %v7523_v9 = vpack.c.bf16 %v125_v42, %v121_v8  ;;  %v130_v39 = vld [vmem:[#allocation5 + $0x98] sm:$0xff]  ;;  %v129_v42 = vld [vmem:[#allocation5 + $0x90] sm:$0xff] }
  0xa2   :  { %961 = vmatprep.mubr.f32.mxu0 %v8810_v43  ;;  %1032 = vmatprep.mubr.f32.mxu1 %v8810_v43  ;;  %v7530_v62 = vpack.c.bf16 %v134_v22, %v130_v39  ;;  %8818 = vst [vmem:[#allocation84_spill] sm:$0xff] %v7532_v57  ;;  %v133_v8 = vld [vmem:[#allocation5 + $0xb0] sm:$0xff]  ;;  %v142_v39 = vld [vmem:[#allocation5 + $0xf8] sm:$0xff]  ;;  %v139_v22 = vld [vmem:[#allocation5 + $0xe0] sm:$0xff] }
  0xa3   :  { %5088 = vmatprep.subr.bf16.mxu0 %v7514_v20  ;;  %8815 = vst [vmem:[#allocation81_spill] sm:$0xff] %v7523_v9  ;;  %5120 = vmatprep.subr.bf16.mxu1 %v7516_v63  ;;  %v7535_v63 = vpack.c.bf16 %v133_v8, %v129_v42  ;;  %v140_v20 = vld [vmem:[#allocation5 + $0xe8] sm:$0xff]  ;;  %v7544_v34 = vpack.c.bf16 %v139_v22, %v135_v0  ;;  %v137_v42 = vld [vmem:[#allocation5 + $0xd0] sm:$0xff] }
  0xa4   :  { %8817 = vst [vmem:[#allocation83_spill] sm:$0xff] %v7530_v62  ;;  %v141_v8 = vld [vmem:[#allocation5 + $0xf0] sm:$0xff] }
  0xa5   :  { %5090 = vmatpush1.bf16.msra.mxu0 %v7518_v6  ;;  %5122 = vmatpush1.bf16.msra.mxu1 %v7523_v9  ;;  %8819 = vst [vmem:[#allocation85_spill] sm:$0xff] %v7535_v63  ;;  %v136_v6 = vld [vmem:[#allocation5 + $0xc8] sm:$0xff]  ;;  %v138_v9 = vld [vmem:[#allocation5 + $0xd8] sm:$0xff]  ;;  %8822 = vst [vmem:[#allocation88_spill] sm:$0xff] %v7544_v34 }
  0xa6   :  { %5092 = vmatprep.subr.bf16.mxu0 %v7528_v46  ;;  %5124 = vmatprep.subr.bf16.mxu1 %v7530_v62  ;;  %v7540_v58 = vpack.c.bf16 %v140_v20, %v136_v6  ;;  %v7542_v31 = vpack.c.bf16 %v142_v39, %v138_v9  ;;  %v7547_v62 = vpack.c.bf16 %v141_v8, %v137_v42  ;;  %v148_v46 = vld [vmem:[#allocation5 + $0x128] sm:$0xff]  ;;  %v150_v9 = vld [vmem:[#allocation5 + $0x138] sm:$0xff]  ;;  %v143_v6 = vld [vmem:[#allocation5 + $0x100] sm:$0xff] }
  0xa7   :  { %v147_v39 = vld [vmem:[#allocation5 + $0x120] sm:$0xff]  ;;  %v145_v42 = vld [vmem:[#allocation5 + $0x110] sm:$0xff] }
  0xa8   :  { %8820 = vst [vmem:[#allocation86_spill] sm:$0xff] %v7540_v58  ;;  %8821 = vst [vmem:[#allocation87_spill] sm:$0xff] %v7542_v31  ;;  %v7556_v22 = vpack.c.bf16 %v147_v39, %v143_v6  ;;  %v149_v8 = vld [vmem:[#allocation5 + $0x130] sm:$0xff] }
  0xa9   :  { %5094 = vmatpush1.bf16.msra.mxu0 %v7532_v57  ;;  %5126 = vmatpush1.bf16.msra.mxu1 %v7535_v63  ;;  %8823 = vst [vmem:[#allocation89_spill] sm:$0xff] %v7547_v62  ;;  %v144_v57 = vld [vmem:[#allocation5 + $0x108] sm:$0xff]  ;;  %v146_v63 = vld [vmem:[#allocation5 + $0x118] sm:$0xff] }
  0xaa   :  { %5096 = vmatprep.subr.bf16.mxu0 %v7540_v58  ;;  %5128 = vmatprep.subr.bf16.mxu1 %v7542_v31  ;;  %v7552_v20 = vpack.c.bf16 %v148_v46, %v144_v57  ;;  %v7554_v0 = vpack.c.bf16 %v150_v9, %v146_v63  ;;  %8826 = vst [vmem:[#allocation92_spill] sm:$0xff] %v7556_v22  ;;  %v156_v58 = vld [vmem:[#allocation5 + $0x168] sm:$0xff]  ;;  %v158_v63 = vld [vmem:[#allocation5 + $0x178] sm:$0xff]  ;;  %v151_v46 = vld [vmem:[#allocation5 + $0x140] sm:$0xff] }
  0xab   :  { %v7559_v31 = vpack.c.bf16 %v149_v8, %v145_v42  ;;  %v155_v9 = vld [vmem:[#allocation5 + $0x160] sm:$0xff]  ;;  %v153_v42 = vld [vmem:[#allocation5 + $0x150] sm:$0xff] }
  0xac   :  { %8824 = vst [vmem:[#allocation90_spill] sm:$0xff] %v7552_v20  ;;  %8825 = vst [vmem:[#allocation91_spill] sm:$0xff] %v7554_v0  ;;  %v7568_v39 = vpack.c.bf16 %v155_v9, %v151_v46  ;;  %v157_v8 = vld [vmem:[#allocation5 + $0x170] sm:$0xff] }
  0xad   :  { %5098 = vmatpush1.bf16.msra.mxu0 %v7544_v34  ;;  %5130 = vmatpush1.bf16.msra.mxu1 %v7547_v62  ;;  %8827 = vst [vmem:[#allocation93_spill] sm:$0xff] %v7559_v31  ;;  %v152_v34 = vld [vmem:[#allocation5 + $0x148] sm:$0xff]  ;;  %v154_v62 = vld [vmem:[#allocation5 + $0x158] sm:$0xff]  ;;  %v161_v46 = vld [vmem:[#allocation5 + $0x190] sm:$0xff] }
  0xae   :  { %5100 = vmatprep.subr.bf16.mxu0 %v7552_v20  ;;  %5132 = vmatprep.subr.bf16.mxu1 %v7554_v0  ;;  %v7564_v57 = vpack.c.bf16 %v156_v58, %v152_v34  ;;  %v7566_v6 = vpack.c.bf16 %v158_v63, %v154_v62  ;;  %8830 = vst [vmem:[#allocation96_spill] sm:$0xff] %v7568_v39  ;;  %v160_v20 = vld [vmem:[#allocation5 + $0x188] sm:$0xff]  ;;  %v159_v62 = vld [vmem:[#allocation5 + $0x180] sm:$0xff] }
  0xaf   :  { %v7571_v0 = vpack.c.bf16 %v157_v8, %v153_v42  ;;  %v7574_v58 = vpack.c.bf16 %v164_v54, %v160_v20  ;;  %v163_v63 = vld [vmem:[#allocation5 + $0x1a0] sm:$0xff]  ;;  %v165_v42 = vld [vmem:[#allocation5 + $0x1b0] sm:$0xff]  ;;  %v168_v8 = vld [vmem:[#allocation5 + $0x1c8] sm:$0xff] }
  0xb0   :  { %8828 = vst [vmem:[#allocation94_spill] sm:$0xff] %v7564_v57  ;;  %8829 = vst [vmem:[#allocation95_spill] sm:$0xff] %v7566_v6  ;;  %v7580_v9 = vpack.c.bf16 %v163_v63, %v159_v62  ;;  %v7584_v54 = vpack.c.bf16 %v165_v42, %v161_v46  ;;  %v170_v20 = vld [vmem:[#allocation5 + $0x1d8] sm:$0xff]  ;;  %v173_v62 = vld [vmem:[#allocation5 + $0x1f0] sm:$0xff] }
  0xb1   :  { %5102 = vmatpush1.bf16.msra.mxu0 %v7556_v22  ;;  %5134 = vmatpush1.bf16.msra.mxu1 %v7559_v31  ;;  %8831 = vst [vmem:[#allocation97_spill] sm:$0xff] %v7571_v0  ;;  %v162_v22 = vld [vmem:[#allocation5 + $0x198] sm:$0xff]  ;;  %8832 = vst [vmem:[#allocation98_spill] sm:$0xff] %v7574_v58 }
  0xb2   :  { %5104 = vmatprep.subr.bf16.mxu0 %v7564_v57  ;;  %5136 = vmatprep.subr.bf16.mxu1 %v7566_v6  ;;  %v7576_v34 = vpack.c.bf16 %v166_v47, %v162_v22  ;;  %8834 = vst [vmem:[#allocation100_spill] sm:$0xff] %v7580_v9  ;;  %v172_v57 = vld [vmem:[#allocation5 + $0x1e8] sm:$0xff]  ;;  %8835 = vst [vmem:[#allocation101_spill] sm:$0xff] %v7584_v54  ;;  %v174_v22 = vld [vmem:[#allocation5 + $0x1f8] sm:$0xff] }
  0xb3   :  { %v7586_v47 = vpack.c.bf16 %v172_v57, %v168_v8  ;;  %v167_v6 = vld [vmem:[#allocation5 + $0x1c0] sm:$0xff]  ;;  %v7588_v31 = vpack.c.bf16 %v174_v22, %v170_v20  ;;  %v314_v57 = vlaneseq }
  0xb4   :  { %8833 = vst [vmem:[#allocation99_spill] sm:$0xff] %v7576_v34 }
  0xb5   :  { %5106 = vmatpush1.bf16.msra.mxu0 %v7568_v39  ;;  %5138 = vmatpush1.bf16.msra.mxu1 %v7571_v0  ;;  %8836 = vst [vmem:[#allocation102_spill] sm:$0xff] %v7586_v47  ;;  %8837 = vst [vmem:[#allocation103_spill] sm:$0xff] %v7588_v31  ;;  %v171_v39 = vld [vmem:[#allocation5 + $0x1e0] sm:$0xff]  ;;  %v169_v0 = vld [vmem:[#allocation5 + $0x1d0] sm:$0xff]  ;;  %v7602_v46 = vshrl.u32 %v314_v57, 7 }
  0xb6   :  { %5108 = vmatprep.subr.bf16.mxu0 %v7574_v58  ;;  %5140 = vmatprep.subr.bf16.mxu1 %v7576_v34  ;;  %v7592_v63 = vpack.c.bf16 %v171_v39, %v167_v6  ;;  %v7594_v58 = vpack.c.bf16 %v173_v62, %v169_v0  ;;  %v303_v0 = vld [vmem:[%s8537_s3] sm:$0xf] }
  0xb7   :  { %v8644_v6 = vsub.s32 0, %v7602_v46  ;;  %v8645_v39 = vsub.s32 1, %v7602_v46  ;;  %v8652_v22 = vsub.s32 3, %v7602_v46 }
  0xb8   :  { %8838 = vst [vmem:[#allocation104_spill] sm:$0xff] %v7592_v63  ;;  %8839 = vst [vmem:[#allocation105_spill] sm:$0xff] %v7594_v58 }
  0xb9   :  { %5110 = vmatpush1.bf16.msra.mxu0 %v7580_v9  ;;  %5142 = vmatpush1.bf16.msra.mxu1 %v7584_v54  ;;  %v7611_v42 = vrot.slane %v303_v0, %v8644_v6  ;;  %v7615_v8 = vrot.slane %v303_v0, %v8645_v39  ;;  %v7622_v6 = vrot.slane %v303_v0, %v8652_v22  ;;  %v8661_v39 = vsub.s32 2, %v7602_v46 }
  0xba   :  { %5112 = vmatprep.subr.bf16.mxu0 %v7586_v47  ;;  %5144 = vmatprep.subr.bf16.mxu1 %v7588_v31 }
  0xbb   :  { %8840 = vst [vmem:[#allocation106_spill] sm:$0xff] %v7611_v42  ;;  %8841 = vst [vmem:[#allocation107_spill] sm:$0xff] %v7615_v8 }
  0xbc   :  { %8842 = vst [vmem:[#allocation108_spill] sm:$0xff] %v7622_v6 }
  0xbd   :  { %5114 = vmatpush1.bf16.msra.mxu0 %v7592_v63  ;;  %5146 = vmatpush1.bf16.msra.mxu1 %v7594_v58 }
  0xbe   :  { %5148 = vmatprep.subr.bf16.mxu0 %v7253_v10  ;;  %5180 = vmatprep.subr.bf16.mxu1 %v7255_v11 }
 0x153   :  { %v651_v20 = vpop.f32.mrb[0].mxu0  ;;  %v722_v57 = vpop.f32.mrb[0].mxu1 }
 0x154   :  { %v6555_v62 = vadd.f32 %v651_v20, %v7611_v42  ;;  %v653_v11 = vpop.f32.mrb[1].mxu0  ;;  %v724_v58 = vpop.f32.mrb[1].mxu1  ;;  %v7628_v20 = vrot.slane %v303_v0, %v8661_v39  ;;  %v8858_v39 = vld [vmem:[#allocation71_spill] sm:$0xff] }
 0x155   :  { %v6556_v10 = vadd.f32 %v653_v11, %v7615_v8  ;;  %v6572_v47 = vadd.f32 %v724_v58, %v7622_v6 }
 0x156   :  { %v4769_v63 = vmul.f32 -1.442695, %v6555_v62  ;;  %v6571_v11 = vadd.f32 %v722_v57, %v7628_v20 }
 0x157   :  { %v4770_v31 = vmul.f32 -1.442695, %v6556_v10  ;;  %v4771_v54 = vmul.f32 -1.442695, %v6572_v47 }
 0x158   :  { %6662 = vpow2.f32 %v4769_v63 }
 0x159   :  { %6664 = vpow2.f32 %v4770_v31 }
 0x15a   :  { %6666 = vpow2.f32 %v4771_v54  ;;  %v8844_v54 = vld [vmem:[#allocation57_spill] sm:$0xff] }
 0x15b   :  { %6668 = vtanh.f32 %v6571_v11  ;;  %v8849_v11 = vld [vmem:[#allocation62_spill] sm:$0xff] }
 0x162   :  { %v6663_v9 = vpop.eup %6662 }
 0x163   :  { %v6665_v62 = vpop.eup %6664  ;;  %v734_v10 = vadd.f32 1.0, %v6663_v9 }
 0x164   :  { %v740_v22 = vadd.f32 1.0, %v6665_v62  ;;  %v6667_v63 = vpop.eup %6666  ;;  %v8850_v62 = vld [vmem:[#allocation63_spill] sm:$0xff] }
 0x165   :  { %6670 = vrcp.f32 %v734_v10  ;;  %v6669_v34 = vpop.eup %6668  ;;  %v747_v6 = vadd.f32 1.0, %v6667_v63  ;;  %v8851_v10 = vld [vmem:[#allocation64_spill] sm:$0xff]  ;;  %v8852_v63 = vld [vmem:[#allocation65_spill] sm:$0xff] }
 0x166   :  { %6672 = vrcp.f32 %v740_v22  ;;  %v8848_v22 = vld [vmem:[#allocation61_spill] sm:$0xff] }
 0x167   :  { %6674 = vrcp.f32 %v747_v6  ;;  %v8845_v6 = vld [vmem:[#allocation58_spill] sm:$0xff] }
 0x16f   :  { %v6671_v31 = vpop.eup %6670 }
 0x170   :  { %v6673_v8 = vpop.eup %6672  ;;  %v751_v58 = vmul.f32 %v6671_v31, %v6669_v34  ;;  %v8843_v34 = vld [vmem:[#allocation56_spill] sm:$0xff]  ;;  %v8853_v31 = vld [vmem:[#allocation66_spill] sm:$0xff] }
 0x171   :  { %v750_v42 = vmul.f32 0.0, %v6673_v8  ;;  %v6675_v47 = vpop.eup %6674  ;;  %v8847_v8 = vld [vmem:[#allocation60_spill] sm:$0xff] }
 0x173   :  { %v7631_v0 = vadd.f32 %v751_v58, %v750_v42  ;;  %v8846_v42 = vld [vmem:[#allocation59_spill] sm:$0xff] }
 0x174   :  { %v8854_v58 = vld [vmem:[#allocation67_spill] sm:$0xff] }
 0x175   :  { %6676 = vtanh.f32 %v7631_v0 }
 0x17f   :  { %v6677_v57 = vpop.eup %6676 }
 0x180   :  { %v754_v9 = vmul.f32 %v6677_v57, %v6675_v47  ;;  %v8855_v47 = vld [vmem:[#allocation68_spill] sm:$0xff]  ;;  %v8856_v57 = vld [vmem:[#allocation69_spill] sm:$0xff] }
 0x182   :  { %962 = vmatmul.mubr.f32.vlgmr.msra.gmra.mrb[16].mxu0 %v754_v9  ;;  %1033 = vmatmul.mubr.f32.vlgmr.msra.gmra.mrb[16].mxu1 %v754_v9 }
 0x183   :  { %5150 = vmatpush1.bf16.msra.mxu0 %v7257_v15  ;;  %5182 = vmatpush1.bf16.msra.mxu1 %v7266_v19 }
 0x184   :  { %5152 = vmatprep.subr.bf16.mxu0 %v7269_v23  ;;  %5184 = vmatprep.subr.bf16.mxu1 %v7271_v24 }
 0x185   :  { %1152 = vmatprep.mubr.f32.mxu0 %v8810_v43  ;;  %1223 = vmatprep.mubr.f32.mxu1 %v8810_v43 }
 0x187   :  { %5154 = vmatpush1.bf16.msra.mxu0 %v7275_v28  ;;  %5186 = vmatpush1.bf16.msra.mxu1 %v7282_v32 }
 0x188   :  { %5156 = vmatprep.subr.bf16.mxu0 %v7286_v36  ;;  %5188 = vmatprep.subr.bf16.mxu1 %v7288_v37 }
 0x18b   :  { %5158 = vmatpush1.bf16.msra.mxu0 %v7292_v41  ;;  %5190 = vmatpush1.bf16.msra.mxu1 %v7299_v45 }
 0x18c   :  { %5160 = vmatprep.subr.bf16.mxu0 %v7303_v49  ;;  %5192 = vmatprep.subr.bf16.mxu1 %v7307_v53 }
 0x18f   :  { %5162 = vmatpush1.bf16.msra.mxu0 %v7311_v56  ;;  %5194 = vmatpush1.bf16.msra.mxu1 %v7315_v60 }
 0x190   :  { %5164 = vmatprep.subr.bf16.mxu0 %v7322_v1  ;;  %5196 = vmatprep.subr.bf16.mxu1 %v7326_v4 }
 0x193   :  { %5166 = vmatpush1.bf16.msra.mxu0 %v7330_v7  ;;  %5198 = vmatpush1.bf16.msra.mxu1 %v7334_v12 }
 0x194   :  { %5168 = vmatprep.subr.bf16.mxu0 %v7341_v17  ;;  %5200 = vmatprep.subr.bf16.mxu1 %v7345_v21 }
 0x197   :  { %5170 = vmatpush1.bf16.msra.mxu0 %v7349_v26  ;;  %5202 = vmatpush1.bf16.msra.mxu1 %v7353_v30 }
 0x198   :  { %5172 = vmatprep.subr.bf16.mxu0 %v7360_v35  ;;  %5204 = vmatprep.subr.bf16.mxu1 %v7364_v40 }
 0x19b   :  { %5174 = vmatpush1.bf16.msra.mxu0 %v7368_v44  ;;  %5206 = vmatpush1.bf16.msra.mxu1 %v7375_v50 }
 0x19c   :  { %5176 = vmatprep.subr.bf16.mxu0 %v7379_v55  ;;  %5208 = vmatprep.subr.bf16.mxu1 %v7383_v61 }
 0x19f   :  { %5178 = vmatpush1.bf16.msra.mxu0 %v7387_v2  ;;  %5210 = vmatpush1.bf16.msra.mxu1 %v7391_v3 }
 0x1a0   :  { %5212 = vmatprep.subr.bf16.mxu0 %v7393_v5  ;;  %5244 = vmatprep.subr.bf16.mxu1 %v7397_v13 }
 0x1a2   :  { %1153 = vmatmul.mubr.f32.vlgmr.msra.gmra.mrb[2].mxu0 %v754_v9  ;;  %1224 = vmatmul.mubr.f32.vlgmr.msra.gmra.mrb[2].mxu1 %v754_v9  ;;  %v8857_v9 = vld [vmem:[#allocation70_spill] sm:$0xff] }
 0x1a3   :  { %5214 = vmatpush1.bf16.msra.mxu0 %v7403_v25  ;;  %5246 = vmatpush1.bf16.msra.mxu1 %v7407_v27 }
 0x1a4   :  { %5216 = vmatprep.subr.bf16.mxu0 %v7409_v29  ;;  %5248 = vmatprep.subr.bf16.mxu1 %v7412_v38 }
 0x1a5   :  { %1322 = vmatprep.mubr.f32.mxu0 %v8810_v43  ;;  %1393 = vmatprep.mubr.f32.mxu1 %v8810_v43 }
 0x1a7   :  { %5218 = vmatpush1.bf16.msra.mxu0 %v7417_v48  ;;  %5250 = vmatpush1.bf16.msra.mxu1 %v7421_v51 }
 0x1a8   :  { %5220 = vmatprep.subr.bf16.mxu0 %v7423_v52  ;;  %5252 = vmatprep.subr.bf16.mxu1 %v7426_v59 }
 0x1ab   :  { %5222 = vmatpush1.bf16.msra.mxu0 %v7431_v14  ;;  %5254 = vmatpush1.bf16.msra.mxu1 %v7435_v16 }
 0x1ac   :  { %5224 = vmatprep.subr.bf16.mxu0 %v7437_v18  ;;  %5256 = vmatprep.subr.bf16.mxu1 %v7440_v33 }
 0x1af   :  { %5226 = vmatpush1.bf16.msra.mxu0 %v8843_v34  ;;  %5258 = vmatpush1.bf16.msra.mxu1 %v8844_v54 }
 0x1b0   :  { %5228 = vmatprep.subr.bf16.mxu0 %v8845_v6  ;;  %5260 = vmatprep.subr.bf16.mxu1 %v8846_v42  ;;  %v8866_v6 = vsub.s32 3, %v7602_v46 }
 0x1b3   :  { %5230 = vmatpush1.bf16.msra.mxu0 %v8847_v8  ;;  %5262 = vmatpush1.bf16.msra.mxu1 %v8848_v22  ;;  %v8859_v22 = vld [vmem:[#allocation72_spill] sm:$0xff] }
 0x1b4   :  { %5232 = vmatprep.subr.bf16.mxu0 %v8849_v11  ;;  %5264 = vmatprep.subr.bf16.mxu1 %v8850_v62  ;;  %v8860_v11 = vld [vmem:[#allocation73_spill] sm:$0xff]  ;;  %v8861_v62 = vld [vmem:[#allocation74_spill] sm:$0xff] }
 0x1b7   :  { %5234 = vmatpush1.bf16.msra.mxu0 %v8851_v10  ;;  %5266 = vmatpush1.bf16.msra.mxu1 %v8852_v63  ;;  %v8862_v10 = vld [vmem:[#allocation75_spill] sm:$0xff] }
 0x1b8   :  { %5236 = vmatprep.subr.bf16.mxu0 %v8853_v31  ;;  %5268 = vmatprep.subr.bf16.mxu1 %v8854_v58  ;;  %v304_v58 = vld [vmem:[%s8540_s6] sm:$0xf] }
 0x1b9   :  { %v7717_v54 = vrot.slane %v304_v58, %v8866_v6 }
 0x1bb   :  { %5238 = vmatpush1.bf16.msra.mxu0 %v8855_v47  ;;  %5270 = vmatpush1.bf16.msra.mxu1 %v8856_v57  ;;  %v8863_v47 = vsub.s32 0, %v7602_v46  ;;  %8867 = vst [vmem:[#allocation110_spill] sm:$0xff] %v7717_v54 }
 0x1bc   :  { %5240 = vmatprep.subr.bf16.mxu0 %v8857_v9  ;;  %5272 = vmatprep.subr.bf16.mxu1 %v8858_v39  ;;  %v8865_v9 = vsub.s32 1, %v7602_v46 }
 0x1bd   :  { %v7707_v31 = vrot.slane %v304_v58, %v8863_v47 }
 0x1be   :  { %v7711_v57 = vrot.slane %v304_v58, %v8865_v9  ;;  %v8868_v9 = vsub.s32 2, %v7602_v46 }
 0x1bf   :  { %5242 = vmatpush1.bf16.msra.mxu0 %v8859_v22  ;;  %5274 = vmatpush1.bf16.msra.mxu1 %v8860_v11  ;;  %8864 = vst [vmem:[#allocation109_spill] sm:$0xff] %v7707_v31 }
 0x1c0   :  { %5276 = vmatprep.subr.bf16.mxu0 %v8861_v62  ;;  %5308 = vmatprep.subr.bf16.mxu1 %v8862_v10  ;;  %v7722_v34 = vrot.slane %v304_v58, %v8868_v9 }
 0x1c2   :  { %8869 = vst [vmem:[#allocation111_spill] sm:$0xff] %v7722_v34 }
 0x255   :  { %v963_v39 = vpop.f32.mrb[16].mxu0  ;;  %v1034_v22 = vpop.f32.mrb[16].mxu1 }
 0x256   :  { %v1060_v11 = vadd.f32 %v7707_v31, %v963_v39  ;;  %v965_v63 = vpop.f32.mrb[17].mxu0  ;;  %v1036_v62 = vpop.f32.mrb[17].mxu1  ;;  %v1062_v39 = vadd.f32 %v7722_v34, %v1034_v22  ;;  %v8870_v22 = vld [vmem:[#allocation106_spill] sm:$0xff] }
 0x257   :  { %v1061_v10 = vadd.f32 %v7711_v57, %v965_v63  ;;  %v1063_v47 = vadd.f32 %v7717_v54, %v1036_v62 }
 0x258   :  { %v4772_v8 = vmul.f32 -1.442695, %v1060_v11 }
 0x259   :  { %v4773_v42 = vmul.f32 -1.442695, %v1061_v10  ;;  %v4774_v33 = vmul.f32 -1.442695, %v1063_v47 }
 0x25a   :  { %6678 = vpow2.f32 %v4772_v8 }
 0x25b   :  { %6680 = vpow2.f32 %v4773_v42 }
 0x25c   :  { %6682 = vpow2.f32 %v4774_v33 }
 0x25d   :  { %6684 = vtanh.f32 %v1062_v39 }
 0x264   :  { %v6679_v31 = vpop.eup %6678 }
 0x265   :  { %v6681_v18 = vpop.eup %6680  ;;  %v1067_v63 = vadd.f32 1.0, %v6679_v31 }
 0x266   :  { %v1073_v11 = vadd.f32 1.0, %v6681_v18  ;;  %v6683_v6 = vpop.eup %6682  ;;  %v8871_v18 = vld [vmem:[#allocation107_spill] sm:$0xff] }
 0x267   :  { %6686 = vrcp.f32 %v1067_v63  ;;  %v6685_v8 = vpop.eup %6684  ;;  %v1080_v54 = vadd.f32 1.0, %v6683_v6 }
 0x268   :  { %6688 = vrcp.f32 %v1073_v11 }
 0x269   :  { %6690 = vrcp.f32 %v1080_v54 }
 0x271   :  { %v6687_v42 = vpop.eup %6686 }
 0x272   :  { %v6689_v10 = vpop.eup %6688  ;;  %v1084_v62 = vmul.f32 %v6687_v42, %v6685_v8  ;;  %v8872_v8 = vld [vmem:[#allocation108_spill] sm:$0xff] }
 0x273   :  { %v1083_v46 = vmul.f32 0.0, %v6689_v10  ;;  %v6691_v42 = vpop.eup %6690 }
 0x275   :  { %v7725_v58 = vadd.f32 %v1084_v62, %v1083_v46  ;;  %v1154_v47 = vpop.f32.mrb[2].mxu0  ;;  %v1225_v9 = vpop.f32.mrb[2].mxu1 }
 0x276   :  { %v6557_v34 = vadd.f32 %v1154_v47, %v8870_v22  ;;  %v1156_v31 = vpop.f32.mrb[3].mxu0  ;;  %v1227_v33 = vpop.f32.mrb[3].mxu1  ;;  %v6573_v46 = vadd.f32 %v1225_v9, %v7628_v20  ;;  %v8878_v9 = vld [vmem:[#allocation80_spill] sm:$0xff] }
 0x277   :  { %6692 = vtanh.f32 %v7725_v58  ;;  %v6558_v39 = vadd.f32 %v1156_v31, %v8871_v18  ;;  %v6574_v6 = vadd.f32 %v1227_v33, %v8872_v8 }
 0x278   :  { %v4775_v63 = vmul.f32 -1.442695, %v6557_v34  ;;  %v8874_v34 = vld [vmem:[#allocation76_spill] sm:$0xff] }
 0x279   :  { %v4776_v11 = vmul.f32 -1.442695, %v6558_v39  ;;  %v4777_v62 = vmul.f32 -1.442695, %v6574_v6  ;;  %v8875_v39 = vld [vmem:[#allocation77_spill] sm:$0xff] }
 0x27a   :  { %6694 = vpow2.f32 %v4775_v63  ;;  %v8876_v63 = vld [vmem:[#allocation78_spill] sm:$0xff]  ;;  %v8879_v6 = vld [vmem:[#allocation81_spill] sm:$0xff] }
 0x27b   :  { %6696 = vpow2.f32 %v4776_v11  ;;  %v8877_v11 = vld [vmem:[#allocation79_spill] sm:$0xff] }
 0x27c   :  { %6698 = vpow2.f32 %v4777_v62  ;;  %v8882_v62 = vld [vmem:[#allocation84_spill] sm:$0xff] }
 0x27d   :  { %6700 = vtanh.f32 %v6573_v46  ;;  %v8884_v46 = vld [vmem:[#allocation86_spill] sm:$0xff] }
 0x281   :  { %v6693_v10 = vpop.eup %6692 }
 0x282   :  { %v7732_v54 = vmul.f32 %v6693_v10, %v6691_v42  ;;  %v8880_v42 = vld [vmem:[#allocation82_spill] sm:$0xff]  ;;  %v8881_v10 = vld [vmem:[#allocation83_spill] sm:$0xff] }
 0x284   :  { %8873 = vst [vmem:[#allocation107_spill] sm:$0xff] %v7732_v54  ;;  %v6695_v47 = vpop.eup %6694  ;;  %1323 = vmatmul.mubr.f32.vlgmr.msra.gmra.mrb[18].mxu0 %v7732_v54  ;;  %1394 = vmatmul.mubr.f32.vlgmr.msra.gmra.mrb[18].mxu1 %v7732_v54 }
 0x285   :  { %v6697_v22 = vpop.eup %6696  ;;  %v1237_v31 = vadd.f32 1.0, %v6695_v47  ;;  %5278 = vmatpush1.bf16.msra.mxu0 %v8874_v34  ;;  %5310 = vmatpush1.bf16.msra.mxu1 %v8875_v39  ;;  %v8885_v47 = vld [vmem:[#allocation87_spill] sm:$0xff]  ;;  %v8888_v39 = vld [vmem:[#allocation90_spill] sm:$0xff] }
 0x286   :  { %v1243_v33 = vadd.f32 1.0, %v6697_v22  ;;  %5280 = vmatprep.subr.bf16.mxu0 %v8876_v63  ;;  %5312 = vmatprep.subr.bf16.mxu1 %v8877_v11  ;;  %v8883_v22 = vld [vmem:[#allocation85_spill] sm:$0xff]  ;;  %v8892_v34 = vld [vmem:[#allocation94_spill] sm:$0xff] }
 0x287   :  { %6702 = vrcp.f32 %v1237_v31  ;;  %1464 = vmatprep.mubr.f32.mxu0 %v8810_v43  ;;  %1535 = vmatprep.mubr.f32.mxu1 %v8810_v43  ;;  %v6699_v31 = vpop.eup %6698 }
 0x288   :  { %6704 = vrcp.f32 %v1243_v33  ;;  %v6701_v54 = vpop.eup %6700  ;;  %v8886_v33 = vld [vmem:[#allocation88_spill] sm:$0xff] }
 0x289   :  { %5282 = vmatpush1.bf16.msra.mxu0 %v8878_v9  ;;  %5314 = vmatpush1.bf16.msra.mxu1 %v8879_v6  ;;  %v8887_v9 = vld [vmem:[#allocation89_spill] sm:$0xff] }
 0x28a   :  { %5284 = vmatprep.subr.bf16.mxu0 %v8880_v42  ;;  %5316 = vmatprep.subr.bf16.mxu1 %v8881_v10  ;;  %v1250_v42 = vadd.f32 1.0, %v6699_v31  ;;  %v8889_v10 = vld [vmem:[#allocation91_spill] sm:$0xff]  ;;  %v8896_v31 = vld [vmem:[#allocation98_spill] sm:$0xff] }
 0x28c   :  { %6706 = vrcp.f32 %v1250_v42  ;;  %v8901_v42 = vld [vmem:[#allocation103_spill] sm:$0xff] }
 0x28d   :  { %5286 = vmatpush1.bf16.msra.mxu0 %v8882_v62  ;;  %5318 = vmatpush1.bf16.msra.mxu1 %v8883_v22 }
 0x28e   :  { %5288 = vmatprep.subr.bf16.mxu0 %v8884_v46  ;;  %5320 = vmatprep.subr.bf16.mxu1 %v8885_v47  ;;  %v8890_v46 = vld [vmem:[#allocation92_spill] sm:$0xff]  ;;  %v8891_v47 = vld [vmem:[#allocation93_spill] sm:$0xff] }
 0x291   :  { %v6703_v11 = vpop.eup %6702  ;;  %5290 = vmatpush1.bf16.msra.mxu0 %v8886_v33  ;;  %5322 = vmatpush1.bf16.msra.mxu1 %v8887_v9  ;;  %v8893_v33 = vld [vmem:[#allocation95_spill] sm:$0xff] }
 0x292   :  { %v6705_v6 = vpop.eup %6704  ;;  %v1254_v63 = vmul.f32 %v6703_v11, %v6701_v54  ;;  %5292 = vmatprep.subr.bf16.mxu0 %v8888_v39  ;;  %5324 = vmatprep.subr.bf16.mxu1 %v8889_v10  ;;  %v8894_v54 = vld [vmem:[#allocation96_spill] sm:$0xff]  ;;  %v8895_v11 = vld [vmem:[#allocation97_spill] sm:$0xff] }
 0x293   :  { %v1253_v22 = vmul.f32 %v6705_v6, %v7631_v0  ;;  %v8897_v0 = vld [vmem:[#allocation99_spill] sm:$0xff]  ;;  %v8899_v6 = vld [vmem:[#allocation101_spill] sm:$0xff] }
 0x295   :  { %v7755_v62 = vadd.f32 %v1254_v63, %v1253_v22  ;;  %5294 = vmatpush1.bf16.msra.mxu0 %v8890_v46  ;;  %5326 = vmatpush1.bf16.msra.mxu1 %v8891_v47  ;;  %v8898_v63 = vld [vmem:[#allocation100_spill] sm:$0xff]  ;;  %v8900_v22 = vld [vmem:[#allocation102_spill] sm:$0xff]  ;;  %v8903_v46 = vld [vmem:[#allocation105_spill] sm:$0xff] }
 0x296   :  { %5296 = vmatprep.subr.bf16.mxu0 %v8892_v34  ;;  %5328 = vmatprep.subr.bf16.mxu1 %v8893_v33  ;;  %v6707_v34 = vpop.eup %6706  ;;  %v8902_v47 = vld [vmem:[#allocation104_spill] sm:$0xff] }
 0x297   :  { %6708 = vtanh.f32 %v7755_v62 }
 0x299   :  { %5298 = vmatpush1.bf16.msra.mxu0 %v8894_v54  ;;  %5330 = vmatpush1.bf16.msra.mxu1 %v8895_v11  ;;  %v8904_v11 = vld [vmem:[#allocation16_spill] sm:$0xff] }
 0x29a   :  { %5300 = vmatprep.subr.bf16.mxu0 %v8896_v31  ;;  %5332 = vmatprep.subr.bf16.mxu1 %v8897_v0  ;;  %v8905_v31 = vld [vmem:[#allocation17_spill] sm:$0xff] }
 0x29d   :  { %5302 = vmatpush1.bf16.msra.mxu0 %v8898_v63  ;;  %5334 = vmatpush1.bf16.msra.mxu1 %v8899_v6 }
 0x29e   :  { %5304 = vmatprep.subr.bf16.mxu0 %v8900_v22  ;;  %5336 = vmatprep.subr.bf16.mxu1 %v8901_v42 }
 0x2a1   :  { %v6709_v33 = vpop.eup %6708  ;;  %5306 = vmatpush1.bf16.msra.mxu0 %v8902_v47  ;;  %5338 = vmatpush1.bf16.msra.mxu1 %v8903_v46 }
 0x2a2   :  { %v1257_v54 = vmul.f32 %v6709_v33, %v6707_v34  ;;  %5340 = vmatprep.subr.bf16.mxu0 %v8904_v11  ;;  %5372 = vmatprep.subr.bf16.mxu1 %v8905_v31  ;;  %v8906_v34 = vld [vmem:[#allocation54_spill] sm:$0xff]  ;;  %v8907_v33 = vld [vmem:[#allocation55_spill] sm:$0xff] }
 0x2a4   :  { %1465 = vmatmul.mubr.f32.vlgmr.msra.gmra.mrb[18].mxu0 %v1257_v54  ;;  %1536 = vmatmul.mubr.f32.vlgmr.msra.gmra.mrb[18].mxu1 %v1257_v54 }
 0x2a5   :  { %5342 = vmatpush1.bf16.msra.mxu0 %v7257_v15  ;;  %5374 = vmatpush1.bf16.msra.mxu1 %v7266_v19 }
 0x2a6   :  { %5344 = vmatprep.subr.bf16.mxu0 %v7269_v23  ;;  %5376 = vmatprep.subr.bf16.mxu1 %v7271_v24 }
 0x2a7   :  { %1634 = vmatprep.mubr.f32.mxu0 %v8810_v43  ;;  %1705 = vmatprep.mubr.f32.mxu1 %v8810_v43 }
 0x2a9   :  { %5346 = vmatpush1.bf16.msra.mxu0 %v7275_v28  ;;  %5378 = vmatpush1.bf16.msra.mxu1 %v7282_v32 }
 0x2aa   :  { %5348 = vmatprep.subr.bf16.mxu0 %v7286_v36  ;;  %5380 = vmatprep.subr.bf16.mxu1 %v7288_v37 }
 0x2ad   :  { %5350 = vmatpush1.bf16.msra.mxu0 %v7292_v41  ;;  %5382 = vmatpush1.bf16.msra.mxu1 %v7299_v45 }
 0x2ae   :  { %5352 = vmatprep.subr.bf16.mxu0 %v7303_v49  ;;  %5384 = vmatprep.subr.bf16.mxu1 %v7307_v53 }
 0x2b1   :  { %5354 = vmatpush1.bf16.msra.mxu0 %v7311_v56  ;;  %5386 = vmatpush1.bf16.msra.mxu1 %v7315_v60 }
 0x2b2   :  { %5356 = vmatprep.subr.bf16.mxu0 %v7322_v1  ;;  %5388 = vmatprep.subr.bf16.mxu1 %v7326_v4 }
 0x2b5   :  { %5358 = vmatpush1.bf16.msra.mxu0 %v7330_v7  ;;  %5390 = vmatpush1.bf16.msra.mxu1 %v7334_v12 }
 0x2b6   :  { %5360 = vmatprep.subr.bf16.mxu0 %v7341_v17  ;;  %5392 = vmatprep.subr.bf16.mxu1 %v7345_v21 }
 0x2b9   :  { %5362 = vmatpush1.bf16.msra.mxu0 %v7349_v26  ;;  %5394 = vmatpush1.bf16.msra.mxu1 %v7353_v30 }
 0x2ba   :  { %5364 = vmatprep.subr.bf16.mxu0 %v7360_v35  ;;  %5396 = vmatprep.subr.bf16.mxu1 %v7364_v40 }
 0x2bd   :  { %5366 = vmatpush1.bf16.msra.mxu0 %v7368_v44  ;;  %5398 = vmatpush1.bf16.msra.mxu1 %v7375_v50 }
 0x2be   :  { %5368 = vmatprep.subr.bf16.mxu0 %v7379_v55  ;;  %5400 = vmatprep.subr.bf16.mxu1 %v7383_v61 }
 0x2c1   :  { %5370 = vmatpush1.bf16.msra.mxu0 %v7387_v2  ;;  %5402 = vmatpush1.bf16.msra.mxu1 %v7391_v3 }
 0x2c2   :  { %5404 = vmatprep.subr.bf16.mxu0 %v7393_v5  ;;  %5436 = vmatprep.subr.bf16.mxu1 %v7397_v13 }
 0x2c4   :  { %1635 = vmatmul.mubr.f32.vlgmr.msra.gmra.mrb[4].mxu0 %v1257_v54  ;;  %1706 = vmatmul.mubr.f32.vlgmr.msra.gmra.mrb[4].mxu1 %v1257_v54  ;;  %v8908_v54 = vld [vmem:[#allocation56_spill] sm:$0xff] }
 0x2c5   :  { %5406 = vmatpush1.bf16.msra.mxu0 %v7403_v25  ;;  %5438 = vmatpush1.bf16.msra.mxu1 %v7407_v27  ;;  %v8928_v27 = vld [vmem:[#allocation109_spill] sm:$0xff] }
 0x2c6   :  { %5408 = vmatprep.subr.bf16.mxu0 %v7409_v29  ;;  %5440 = vmatprep.subr.bf16.mxu1 %v7412_v38  ;;  %v8909_v38 = vld [vmem:[#allocation57_spill] sm:$0xff]  ;;  %v8910_v29 = vld [vmem:[#allocation58_spill] sm:$0xff] }
 0x2c7   :  { %1804 = vmatprep.mubr.f32.mxu0 %v8810_v43  ;;  %1875 = vmatprep.mubr.f32.mxu1 %v8810_v43 }
 0x2c9   :  { %5410 = vmatpush1.bf16.msra.mxu0 %v7417_v48  ;;  %5442 = vmatpush1.bf16.msra.mxu1 %v7421_v51  ;;  %v8911_v48 = vld [vmem:[#allocation59_spill] sm:$0xff]  ;;  %v8912_v51 = vld [vmem:[#allocation60_spill] sm:$0xff] }
 0x2ca   :  { %5412 = vmatprep.subr.bf16.mxu0 %v7423_v52  ;;  %5444 = vmatprep.subr.bf16.mxu1 %v7426_v59  ;;  %v8913_v52 = vld [vmem:[#allocation61_spill] sm:$0xff]  ;;  %v8914_v59 = vld [vmem:[#allocation62_spill] sm:$0xff] }
 0x2cd   :  { %5414 = vmatpush1.bf16.msra.mxu0 %v7431_v14  ;;  %5446 = vmatpush1.bf16.msra.mxu1 %v7435_v16  ;;  %v8915_v14 = vld [vmem:[#allocation63_spill] sm:$0xff]  ;;  %v8916_v16 = vld [vmem:[#allocation64_spill] sm:$0xff] }
 0x2ce   :  { %5416 = vmatprep.subr.bf16.mxu0 %v8906_v34  ;;  %5448 = vmatprep.subr.bf16.mxu1 %v8907_v33  ;;  %v8917_v34 = vld [vmem:[#allocation65_spill] sm:$0xff]  ;;  %v8918_v33 = vld [vmem:[#allocation66_spill] sm:$0xff] }
 0x2d1   :  { %5418 = vmatpush1.bf16.msra.mxu0 %v8908_v54  ;;  %5450 = vmatpush1.bf16.msra.mxu1 %v8909_v38  ;;  %v8919_v54 = vld [vmem:[#allocation67_spill] sm:$0xff]  ;;  %v8920_v38 = vld [vmem:[#allocation68_spill] sm:$0xff] }
 0x2d2   :  { %5420 = vmatprep.subr.bf16.mxu0 %v8910_v29  ;;  %5452 = vmatprep.subr.bf16.mxu1 %v8911_v48  ;;  %v8921_v29 = vld [vmem:[#allocation69_spill] sm:$0xff]  ;;  %v8922_v48 = vld [vmem:[#allocation70_spill] sm:$0xff] }
 0x2d5   :  { %5422 = vmatpush1.bf16.msra.mxu0 %v8912_v51  ;;  %5454 = vmatpush1.bf16.msra.mxu1 %v8913_v52  ;;  %v8923_v51 = vld [vmem:[#allocation71_spill] sm:$0xff]  ;;  %v8924_v52 = vld [vmem:[#allocation72_spill] sm:$0xff] }
 0x2d6   :  { %5424 = vmatprep.subr.bf16.mxu0 %v8914_v59  ;;  %5456 = vmatprep.subr.bf16.mxu1 %v8915_v14  ;;  %v8925_v59 = vld [vmem:[#allocation73_spill] sm:$0xff]  ;;  %v8926_v14 = vld [vmem:[#allocation74_spill] sm:$0xff] }
 0x2d9   :  { %5426 = vmatpush1.bf16.msra.mxu0 %v8916_v16  ;;  %5458 = vmatpush1.bf16.msra.mxu1 %v8917_v34  ;;  %v8927_v16 = vld [vmem:[#allocation75_spill] sm:$0xff] }
 0x2da   :  { %5428 = vmatprep.subr.bf16.mxu0 %v8918_v33  ;;  %5460 = vmatprep.subr.bf16.mxu1 %v8919_v54 }
 0x2dd   :  { %5430 = vmatpush1.bf16.msra.mxu0 %v8920_v38  ;;  %5462 = vmatpush1.bf16.msra.mxu1 %v8921_v29 }
 0x2de   :  { %5432 = vmatprep.subr.bf16.mxu0 %v8922_v48  ;;  %5464 = vmatprep.subr.bf16.mxu1 %v8923_v51  ;;  %v8929_v51 = vld [vmem:[#allocation110_spill] sm:$0xff] }
 0x2e1   :  { %5434 = vmatpush1.bf16.msra.mxu0 %v8924_v52  ;;  %5466 = vmatpush1.bf16.msra.mxu1 %v8925_v59  ;;  %v8930_v59 = vld [vmem:[#allocation111_spill] sm:$0xff] }
 0x2e2   :  { %5468 = vmatprep.subr.bf16.mxu0 %v8926_v14  ;;  %5500 = vmatprep.subr.bf16.mxu1 %v8927_v16 }
 0x377   :  { %v1466_v34 = vpop.f32.mrb[18].mxu0  ;;  %v1537_v33 = vpop.f32.mrb[18].mxu1 }
 0x378   :  { %v1542_v54 = vadd.f32 %v1466_v34, %v8928_v27  ;;  %v1468_v25 = vpop.f32.mrb[19].mxu0  ;;  %v1539_v38 = vpop.f32.mrb[19].mxu1  ;;  %v1544_v3 = vadd.f32 %v1537_v33, %v8930_v59  ;;  %v8931_v59 = vld [vmem:[#allocation106_spill] sm:$0xff] }
 0x379   :  { %v1543_v29 = vadd.f32 %v1468_v25, %v7711_v57  ;;  %v1545_v52 = vadd.f32 %v1539_v38, %v8929_v51 }
 0x37a   :  { %v4778_v13 = vmul.f32 -1.442695, %v1542_v54 }
 0x37b   :  { %v4779_v48 = vmul.f32 -1.442695, %v1543_v29  ;;  %v4780_v5 = vmul.f32 -1.442695, %v1545_v52 }
 0x37c   :  { %6710 = vpow2.f32 %v4778_v13 }
 0x37d   :  { %6712 = vpow2.f32 %v4779_v48 }
 0x37e   :  { %6714 = vpow2.f32 %v4780_v5 }
 0x37f   :  { %6716 = vtanh.f32 %v1544_v3 }
 0x386   :  { %v6711_v14 = vpop.eup %6710 }
 0x387   :  { %v6713_v2 = vpop.eup %6712  ;;  %v1549_v16 = vadd.f32 1.0, %v6711_v14 }
 0x388   :  { %v1555_v61 = vadd.f32 1.0, %v6713_v2  ;;  %v6715_v34 = vpop.eup %6714 }
 0x389   :  { %6718 = vrcp.f32 %v1549_v16  ;;  %v6717_v27 = vpop.eup %6716  ;;  %v1562_v13 = vadd.f32 1.0, %v6715_v34 }
 0x38a   :  { %6720 = vrcp.f32 %v1555_v61 }
 0x38b   :  { %6722 = vrcp.f32 %v1562_v13 }
 0x393   :  { %v6719_v25 = vpop.eup %6718 }
 0x394   :  { %v6721_v54 = vpop.eup %6720  ;;  %v1566_v29 = vmul.f32 %v6719_v25, %v6717_v27 }
 0x395   :  { %v1565_v48 = vmul.f32 %v6721_v54, %v7725_v58  ;;  %v6723_v58 = vpop.eup %6722 }
 0x397   :  { %v7847_v38 = vadd.f32 %v1566_v29, %v1565_v48  ;;  %v1636_v52 = vpop.f32.mrb[4].mxu0  ;;  %v1707_v33 = vpop.f32.mrb[4].mxu1 }
 0x398   :  { %v6559_v14 = vadd.f32 %v1636_v52, %v8931_v59  ;;  %v1638_v5 = vpop.f32.mrb[5].mxu0  ;;  %v1709_v3 = vpop.f32.mrb[5].mxu1  ;;  %v6575_v54 = vadd.f32 %v1707_v33, %v7628_v20  ;;  %v8937_v33 = vld [vmem:[#allocation80_spill] sm:$0xff] }
 0x399   :  { %v6560_v2 = vadd.f32 %v1638_v5, %v8871_v18  ;;  %6724 = vtanh.f32 %v7847_v38  ;;  %v6576_v27 = vadd.f32 %v1709_v3, %v8872_v8  ;;  %v8934_v5 = vld [vmem:[#allocation77_spill] sm:$0xff] }
 0x39a   :  { %v4781_v61 = vmul.f32 -1.442695, %v6559_v14  ;;  %v8933_v14 = vld [vmem:[#allocation76_spill] sm:$0xff] }
 0x39b   :  { %v4782_v16 = vmul.f32 -1.442695, %v6560_v2  ;;  %v4783_v25 = vmul.f32 -1.442695, %v6576_v27  ;;  %v8935_v2 = vld [vmem:[#allocation78_spill] sm:$0xff] }
 0x39c   :  { %6726 = vpow2.f32 %v4781_v61  ;;  %v8936_v61 = vld [vmem:[#allocation79_spill] sm:$0xff]  ;;  %v8939_v27 = vld [vmem:[#allocation82_spill] sm:$0xff] }
 0x39d   :  { %6728 = vpow2.f32 %v4782_v16  ;;  %v8938_v16 = vld [vmem:[#allocation81_spill] sm:$0xff] }
 0x39e   :  { %6730 = vpow2.f32 %v4783_v25  ;;  %v8942_v25 = vld [vmem:[#allocation85_spill] sm:$0xff] }
 0x39f   :  { %6732 = vtanh.f32 %v6575_v54  ;;  %v8943_v54 = vld [vmem:[#allocation86_spill] sm:$0xff] }
 0x3a3   :  { %v6725_v34 = vpop.eup %6724 }
 0x3a4   :  { %v7854_v29 = vmul.f32 %v6725_v34, %v6723_v58  ;;  %v8940_v58 = vld [vmem:[#allocation83_spill] sm:$0xff]  ;;  %v8941_v34 = vld [vmem:[#allocation84_spill] sm:$0xff] }
 0x3a6   :  { %8932 = vst [vmem:[#allocation108_spill] sm:$0xff] %v7854_v29  ;;  %v6727_v13 = vpop.eup %6726  ;;  %1805 = vmatmul.mubr.f32.vlgmr.msra.gmra.mrb[20].mxu0 %v7854_v29  ;;  %1876 = vmatmul.mubr.f32.vlgmr.msra.gmra.mrb[20].mxu1 %v7854_v29 }
 0x3a7   :  { %v6729_v48 = vpop.eup %6728  ;;  %v1719_v52 = vadd.f32 1.0, %v6727_v13  ;;  %5470 = vmatpush1.bf16.msra.mxu0 %v8933_v14  ;;  %5502 = vmatpush1.bf16.msra.mxu1 %v8934_v5  ;;  %v8944_v13 = vld [vmem:[#allocation87_spill] sm:$0xff] }
 0x3a8   :  { %v1725_v3 = vadd.f32 1.0, %v6729_v48  ;;  %5472 = vmatprep.subr.bf16.mxu0 %v8935_v2  ;;  %5504 = vmatprep.subr.bf16.mxu1 %v8936_v61  ;;  %v6731_v48 = vpop.eup %6730 }
 0x3a9   :  { %6734 = vrcp.f32 %v1719_v52  ;;  %1946 = vmatprep.mubr.f32.mxu0 %v8810_v43  ;;  %2017 = vmatprep.mubr.f32.mxu1 %v8810_v43  ;;  %v6733_v52 = vpop.eup %6732 }
 0x3aa   :  { %6736 = vrcp.f32 %v1725_v3  ;;  %v8945_v3 = vld [vmem:[#allocation88_spill] sm:$0xff] }
 0x3ab   :  { %5474 = vmatpush1.bf16.msra.mxu0 %v8937_v33  ;;  %5506 = vmatpush1.bf16.msra.mxu1 %v8938_v16 }
 0x3ac   :  { %5476 = vmatprep.subr.bf16.mxu0 %v8939_v27  ;;  %5508 = vmatprep.subr.bf16.mxu1 %v8940_v58  ;;  %v1732_v27 = vadd.f32 1.0, %v6731_v48  ;;  %v8948_v58 = vld [vmem:[#allocation94_spill] sm:$0xff]  ;;  %v8951_v48 = vld [vmem:[#allocation97_spill] sm:$0xff] }
 0x3ae   :  { %6738 = vrcp.f32 %v1732_v27  ;;  %v8953_v27 = vld [vmem:[#allocation39_spill] sm:$0xff] }
 0x3af   :  { %5478 = vmatpush1.bf16.msra.mxu0 %v8941_v34  ;;  %5510 = vmatpush1.bf16.msra.mxu1 %v8942_v25 }
 0x3b0   :  { %5480 = vmatprep.subr.bf16.mxu0 %v8943_v54  ;;  %5512 = vmatprep.subr.bf16.mxu1 %v8944_v13  ;;  %v8946_v54 = vld [vmem:[#allocation92_spill] sm:$0xff]  ;;  %v8947_v13 = vld [vmem:[#allocation93_spill] sm:$0xff] }
 0x3b3   :  { %v6735_v29 = vpop.eup %6734  ;;  %5482 = vmatpush1.bf16.msra.mxu0 %v8945_v3  ;;  %5514 = vmatpush1.bf16.msra.mxu1 %v8887_v9  ;;  %v8949_v3 = vld [vmem:[#allocation95_spill] sm:$0xff] }
 0x3b4   :  { %v6737_v16 = vpop.eup %6736  ;;  %v1736_v33 = vmul.f32 %v6735_v29, %v6733_v52  ;;  %5484 = vmatprep.subr.bf16.mxu0 %v8888_v39  ;;  %5516 = vmatprep.subr.bf16.mxu1 %v8889_v10  ;;  %v8950_v29 = vld [vmem:[#allocation96_spill] sm:$0xff]  ;;  %v8952_v52 = vld [vmem:[#allocation98_spill] sm:$0xff] }
 0x3b5   :  { %v1735_v25 = vmul.f32 %v6737_v16, %v7755_v62 }
 0x3b7   :  { %v7877_v34 = vadd.f32 %v1736_v33, %v1735_v25  ;;  %5486 = vmatpush1.bf16.msra.mxu0 %v8946_v54  ;;  %5518 = vmatpush1.bf16.msra.mxu1 %v8947_v13  ;;  %v8954_v25 = vld [vmem:[#allocation40_spill] sm:$0xff] }
 0x3b8   :  { %5488 = vmatprep.subr.bf16.mxu0 %v8948_v58  ;;  %5520 = vmatprep.subr.bf16.mxu1 %v8949_v3  ;;  %v6739_v62 = vpop.eup %6738 }
 0x3b9   :  { %6740 = vtanh.f32 %v7877_v34 }
 0x3bb   :  { %5490 = vmatpush1.bf16.msra.mxu0 %v8950_v29  ;;  %5522 = vmatpush1.bf16.msra.mxu1 %v8951_v48 }
 0x3bc   :  { %5492 = vmatprep.subr.bf16.mxu0 %v8952_v52  ;;  %5524 = vmatprep.subr.bf16.mxu1 %v8897_v0 }
 0x3bf   :  { %5494 = vmatpush1.bf16.msra.mxu0 %v8898_v63  ;;  %5526 = vmatpush1.bf16.msra.mxu1 %v8899_v6 }
 0x3c0   :  { %5496 = vmatprep.subr.bf16.mxu0 %v8900_v22  ;;  %5528 = vmatprep.subr.bf16.mxu1 %v8901_v42 }
 0x3c3   :  { %v6741_v33 = vpop.eup %6740  ;;  %5498 = vmatpush1.bf16.msra.mxu0 %v8902_v47  ;;  %5530 = vmatpush1.bf16.msra.mxu1 %v8903_v46 }
 0x3c4   :  { %5532 = vmatprep.subr.bf16.mxu0 %v8904_v11  ;;  %5564 = vmatprep.subr.bf16.mxu1 %v8905_v31  ;;  %v1739_v16 = vmul.f32 %v6741_v33, %v6739_v62  ;;  %v8955_v62 = vld [vmem:[#allocation41_spill] sm:$0xff]  ;;  %v8956_v33 = vld [vmem:[#allocation42_spill] sm:$0xff] }
 0x3c6   :  { %1947 = vmatmul.mubr.f32.vlgmr.msra.gmra.mrb[20].mxu0 %v1739_v16  ;;  %2018 = vmatmul.mubr.f32.vlgmr.msra.gmra.mrb[20].mxu1 %v1739_v16 }
 0x3c7   :  { %5534 = vmatpush1.bf16.msra.mxu0 %v7257_v15  ;;  %5566 = vmatpush1.bf16.msra.mxu1 %v7266_v19 }
 0x3c8   :  { %5536 = vmatprep.subr.bf16.mxu0 %v7269_v23  ;;  %5568 = vmatprep.subr.bf16.mxu1 %v7271_v24 }
 0x3c9   :  { %2116 = vmatprep.mubr.f32.mxu0 %v8810_v43  ;;  %2187 = vmatprep.mubr.f32.mxu1 %v8810_v43 }
 0x3cb   :  { %5538 = vmatpush1.bf16.msra.mxu0 %v7275_v28  ;;  %5570 = vmatpush1.bf16.msra.mxu1 %v7282_v32 }
 0x3cc   :  { %5540 = vmatprep.subr.bf16.mxu0 %v7286_v36  ;;  %5572 = vmatprep.subr.bf16.mxu1 %v7288_v37 }
 0x3cf   :  { %5542 = vmatpush1.bf16.msra.mxu0 %v7292_v41  ;;  %5574 = vmatpush1.bf16.msra.mxu1 %v7299_v45 }
 0x3d0   :  { %5544 = vmatprep.subr.bf16.mxu0 %v7303_v49  ;;  %5576 = vmatprep.subr.bf16.mxu1 %v7307_v53 }
 0x3d3   :  { %5546 = vmatpush1.bf16.msra.mxu0 %v7311_v56  ;;  %5578 = vmatpush1.bf16.msra.mxu1 %v7315_v60 }
 0x3d4   :  { %5548 = vmatprep.subr.bf16.mxu0 %v7322_v1  ;;  %5580 = vmatprep.subr.bf16.mxu1 %v7326_v4 }
 0x3d7   :  { %5550 = vmatpush1.bf16.msra.mxu0 %v7330_v7  ;;  %5582 = vmatpush1.bf16.msra.mxu1 %v7334_v12 }
 0x3d8   :  { %5552 = vmatprep.subr.bf16.mxu0 %v7341_v17  ;;  %5584 = vmatprep.subr.bf16.mxu1 %v7345_v21 }
 0x3db   :  { %5554 = vmatpush1.bf16.msra.mxu0 %v7349_v26  ;;  %5586 = vmatpush1.bf16.msra.mxu1 %v7353_v30  ;;  %v8957_v26 = vld [vmem:[#allocation43_spill] sm:$0xff]  ;;  %v8990_v30 = vld [vmem:[#allocation109_spill] sm:$0xff] }
 0x3dc   :  { %5556 = vmatprep.subr.bf16.mxu0 %v7360_v35  ;;  %5588 = vmatprep.subr.bf16.mxu1 %v7364_v40  ;;  %v8958_v35 = vld [vmem:[#allocation44_spill] sm:$0xff]  ;;  %v8959_v40 = vld [vmem:[#allocation45_spill] sm:$0xff] }
 0x3df   :  { %5558 = vmatpush1.bf16.msra.mxu0 %v7368_v44  ;;  %5590 = vmatpush1.bf16.msra.mxu1 %v7375_v50  ;;  %v8960_v44 = vld [vmem:[#allocation46_spill] sm:$0xff]  ;;  %v8961_v50 = vld [vmem:[#allocation47_spill] sm:$0xff] }
 0x3e0   :  { %5560 = vmatprep.subr.bf16.mxu0 %v7379_v55  ;;  %5592 = vmatprep.subr.bf16.mxu1 %v8953_v27  ;;  %v8971_v27 = vld [vmem:[#allocation57_spill] sm:$0xff]  ;;  %v8972_v55 = vld [vmem:[#allocation58_spill] sm:$0xff] }
 0x3e3   :  { %5562 = vmatpush1.bf16.msra.mxu0 %v8954_v25  ;;  %5594 = vmatpush1.bf16.msra.mxu1 %v8955_v62  ;;  %v8962_v25 = vld [vmem:[#allocation48_spill] sm:$0xff]  ;;  %v8963_v62 = vld [vmem:[#allocation49_spill] sm:$0xff] }
 0x3e4   :  { %5596 = vmatprep.subr.bf16.mxu0 %v8956_v33  ;;  %5628 = vmatprep.subr.bf16.mxu1 %v8957_v26  ;;  %v8964_v33 = vld [vmem:[#allocation50_spill] sm:$0xff]  ;;  %v8965_v26 = vld [vmem:[#allocation51_spill] sm:$0xff] }
 0x3e6   :  { %2117 = vmatmul.mubr.f32.vlgmr.msra.gmra.mrb[6].mxu0 %v1739_v16  ;;  %2188 = vmatmul.mubr.f32.vlgmr.msra.gmra.mrb[6].mxu1 %v1739_v16  ;;  %v8966_v16 = vld [vmem:[#allocation52_spill] sm:$0xff] }
 0x3e7   :  { %5598 = vmatpush1.bf16.msra.mxu0 %v8958_v35  ;;  %5630 = vmatpush1.bf16.msra.mxu1 %v8959_v40  ;;  %v8967_v35 = vld [vmem:[#allocation53_spill] sm:$0xff]  ;;  %v8968_v40 = vld [vmem:[#allocation54_spill] sm:$0xff] }
 0x3e8   :  { %5600 = vmatprep.subr.bf16.mxu0 %v8960_v44  ;;  %5632 = vmatprep.subr.bf16.mxu1 %v8961_v50  ;;  %v8969_v44 = vld [vmem:[#allocation55_spill] sm:$0xff]  ;;  %v8970_v50 = vld [vmem:[#allocation56_spill] sm:$0xff] }
 0x3e9   :  { %2286 = vmatprep.mubr.f32.mxu0 %v8810_v43  ;;  %2357 = vmatprep.mubr.f32.mxu1 %v8810_v43 }
 0x3eb   :  { %5602 = vmatpush1.bf16.msra.mxu0 %v8962_v25  ;;  %5634 = vmatpush1.bf16.msra.mxu1 %v8963_v62  ;;  %v8973_v25 = vld [vmem:[#allocation59_spill] sm:$0xff]  ;;  %v8974_v62 = vld [vmem:[#allocation60_spill] sm:$0xff] }
 0x3ec   :  { %5604 = vmatprep.subr.bf16.mxu0 %v8964_v33  ;;  %5636 = vmatprep.subr.bf16.mxu1 %v8965_v26  ;;  %v8975_v33 = vld [vmem:[#allocation61_spill] sm:$0xff]  ;;  %v8976_v26 = vld [vmem:[#allocation62_spill] sm:$0xff] }
 0x3ef   :  { %5606 = vmatpush1.bf16.msra.mxu0 %v8966_v16  ;;  %5638 = vmatpush1.bf16.msra.mxu1 %v8967_v35  ;;  %v8977_v16 = vld [vmem:[#allocation63_spill] sm:$0xff]  ;;  %v8978_v35 = vld [vmem:[#allocation64_spill] sm:$0xff] }
 0x3f0   :  { %5608 = vmatprep.subr.bf16.mxu0 %v8968_v40  ;;  %5640 = vmatprep.subr.bf16.mxu1 %v8969_v44  ;;  %v8979_v40 = vld [vmem:[#allocation65_spill] sm:$0xff]  ;;  %v8980_v44 = vld [vmem:[#allocation66_spill] sm:$0xff] }
 0x3f3   :  { %5610 = vmatpush1.bf16.msra.mxu0 %v8970_v50  ;;  %5642 = vmatpush1.bf16.msra.mxu1 %v8971_v27  ;;  %v8981_v50 = vld [vmem:[#allocation67_spill] sm:$0xff]  ;;  %v8982_v27 = vld [vmem:[#allocation68_spill] sm:$0xff] }
 0x3f4   :  { %5612 = vmatprep.subr.bf16.mxu0 %v8972_v55  ;;  %5644 = vmatprep.subr.bf16.mxu1 %v8973_v25  ;;  %v8983_v55 = vld [vmem:[#allocation69_spill] sm:$0xff]  ;;  %v8984_v25 = vld [vmem:[#allocation70_spill] sm:$0xff] }
 0x3f7   :  { %5614 = vmatpush1.bf16.msra.mxu0 %v8974_v62  ;;  %5646 = vmatpush1.bf16.msra.mxu1 %v8975_v33  ;;  %v8985_v62 = vld [vmem:[#allocation71_spill] sm:$0xff]  ;;  %v8986_v33 = vld [vmem:[#allocation72_spill] sm:$0xff] }
 0x3f8   :  { %5616 = vmatprep.subr.bf16.mxu0 %v8976_v26  ;;  %5648 = vmatprep.subr.bf16.mxu1 %v8977_v16  ;;  %v8987_v26 = vld [vmem:[#allocation73_spill] sm:$0xff]  ;;  %v8988_v16 = vld [vmem:[#allocation74_spill] sm:$0xff] }
 0x3fb   :  { %5618 = vmatpush1.bf16.msra.mxu0 %v8978_v35  ;;  %5650 = vmatpush1.bf16.msra.mxu1 %v8979_v40  ;;  %v8989_v35 = vld [vmem:[#allocation75_spill] sm:$0xff] }
 0x3fc   :  { %5620 = vmatprep.subr.bf16.mxu0 %v8980_v44  ;;  %5652 = vmatprep.subr.bf16.mxu1 %v8981_v50 }
 0x3ff   :  { %5622 = vmatpush1.bf16.msra.mxu0 %v8982_v27  ;;  %5654 = vmatpush1.bf16.msra.mxu1 %v8983_v55 }
 0x400   :  { %5624 = vmatprep.subr.bf16.mxu0 %v8984_v25  ;;  %5656 = vmatprep.subr.bf16.mxu1 %v8985_v62 }
 0x403   :  { %5626 = vmatpush1.bf16.msra.mxu0 %v8986_v33  ;;  %5658 = vmatpush1.bf16.msra.mxu1 %v8987_v26  ;;  %v8991_v26 = vld [vmem:[#allocation111_spill] sm:$0xff] }
 0x404   :  { %5660 = vmatprep.subr.bf16.mxu0 %v8988_v16  ;;  %5692 = vmatprep.subr.bf16.mxu1 %v8989_v35 }
 0x499   :  { %v1948_v40 = vpop.f32.mrb[20].mxu0  ;;  %v2019_v44 = vpop.f32.mrb[20].mxu1 }
 0x49a   :  { %v2024_v50 = vadd.f32 %v1948_v40, %v8990_v30  ;;  %v1950_v21 = vpop.f32.mrb[21].mxu0  ;;  %v2021_v27 = vpop.f32.mrb[21].mxu1  ;;  %v2026_v12 = vadd.f32 %v2019_v44, %v8991_v26 }
 0x49b   :  { %v2025_v55 = vadd.f32 %v1950_v21, %v7711_v57  ;;  %v2027_v33 = vadd.f32 %v2021_v27, %v8929_v51 }
 0x49c   :  { %v4784_v17 = vmul.f32 -1.442695, %v2024_v50 }
 0x49d   :  { %v4785_v25 = vmul.f32 -1.442695, %v2025_v55  ;;  %v4786_v62 = vmul.f32 -1.442695, %v2027_v33 }
 0x49e   :  { %6742 = vpow2.f32 %v4784_v17 }
 0x49f   :  { %6744 = vpow2.f32 %v4785_v25 }
 0x4a0   :  { %6746 = vpow2.f32 %v4786_v62 }
 0x4a1   :  { %6748 = vtanh.f32 %v2026_v12 }
 0x4a8   :  { %v6743_v16 = vpop.eup %6742 }
 0x4a9   :  { %v6745_v7 = vpop.eup %6744  ;;  %v2031_v35 = vadd.f32 1.0, %v6743_v16 }
 0x4aa   :  { %v2037_v4 = vadd.f32 1.0, %v6745_v7  ;;  %v6747_v40 = vpop.eup %6746 }
 0x4ab   :  { %6750 = vrcp.f32 %v2031_v35  ;;  %v6749_v30 = vpop.eup %6748  ;;  %v2044_v17 = vadd.f32 1.0, %v6747_v40 }
 0x4ac   :  { %6752 = vrcp.f32 %v2037_v4 }
 0x4ad   :  { %6754 = vrcp.f32 %v2044_v17 }
 0x4b5   :  { %v6751_v21 = vpop.eup %6750 }
 0x4b6   :  { %v6753_v50 = vpop.eup %6752  ;;  %v2048_v55 = vmul.f32 %v6751_v21, %v6749_v30 }
 0x4b7   :  { %v2047_v25 = vmul.f32 %v6753_v50, %v7847_v38  ;;  %v6755_v38 = vpop.eup %6754 }
 0x4b9   :  { %v7969_v27 = vadd.f32 %v2048_v55, %v2047_v25  ;;  %v2118_v33 = vpop.f32.mrb[6].mxu0  ;;  %v2189_v44 = vpop.f32.mrb[6].mxu1 }
 0x4ba   :  { %v6561_v16 = vadd.f32 %v2118_v33, %v8931_v59  ;;  %v2120_v62 = vpop.f32.mrb[7].mxu0  ;;  %v2191_v12 = vpop.f32.mrb[7].mxu1  ;;  %v6577_v50 = vadd.f32 %v2189_v44, %v7628_v20  ;;  %v8993_v44 = vld [vmem:[#allocation80_spill] sm:$0xff] }
 0x4bb   :  { %v6562_v7 = vadd.f32 %v2120_v62, %v8871_v18  ;;  %6756 = vtanh.f32 %v7969_v27  ;;  %v6578_v30 = vadd.f32 %v2191_v12, %v8872_v8  ;;  %v8994_v62 = vld [vmem:[#allocation81_spill] sm:$0xff]  ;;  %v8995_v12 = vld [vmem:[#allocation82_spill] sm:$0xff] }
 0x4bc   :  { %v4787_v4 = vmul.f32 -1.442695, %v6561_v16 }
 0x4bd   :  { %v4788_v35 = vmul.f32 -1.442695, %v6562_v7  ;;  %v4789_v21 = vmul.f32 -1.442695, %v6578_v30  ;;  %v8996_v7 = vld [vmem:[#allocation83_spill] sm:$0xff]  ;;  %v8999_v30 = vld [vmem:[#allocation86_spill] sm:$0xff] }
 0x4be   :  { %6758 = vpow2.f32 %v4787_v4  ;;  %v8997_v4 = vld [vmem:[#allocation84_spill] sm:$0xff] }
 0x4bf   :  { %6760 = vpow2.f32 %v4788_v35  ;;  %v8998_v35 = vld [vmem:[#allocation85_spill] sm:$0xff] }
 0x4c0   :  { %6762 = vpow2.f32 %v4789_v21 }
 0x4c1   :  { %6764 = vtanh.f32 %v6577_v50 }
 0x4c5   :  { %v6757_v40 = vpop.eup %6756 }
 0x4c6   :  { %v7976_v55 = vmul.f32 %v6757_v40, %v6755_v38  ;;  %v9000_v38 = vld [vmem:[#allocation87_spill] sm:$0xff] }
 0x4c8   :  { %8992 = vst [vmem:[#allocation89_spill] sm:$0xff] %v7976_v55  ;;  %v6759_v17 = vpop.eup %6758  ;;  %2287 = vmatmul.mubr.f32.vlgmr.msra.gmra.mrb[22].mxu0 %v7976_v55  ;;  %2358 = vmatmul.mubr.f32.vlgmr.msra.gmra.mrb[22].mxu1 %v7976_v55 }
 0x4c9   :  { %v6761_v25 = vpop.eup %6760  ;;  %v2201_v33 = vadd.f32 1.0, %v6759_v17  ;;  %5662 = vmatpush1.bf16.msra.mxu0 %v8933_v14  ;;  %5694 = vmatpush1.bf16.msra.mxu1 %v8934_v5  ;;  %v9001_v17 = vld [vmem:[#allocation88_spill] sm:$0xff] }
 0x4ca   :  { %v2207_v16 = vadd.f32 1.0, %v6761_v25  ;;  %5664 = vmatprep.subr.bf16.mxu0 %v8935_v2  ;;  %5696 = vmatprep.subr.bf16.mxu1 %v8936_v61  ;;  %v6763_v40 = vpop.eup %6762 }
 0x4cb   :  { %6766 = vrcp.f32 %v2201_v33  ;;  %2428 = vmatprep.mubr.f32.mxu0 %v8810_v43  ;;  %2499 = vmatprep.mubr.f32.mxu1 %v8810_v43  ;;  %v6765_v21 = vpop.eup %6764 }
 0x4cc   :  { %6768 = vrcp.f32 %v2207_v16  ;;  %v2214_v16 = vadd.f32 1.0, %v6763_v40 }
 0x4cd   :  { %5666 = vmatpush1.bf16.msra.mxu0 %v8993_v44  ;;  %5698 = vmatpush1.bf16.msra.mxu1 %v8994_v62 }
 0x4ce   :  { %5668 = vmatprep.subr.bf16.mxu0 %v8995_v12  ;;  %5700 = vmatprep.subr.bf16.mxu1 %v8996_v7  ;;  %6770 = vrcp.f32 %v2214_v16  ;;  %v9006_v16 = vld [vmem:[#allocation31_spill] sm:$0xff] }
 0x4d1   :  { %5670 = vmatpush1.bf16.msra.mxu0 %v8997_v4  ;;  %5702 = vmatpush1.bf16.msra.mxu1 %v8998_v35 }
 0x4d2   :  { %5672 = vmatprep.subr.bf16.mxu0 %v8999_v30  ;;  %5704 = vmatprep.subr.bf16.mxu1 %v9000_v38 }
 0x4d5   :  { %v6767_v50 = vpop.eup %6766  ;;  %5674 = vmatpush1.bf16.msra.mxu0 %v9001_v17  ;;  %5706 = vmatpush1.bf16.msra.mxu1 %v8887_v9 }
 0x4d6   :  { %v6769_v25 = vpop.eup %6768  ;;  %v2218_v33 = vmul.f32 %v6767_v50, %v6765_v21  ;;  %5676 = vmatprep.subr.bf16.mxu0 %v8888_v39  ;;  %5708 = vmatprep.subr.bf16.mxu1 %v8889_v10  ;;  %v9002_v21 = vld [vmem:[#allocation27_spill] sm:$0xff]  ;;  %v9003_v50 = vld [vmem:[#allocation28_spill] sm:$0xff] }
 0x4d7   :  { %v2217_v55 = vmul.f32 %v6769_v25, %v7877_v34  ;;  %v9004_v25 = vld [vmem:[#allocation29_spill] sm:$0xff] }
 0x4d8   :  { %v6771_v34 = vpop.eup %6770 }
 0x4d9   :  { %v7999_v35 = vadd.f32 %v2218_v33, %v2217_v55  ;;  %5678 = vmatpush1.bf16.msra.mxu0 %v8946_v54  ;;  %5710 = vmatpush1.bf16.msra.mxu1 %v8947_v13  ;;  %v9005_v33 = vld [vmem:[#allocation30_spill] sm:$0xff] }
 0x4da   :  { %5680 = vmatprep.subr.bf16.mxu0 %v8948_v58  ;;  %5712 = vmatprep.subr.bf16.mxu1 %v8949_v3 }
 0x4db   :  { %6772 = vtanh.f32 %v7999_v35 }
 0x4dd   :  { %5682 = vmatpush1.bf16.msra.mxu0 %v8950_v29  ;;  %5714 = vmatpush1.bf16.msra.mxu1 %v8951_v48 }
 0x4de   :  { %5684 = vmatprep.subr.bf16.mxu0 %v8952_v52  ;;  %5716 = vmatprep.subr.bf16.mxu1 %v8897_v0 }
 0x4e1   :  { %5686 = vmatpush1.bf16.msra.mxu0 %v8898_v63  ;;  %5718 = vmatpush1.bf16.msra.mxu1 %v8899_v6 }
 0x4e2   :  { %5688 = vmatprep.subr.bf16.mxu0 %v8900_v22  ;;  %5720 = vmatprep.subr.bf16.mxu1 %v8901_v42 }
 0x4e5   :  { %v6773_v55 = vpop.eup %6772  ;;  %5690 = vmatpush1.bf16.msra.mxu0 %v8902_v47  ;;  %5722 = vmatpush1.bf16.msra.mxu1 %v8903_v46 }
 0x4e6   :  { %v2221_v40 = vmul.f32 %v6773_v55, %v6771_v34  ;;  %5724 = vmatprep.subr.bf16.mxu0 %v8904_v11  ;;  %5756 = vmatprep.subr.bf16.mxu1 %v8905_v31  ;;  %v9007_v34 = vld [vmem:[#allocation32_spill] sm:$0xff]  ;;  %v9008_v55 = vld [vmem:[#allocation33_spill] sm:$0xff] }
 0x4e8   :  { %2429 = vmatmul.mubr.f32.vlgmr.msra.gmra.mrb[22].mxu0 %v2221_v40  ;;  %2500 = vmatmul.mubr.f32.vlgmr.msra.gmra.mrb[22].mxu1 %v2221_v40 }
 0x4e9   :  { %5726 = vmatpush1.bf16.msra.mxu0 %v7257_v15  ;;  %5758 = vmatpush1.bf16.msra.mxu1 %v7266_v19 }
 0x4ea   :  { %5728 = vmatprep.subr.bf16.mxu0 %v7269_v23  ;;  %5760 = vmatprep.subr.bf16.mxu1 %v7271_v24 }
 0x4eb   :  { %2598 = vmatprep.mubr.f32.mxu0 %v8810_v43  ;;  %2669 = vmatprep.mubr.f32.mxu1 %v8810_v43 }
 0x4ed   :  { %5730 = vmatpush1.bf16.msra.mxu0 %v7275_v28  ;;  %5762 = vmatpush1.bf16.msra.mxu1 %v7282_v32 }
 0x4ee   :  { %5732 = vmatprep.subr.bf16.mxu0 %v7286_v36  ;;  %5764 = vmatprep.subr.bf16.mxu1 %v7288_v37 }
 0x4f1   :  { %5734 = vmatpush1.bf16.msra.mxu0 %v7292_v41  ;;  %5766 = vmatpush1.bf16.msra.mxu1 %v7299_v45 }
 0x4f2   :  { %5736 = vmatprep.subr.bf16.mxu0 %v7303_v49  ;;  %5768 = vmatprep.subr.bf16.mxu1 %v7307_v53  ;;  %v9009_v53 = vld [vmem:[#allocation34_spill] sm:$0xff] }
 0x4f5   :  { %5738 = vmatpush1.bf16.msra.mxu0 %v7311_v56  ;;  %5770 = vmatpush1.bf16.msra.mxu1 %v7315_v60  ;;  %v9010_v56 = vld [vmem:[#allocation35_spill] sm:$0xff]  ;;  %v9011_v60 = vld [vmem:[#allocation36_spill] sm:$0xff] }
 0x4f6   :  { %5740 = vmatprep.subr.bf16.mxu0 %v7322_v1  ;;  %5772 = vmatprep.subr.bf16.mxu1 %v9002_v21  ;;  %v9012_v1 = vld [vmem:[#allocation37_spill] sm:$0xff]  ;;  %v9013_v21 = vld [vmem:[#allocation38_spill] sm:$0xff] }
 0x4f9   :  { %5742 = vmatpush1.bf16.msra.mxu0 %v9003_v50  ;;  %5774 = vmatpush1.bf16.msra.mxu1 %v9004_v25  ;;  %v9014_v50 = vld [vmem:[#allocation39_spill] sm:$0xff]  ;;  %v9015_v25 = vld [vmem:[#allocation40_spill] sm:$0xff] }
 0x4fa   :  { %5744 = vmatprep.subr.bf16.mxu0 %v9005_v33  ;;  %5776 = vmatprep.subr.bf16.mxu1 %v9006_v16  ;;  %v9016_v33 = vld [vmem:[#allocation41_spill] sm:$0xff]  ;;  %v9017_v16 = vld [vmem:[#allocation42_spill] sm:$0xff] }
 0x4fd   :  { %5746 = vmatpush1.bf16.msra.mxu0 %v9007_v34  ;;  %5778 = vmatpush1.bf16.msra.mxu1 %v9008_v55  ;;  %v9018_v34 = vld [vmem:[#allocation43_spill] sm:$0xff]  ;;  %v9051_v55 = vld [vmem:[#allocation109_spill] sm:$0xff] }
 0x4fe   :  { %5748 = vmatprep.subr.bf16.mxu0 %v9009_v53  ;;  %5780 = vmatprep.subr.bf16.mxu1 %v9010_v56  ;;  %v9019_v53 = vld [vmem:[#allocation44_spill] sm:$0xff]  ;;  %v9020_v56 = vld [vmem:[#allocation45_spill] sm:$0xff] }
 0x501   :  { %5750 = vmatpush1.bf16.msra.mxu0 %v9011_v60  ;;  %5782 = vmatpush1.bf16.msra.mxu1 %v9012_v1  ;;  %v9021_v60 = vld [vmem:[#allocation46_spill] sm:$0xff]  ;;  %v9022_v1 = vld [vmem:[#allocation47_spill] sm:$0xff] }
 0x502   :  { %5752 = vmatprep.subr.bf16.mxu0 %v9013_v21  ;;  %5784 = vmatprep.subr.bf16.mxu1 %v9014_v50  ;;  %v9032_v50 = vld [vmem:[#allocation57_spill] sm:$0xff]  ;;  %v9033_v21 = vld [vmem:[#allocation58_spill] sm:$0xff] }
 0x505   :  { %5754 = vmatpush1.bf16.msra.mxu0 %v9015_v25  ;;  %5786 = vmatpush1.bf16.msra.mxu1 %v9016_v33  ;;  %v9023_v25 = vld [vmem:[#allocation48_spill] sm:$0xff]  ;;  %v9024_v33 = vld [vmem:[#allocation49_spill] sm:$0xff] }
 0x506   :  { %5788 = vmatprep.subr.bf16.mxu0 %v9017_v16  ;;  %5820 = vmatprep.subr.bf16.mxu1 %v9018_v34  ;;  %v9025_v16 = vld [vmem:[#allocation50_spill] sm:$0xff]  ;;  %v9026_v34 = vld [vmem:[#allocation51_spill] sm:$0xff] }
 0x508   :  { %2599 = vmatmul.mubr.f32.vlgmr.msra.gmra.mrb[8].mxu0 %v2221_v40  ;;  %2670 = vmatmul.mubr.f32.vlgmr.msra.gmra.mrb[8].mxu1 %v2221_v40  ;;  %v9027_v40 = vld [vmem:[#allocation52_spill] sm:$0xff] }
 0x509   :  { %5790 = vmatpush1.bf16.msra.mxu0 %v9019_v53  ;;  %5822 = vmatpush1.bf16.msra.mxu1 %v9020_v56  ;;  %v9028_v53 = vld [vmem:[#allocation53_spill] sm:$0xff]  ;;  %v9029_v56 = vld [vmem:[#allocation54_spill] sm:$0xff] }
 0x50a   :  { %5792 = vmatprep.subr.bf16.mxu0 %v9021_v60  ;;  %5824 = vmatprep.subr.bf16.mxu1 %v9022_v1  ;;  %v9030_v60 = vld [vmem:[#allocation55_spill] sm:$0xff]  ;;  %v9031_v1 = vld [vmem:[#allocation56_spill] sm:$0xff] }
 0x50b   :  { %2768 = vmatprep.mubr.f32.mxu0 %v8810_v43  ;;  %2839 = vmatprep.mubr.f32.mxu1 %v8810_v43 }
 0x50d   :  { %5794 = vmatpush1.bf16.msra.mxu0 %v9023_v25  ;;  %5826 = vmatpush1.bf16.msra.mxu1 %v9024_v33  ;;  %v9034_v25 = vld [vmem:[#allocation59_spill] sm:$0xff]  ;;  %v9035_v33 = vld [vmem:[#allocation60_spill] sm:$0xff] }
 0x50e   :  { %5796 = vmatprep.subr.bf16.mxu0 %v9025_v16  ;;  %5828 = vmatprep.subr.bf16.mxu1 %v9026_v34  ;;  %v9036_v16 = vld [vmem:[#allocation61_spill] sm:$0xff]  ;;  %v9037_v34 = vld [vmem:[#allocation62_spill] sm:$0xff] }
 0x511   :  { %5798 = vmatpush1.bf16.msra.mxu0 %v9027_v40  ;;  %5830 = vmatpush1.bf16.msra.mxu1 %v9028_v53  ;;  %v9038_v40 = vld [vmem:[#allocation63_spill] sm:$0xff]  ;;  %v9039_v53 = vld [vmem:[#allocation64_spill] sm:$0xff] }
 0x512   :  { %5800 = vmatprep.subr.bf16.mxu0 %v9029_v56  ;;  %5832 = vmatprep.subr.bf16.mxu1 %v9030_v60  ;;  %v9040_v56 = vld [vmem:[#allocation65_spill] sm:$0xff]  ;;  %v9041_v60 = vld [vmem:[#allocation66_spill] sm:$0xff] }
 0x515   :  { %5802 = vmatpush1.bf16.msra.mxu0 %v9031_v1  ;;  %5834 = vmatpush1.bf16.msra.mxu1 %v9032_v50  ;;  %v9042_v1 = vld [vmem:[#allocation67_spill] sm:$0xff]  ;;  %v9043_v50 = vld [vmem:[#allocation68_spill] sm:$0xff] }
 0x516   :  { %5804 = vmatprep.subr.bf16.mxu0 %v9033_v21  ;;  %5836 = vmatprep.subr.bf16.mxu1 %v9034_v25  ;;  %v9044_v21 = vld [vmem:[#allocation69_spill] sm:$0xff]  ;;  %v9045_v25 = vld [vmem:[#allocation70_spill] sm:$0xff] }
 0x519   :  { %5806 = vmatpush1.bf16.msra.mxu0 %v9035_v33  ;;  %5838 = vmatpush1.bf16.msra.mxu1 %v9036_v16  ;;  %v9046_v33 = vld [vmem:[#allocation71_spill] sm:$0xff]  ;;  %v9047_v16 = vld [vmem:[#allocation72_spill] sm:$0xff] }
 0x51a   :  { %5808 = vmatprep.subr.bf16.mxu0 %v9037_v34  ;;  %5840 = vmatprep.subr.bf16.mxu1 %v9038_v40  ;;  %v9048_v34 = vld [vmem:[#allocation73_spill] sm:$0xff]  ;;  %v9049_v40 = vld [vmem:[#allocation74_spill] sm:$0xff] }
 0x51d   :  { %5810 = vmatpush1.bf16.msra.mxu0 %v9039_v53  ;;  %5842 = vmatpush1.bf16.msra.mxu1 %v9040_v56  ;;  %v9050_v53 = vld [vmem:[#allocation75_spill] sm:$0xff] }
 0x51e   :  { %5812 = vmatprep.subr.bf16.mxu0 %v9041_v60  ;;  %5844 = vmatprep.subr.bf16.mxu1 %v9042_v1 }
 0x521   :  { %5814 = vmatpush1.bf16.msra.mxu0 %v9043_v50  ;;  %5846 = vmatpush1.bf16.msra.mxu1 %v9044_v21 }
 0x522   :  { %5816 = vmatprep.subr.bf16.mxu0 %v9045_v25  ;;  %5848 = vmatprep.subr.bf16.mxu1 %v9046_v33 }
 0x525   :  { %5818 = vmatpush1.bf16.msra.mxu0 %v9047_v16  ;;  %5850 = vmatpush1.bf16.msra.mxu1 %v9048_v34 }
 0x526   :  { %5852 = vmatprep.subr.bf16.mxu0 %v9049_v40  ;;  %5884 = vmatprep.subr.bf16.mxu1 %v9050_v53 }
 0x5bb   :  { %v2430_v56 = vpop.f32.mrb[22].mxu0  ;;  %v2501_v60 = vpop.f32.mrb[22].mxu1 }
 0x5bc   :  { %v2506_v1 = vadd.f32 %v2430_v56, %v9051_v55  ;;  %v2432_v49 = vpop.f32.mrb[23].mxu0  ;;  %v2503_v50 = vpop.f32.mrb[23].mxu1  ;;  %v2508_v34 = vadd.f32 %v2501_v60, %v8991_v26 }
 0x5bd   :  { %v2507_v21 = vadd.f32 %v2432_v49, %v7711_v57  ;;  %v2509_v16 = vadd.f32 %v2503_v50, %v8929_v51 }
 0x5be   :  { %v4790_v45 = vmul.f32 -1.442695, %v2506_v1 }
 0x5bf   :  { %v4791_v25 = vmul.f32 -1.442695, %v2507_v21  ;;  %v4792_v33 = vmul.f32 -1.442695, %v2509_v16 }
 0x5c0   :  { %6774 = vpow2.f32 %v4790_v45 }
 0x5c1   :  { %6776 = vpow2.f32 %v4791_v25 }
 0x5c2   :  { %6778 = vpow2.f32 %v4792_v33 }
 0x5c3   :  { %6780 = vtanh.f32 %v2508_v34 }
 0x5ca   :  { %v6775_v40 = vpop.eup %6774 }
 0x5cb   :  { %v6777_v41 = vpop.eup %6776  ;;  %v2513_v53 = vadd.f32 1.0, %v6775_v40 }
 0x5cc   :  { %v2519_v37 = vadd.f32 1.0, %v6777_v41  ;;  %v6779_v56 = vpop.eup %6778 }
 0x5cd   :  { %6782 = vrcp.f32 %v2513_v53  ;;  %v6781_v55 = vpop.eup %6780  ;;  %v2526_v45 = vadd.f32 1.0, %v6779_v56 }
 0x5ce   :  { %6784 = vrcp.f32 %v2519_v37 }
 0x5cf   :  { %6786 = vrcp.f32 %v2526_v45 }
 0x5d7   :  { %v6783_v49 = vpop.eup %6782 }
 0x5d8   :  { %v6785_v1 = vpop.eup %6784  ;;  %v2530_v21 = vmul.f32 %v6783_v49, %v6781_v55 }
 0x5d9   :  { %v2529_v25 = vmul.f32 %v6785_v1, %v7969_v27  ;;  %v6787_v27 = vpop.eup %6786 }
 0x5db   :  { %v8091_v50 = vadd.f32 %v2530_v21, %v2529_v25  ;;  %v2600_v16 = vpop.f32.mrb[8].mxu0  ;;  %v2671_v60 = vpop.f32.mrb[8].mxu1 }
 0x5dc   :  { %v6563_v40 = vadd.f32 %v2600_v16, %v8931_v59  ;;  %v2602_v33 = vpop.f32.mrb[9].mxu0  ;;  %v2673_v34 = vpop.f32.mrb[9].mxu1  ;;  %v6579_v1 = vadd.f32 %v2671_v60, %v7628_v20  ;;  %v9053_v60 = vld [vmem:[#allocation85_spill] sm:$0xff] }
 0x5dd   :  { %v6564_v41 = vadd.f32 %v2602_v33, %v8871_v18  ;;  %6788 = vtanh.f32 %v8091_v50  ;;  %v6580_v55 = vadd.f32 %v2673_v34, %v8872_v8 }
 0x5de   :  { %v4793_v37 = vmul.f32 -1.442695, %v6563_v40 }
 0x5df   :  { %v4794_v53 = vmul.f32 -1.442695, %v6564_v41  ;;  %v4795_v49 = vmul.f32 -1.442695, %v6580_v55 }
 0x5e0   :  { %6790 = vpow2.f32 %v4793_v37 }
 0x5e1   :  { %6792 = vpow2.f32 %v4794_v53 }
 0x5e2   :  { %6794 = vpow2.f32 %v4795_v49 }
 0x5e3   :  { %6796 = vtanh.f32 %v6579_v1 }
 0x5e7   :  { %v6789_v56 = vpop.eup %6788 }
 0x5e8   :  { %v8098_v21 = vmul.f32 %v6789_v56, %v6787_v27 }
 0x5ea   :  { %9052 = vst [vmem:[#allocation90_spill] sm:$0xff] %v8098_v21  ;;  %v6791_v45 = vpop.eup %6790  ;;  %2769 = vmatmul.mubr.f32.vlgmr.msra.gmra.mrb[24].mxu0 %v8098_v21  ;;  %2840 = vmatmul.mubr.f32.vlgmr.msra.gmra.mrb[24].mxu1 %v8098_v21  ;;  %v9067_v21 = vld [vmem:[#allocation32_spill] sm:$0xff] }
 0x5eb   :  { %v6793_v25 = vpop.eup %6792  ;;  %v2683_v16 = vadd.f32 1.0, %v6791_v45  ;;  %5854 = vmatpush1.bf16.msra.mxu0 %v8933_v14  ;;  %5886 = vmatpush1.bf16.msra.mxu1 %v8934_v5  ;;  %v9054_v45 = vld [vmem:[#allocation19_spill] sm:$0xff] }
 0x5ec   :  { %v2689_v40 = vadd.f32 1.0, %v6793_v25  ;;  %5856 = vmatprep.subr.bf16.mxu0 %v8935_v2  ;;  %5888 = vmatprep.subr.bf16.mxu1 %v8936_v61  ;;  %v6795_v33 = vpop.eup %6794  ;;  %v9055_v25 = vld [vmem:[#allocation20_spill] sm:$0xff] }
 0x5ed   :  { %6798 = vrcp.f32 %v2683_v16  ;;  %2910 = vmatprep.mubr.f32.mxu0 %v8810_v43  ;;  %2981 = vmatprep.mubr.f32.mxu1 %v8810_v43  ;;  %v6797_v34 = vpop.eup %6796  ;;  %v2696_v55 = vadd.f32 1.0, %v6795_v33  ;;  %v9056_v16 = vld [vmem:[#allocation21_spill] sm:$0xff]  ;;  %v9058_v33 = vld [vmem:[#allocation23_spill] sm:$0xff] }
 0x5ee   :  { %6800 = vrcp.f32 %v2689_v40  ;;  %v9057_v40 = vld [vmem:[#allocation22_spill] sm:$0xff] }
 0x5ef   :  { %5858 = vmatpush1.bf16.msra.mxu0 %v8993_v44  ;;  %5890 = vmatpush1.bf16.msra.mxu1 %v8994_v62  ;;  %6802 = vrcp.f32 %v2696_v55  ;;  %v9063_v55 = vld [vmem:[#allocation28_spill] sm:$0xff] }
 0x5f0   :  { %5860 = vmatprep.subr.bf16.mxu0 %v8995_v12  ;;  %5892 = vmatprep.subr.bf16.mxu1 %v8996_v7 }
 0x5f3   :  { %5862 = vmatpush1.bf16.msra.mxu0 %v8997_v4  ;;  %5894 = vmatpush1.bf16.msra.mxu1 %v9053_v60 }
 0x5f4   :  { %5864 = vmatprep.subr.bf16.mxu0 %v8999_v30  ;;  %5896 = vmatprep.subr.bf16.mxu1 %v9000_v38 }
 0x5f7   :  { %v6799_v41 = vpop.eup %6798  ;;  %5866 = vmatpush1.bf16.msra.mxu0 %v9001_v17  ;;  %5898 = vmatpush1.bf16.msra.mxu1 %v8887_v9 }
 0x5f8   :  { %v6801_v37 = vpop.eup %6800  ;;  %v2700_v53 = vmul.f32 %v6799_v41, %v6797_v34  ;;  %5868 = vmatprep.subr.bf16.mxu0 %v8888_v39  ;;  %5900 = vmatprep.subr.bf16.mxu1 %v8889_v10  ;;  %v9059_v34 = vld [vmem:[#allocation24_spill] sm:$0xff]  ;;  %v9060_v41 = vld [vmem:[#allocation25_spill] sm:$0xff] }
 0x5f9   :  { %v2699_v27 = vmul.f32 %v6801_v37, %v7999_v35  ;;  %v6803_v35 = vpop.eup %6802  ;;  %v9061_v37 = vld [vmem:[#allocation26_spill] sm:$0xff] }
 0x5fb   :  { %v8121_v56 = vadd.f32 %v2700_v53, %v2699_v27  ;;  %5870 = vmatpush1.bf16.msra.mxu0 %v8946_v54  ;;  %5902 = vmatpush1.bf16.msra.mxu1 %v8947_v13  ;;  %v9062_v53 = vld [vmem:[#allocation27_spill] sm:$0xff]  ;;  %v9064_v27 = vld [vmem:[#allocation29_spill] sm:$0xff] }
 0x5fc   :  { %5872 = vmatprep.subr.bf16.mxu0 %v8948_v58  ;;  %5904 = vmatprep.subr.bf16.mxu1 %v8949_v3 }
 0x5fd   :  { %6804 = vtanh.f32 %v8121_v56 }
 0x5ff   :  { %5874 = vmatpush1.bf16.msra.mxu0 %v8950_v29  ;;  %5906 = vmatpush1.bf16.msra.mxu1 %v8951_v48 }
 0x600   :  { %5876 = vmatprep.subr.bf16.mxu0 %v8952_v52  ;;  %5908 = vmatprep.subr.bf16.mxu1 %v8897_v0 }
 0x603   :  { %5878 = vmatpush1.bf16.msra.mxu0 %v8898_v63  ;;  %5910 = vmatpush1.bf16.msra.mxu1 %v8899_v6 }
 0x604   :  { %5880 = vmatprep.subr.bf16.mxu0 %v8900_v22  ;;  %5912 = vmatprep.subr.bf16.mxu1 %v8901_v42 }
 0x607   :  { %v6805_v49 = vpop.eup %6804  ;;  %5882 = vmatpush1.bf16.msra.mxu0 %v8902_v47  ;;  %5914 = vmatpush1.bf16.msra.mxu1 %v8903_v46 }
 0x608   :  { %5916 = vmatprep.subr.bf16.mxu0 %v8904_v11  ;;  %5948 = vmatprep.subr.bf16.mxu1 %v8905_v31  ;;  %v2703_v1 = vmul.f32 %v6805_v49, %v6803_v35  ;;  %v9065_v35 = vld [vmem:[#allocation30_spill] sm:$0xff]  ;;  %v9066_v49 = vld [vmem:[#allocation31_spill] sm:$0xff] }
 0x60a   :  { %2911 = vmatmul.mubr.f32.vlgmr.msra.gmra.mrb[24].mxu0 %v2703_v1  ;;  %2982 = vmatmul.mubr.f32.vlgmr.msra.gmra.mrb[24].mxu1 %v2703_v1 }
 0x60b   :  { %5918 = vmatpush1.bf16.msra.mxu0 %v7257_v15  ;;  %5950 = vmatpush1.bf16.msra.mxu1 %v7266_v19 }
 0x60c   :  { %5920 = vmatprep.subr.bf16.mxu0 %v7269_v23  ;;  %5952 = vmatprep.subr.bf16.mxu1 %v7271_v24 }
 0x60d   :  { %3080 = vmatprep.mubr.f32.mxu0 %v8810_v43  ;;  %3151 = vmatprep.mubr.f32.mxu1 %v8810_v43 }
 0x60f   :  { %5922 = vmatpush1.bf16.msra.mxu0 %v7275_v28  ;;  %5954 = vmatpush1.bf16.msra.mxu1 %v7282_v32 }
 0x610   :  { %5924 = vmatprep.subr.bf16.mxu0 %v7286_v36  ;;  %5956 = vmatprep.subr.bf16.mxu1 %v9054_v45 }
 0x613   :  { %5926 = vmatpush1.bf16.msra.mxu0 %v9055_v25  ;;  %5958 = vmatpush1.bf16.msra.mxu1 %v9056_v16 }
 0x614   :  { %5928 = vmatprep.subr.bf16.mxu0 %v9057_v40  ;;  %5960 = vmatprep.subr.bf16.mxu1 %v9058_v33  ;;  %v9068_v40 = vld [vmem:[#allocation33_spill] sm:$0xff]  ;;  %v9069_v33 = vld [vmem:[#allocation34_spill] sm:$0xff] }
 0x617   :  { %5930 = vmatpush1.bf16.msra.mxu0 %v9059_v34  ;;  %5962 = vmatpush1.bf16.msra.mxu1 %v9060_v41  ;;  %v9070_v34 = vld [vmem:[#allocation35_spill] sm:$0xff]  ;;  %v9071_v41 = vld [vmem:[#allocation36_spill] sm:$0xff] }
 0x618   :  { %5932 = vmatprep.subr.bf16.mxu0 %v9061_v37  ;;  %5964 = vmatprep.subr.bf16.mxu1 %v9062_v53  ;;  %v9072_v37 = vld [vmem:[#allocation37_spill] sm:$0xff]  ;;  %v9073_v53 = vld [vmem:[#allocation38_spill] sm:$0xff] }
 0x61b   :  { %5934 = vmatpush1.bf16.msra.mxu0 %v9063_v55  ;;  %5966 = vmatpush1.bf16.msra.mxu1 %v9064_v27  ;;  %v9074_v55 = vld [vmem:[#allocation39_spill] sm:$0xff]  ;;  %v9075_v27 = vld [vmem:[#allocation40_spill] sm:$0xff] }
 0x61c   :  { %5936 = vmatprep.subr.bf16.mxu0 %v9065_v35  ;;  %5968 = vmatprep.subr.bf16.mxu1 %v9066_v49  ;;  %v9076_v35 = vld [vmem:[#allocation41_spill] sm:$0xff]  ;;  %v9077_v49 = vld [vmem:[#allocation42_spill] sm:$0xff] }
 0x61f   :  { %5938 = vmatpush1.bf16.msra.mxu0 %v9067_v21  ;;  %5970 = vmatpush1.bf16.msra.mxu1 %v9068_v40  ;;  %v9078_v21 = vld [vmem:[#allocation43_spill] sm:$0xff]  ;;  %v9111_v40 = vld [vmem:[#allocation109_spill] sm:$0xff] }
 0x620   :  { %5940 = vmatprep.subr.bf16.mxu0 %v9069_v33  ;;  %5972 = vmatprep.subr.bf16.mxu1 %v9070_v34  ;;  %v9079_v33 = vld [vmem:[#allocation44_spill] sm:$0xff]  ;;  %v9080_v34 = vld [vmem:[#allocation45_spill] sm:$0xff] }
 0x623   :  { %5942 = vmatpush1.bf16.msra.mxu0 %v9071_v41  ;;  %5974 = vmatpush1.bf16.msra.mxu1 %v9072_v37  ;;  %v9081_v41 = vld [vmem:[#allocation46_spill] sm:$0xff]  ;;  %v9082_v37 = vld [vmem:[#allocation47_spill] sm:$0xff] }
 0x624   :  { %5944 = vmatprep.subr.bf16.mxu0 %v9073_v53  ;;  %5976 = vmatprep.subr.bf16.mxu1 %v9074_v55  ;;  %v9092_v55 = vld [vmem:[#allocation57_spill] sm:$0xff]  ;;  %v9093_v53 = vld [vmem:[#allocation58_spill] sm:$0xff] }
 0x627   :  { %5946 = vmatpush1.bf16.msra.mxu0 %v9075_v27  ;;  %5978 = vmatpush1.bf16.msra.mxu1 %v9076_v35  ;;  %v9083_v27 = vld [vmem:[#allocation48_spill] sm:$0xff]  ;;  %v9084_v35 = vld [vmem:[#allocation49_spill] sm:$0xff] }
 0x628   :  { %5980 = vmatprep.subr.bf16.mxu0 %v9077_v49  ;;  %6012 = vmatprep.subr.bf16.mxu1 %v9078_v21  ;;  %v9085_v49 = vld [vmem:[#allocation50_spill] sm:$0xff]  ;;  %v9086_v21 = vld [vmem:[#allocation51_spill] sm:$0xff] }
 0x62a   :  { %3081 = vmatmul.mubr.f32.vlgmr.msra.gmra.mrb[10].mxu0 %v2703_v1  ;;  %3152 = vmatmul.mubr.f32.vlgmr.msra.gmra.mrb[10].mxu1 %v2703_v1  ;;  %v9087_v1 = vld [vmem:[#allocation52_spill] sm:$0xff] }
 0x62b   :  { %5982 = vmatpush1.bf16.msra.mxu0 %v9079_v33  ;;  %6014 = vmatpush1.bf16.msra.mxu1 %v9080_v34  ;;  %v9088_v33 = vld [vmem:[#allocation53_spill] sm:$0xff]  ;;  %v9089_v34 = vld [vmem:[#allocation54_spill] sm:$0xff] }
 0x62c   :  { %5984 = vmatprep.subr.bf16.mxu0 %v9081_v41  ;;  %6016 = vmatprep.subr.bf16.mxu1 %v9082_v37  ;;  %v9090_v41 = vld [vmem:[#allocation55_spill] sm:$0xff]  ;;  %v9091_v37 = vld [vmem:[#allocation56_spill] sm:$0xff] }
 0x62d   :  { %3250 = vmatprep.mubr.f32.mxu0 %v8810_v43  ;;  %3321 = vmatprep.mubr.f32.mxu1 %v8810_v43 }
 0x62f   :  { %5986 = vmatpush1.bf16.msra.mxu0 %v9083_v27  ;;  %6018 = vmatpush1.bf16.msra.mxu1 %v9084_v35  ;;  %v9094_v27 = vld [vmem:[#allocation59_spill] sm:$0xff]  ;;  %v9095_v35 = vld [vmem:[#allocation60_spill] sm:$0xff] }
 0x630   :  { %5988 = vmatprep.subr.bf16.mxu0 %v9085_v49  ;;  %6020 = vmatprep.subr.bf16.mxu1 %v9086_v21  ;;  %v9096_v49 = vld [vmem:[#allocation61_spill] sm:$0xff]  ;;  %v9097_v21 = vld [vmem:[#allocation62_spill] sm:$0xff] }
 0x633   :  { %5990 = vmatpush1.bf16.msra.mxu0 %v9087_v1  ;;  %6022 = vmatpush1.bf16.msra.mxu1 %v9088_v33  ;;  %v9098_v1 = vld [vmem:[#allocation63_spill] sm:$0xff]  ;;  %v9099_v33 = vld [vmem:[#allocation64_spill] sm:$0xff] }
 0x634   :  { %5992 = vmatprep.subr.bf16.mxu0 %v9089_v34  ;;  %6024 = vmatprep.subr.bf16.mxu1 %v9090_v41  ;;  %v9100_v34 = vld [vmem:[#allocation65_spill] sm:$0xff]  ;;  %v9101_v41 = vld [vmem:[#allocation66_spill] sm:$0xff] }
 0x637   :  { %5994 = vmatpush1.bf16.msra.mxu0 %v9091_v37  ;;  %6026 = vmatpush1.bf16.msra.mxu1 %v9092_v55  ;;  %v9102_v37 = vld [vmem:[#allocation67_spill] sm:$0xff]  ;;  %v9103_v55 = vld [vmem:[#allocation68_spill] sm:$0xff] }
 0x638   :  { %5996 = vmatprep.subr.bf16.mxu0 %v9093_v53  ;;  %6028 = vmatprep.subr.bf16.mxu1 %v9094_v27  ;;  %v9104_v53 = vld [vmem:[#allocation69_spill] sm:$0xff]  ;;  %v9105_v27 = vld [vmem:[#allocation70_spill] sm:$0xff] }
 0x63b   :  { %5998 = vmatpush1.bf16.msra.mxu0 %v9095_v35  ;;  %6030 = vmatpush1.bf16.msra.mxu1 %v9096_v49  ;;  %v9106_v35 = vld [vmem:[#allocation71_spill] sm:$0xff]  ;;  %v9107_v49 = vld [vmem:[#allocation72_spill] sm:$0xff] }
 0x63c   :  { %6000 = vmatprep.subr.bf16.mxu0 %v9097_v21  ;;  %6032 = vmatprep.subr.bf16.mxu1 %v9098_v1  ;;  %v9108_v21 = vld [vmem:[#allocation73_spill] sm:$0xff]  ;;  %v9109_v1 = vld [vmem:[#allocation74_spill] sm:$0xff] }
 0x63f   :  { %6002 = vmatpush1.bf16.msra.mxu0 %v9099_v33  ;;  %6034 = vmatpush1.bf16.msra.mxu1 %v9100_v34  ;;  %v9110_v33 = vld [vmem:[#allocation75_spill] sm:$0xff] }
 0x640   :  { %6004 = vmatprep.subr.bf16.mxu0 %v9101_v41  ;;  %6036 = vmatprep.subr.bf16.mxu1 %v9102_v37 }
 0x643   :  { %6006 = vmatpush1.bf16.msra.mxu0 %v9103_v55  ;;  %6038 = vmatpush1.bf16.msra.mxu1 %v9104_v53 }
 0x644   :  { %6008 = vmatprep.subr.bf16.mxu0 %v9105_v27  ;;  %6040 = vmatprep.subr.bf16.mxu1 %v9106_v35 }
 0x647   :  { %6010 = vmatpush1.bf16.msra.mxu0 %v9107_v49  ;;  %6042 = vmatpush1.bf16.msra.mxu1 %v9108_v21 }
 0x648   :  { %6044 = vmatprep.subr.bf16.mxu0 %v9109_v1  ;;  %6076 = vmatprep.subr.bf16.mxu1 %v9110_v33 }
 0x6dd   :  { %v2912_v34 = vpop.f32.mrb[24].mxu0  ;;  %v2983_v41 = vpop.f32.mrb[24].mxu1 }
 0x6de   :  { %v2988_v37 = vadd.f32 %v2912_v34, %v9111_v40  ;;  %v2914_v16 = vpop.f32.mrb[25].mxu0  ;;  %v2985_v55 = vpop.f32.mrb[25].mxu1  ;;  %v2990_v21 = vadd.f32 %v2983_v41, %v8991_v26 }
 0x6df   :  { %v2989_v53 = vadd.f32 %v2914_v16, %v7711_v57  ;;  %v2991_v49 = vadd.f32 %v2985_v55, %v8929_v51 }
 0x6e0   :  { %v4796_v25 = vmul.f32 -1.442695, %v2988_v37 }
 0x6e1   :  { %v4797_v27 = vmul.f32 -1.442695, %v2989_v53  ;;  %v4798_v35 = vmul.f32 -1.442695, %v2991_v49 }
 0x6e2   :  { %6806 = vpow2.f32 %v4796_v25 }
 0x6e3   :  { %6808 = vpow2.f32 %v4797_v27 }
 0x6e4   :  { %6810 = vpow2.f32 %v4798_v35 }
 0x6e5   :  { %6812 = vtanh.f32 %v2990_v21 }
 0x6ec   :  { %v6807_v1 = vpop.eup %6806 }
 0x6ed   :  { %v6809_v45 = vpop.eup %6808  ;;  %v2995_v33 = vadd.f32 1.0, %v6807_v1 }
 0x6ee   :  { %v3001_v36 = vadd.f32 1.0, %v6809_v45  ;;  %v6811_v34 = vpop.eup %6810 }
 0x6ef   :  { %6814 = vrcp.f32 %v2995_v33  ;;  %v6813_v40 = vpop.eup %6812  ;;  %v3008_v25 = vadd.f32 1.0, %v6811_v34 }
 0x6f0   :  { %6816 = vrcp.f32 %v3001_v36 }
 0x6f1   :  { %6818 = vrcp.f32 %v3008_v25 }
 0x6f9   :  { %v6815_v16 = vpop.eup %6814 }
 0x6fa   :  { %v6817_v37 = vpop.eup %6816  ;;  %v3012_v53 = vmul.f32 %v6815_v16, %v6813_v40 }
 0x6fb   :  { %v3011_v27 = vmul.f32 %v6817_v37, %v8091_v50  ;;  %v6819_v50 = vpop.eup %6818 }
 0x6fd   :  { %v8213_v55 = vadd.f32 %v3012_v53, %v3011_v27  ;;  %v3082_v49 = vpop.f32.mrb[10].mxu0  ;;  %v3153_v41 = vpop.f32.mrb[10].mxu1 }
 0x6fe   :  { %v6565_v1 = vadd.f32 %v3082_v49, %v8931_v59  ;;  %v3084_v35 = vpop.f32.mrb[11].mxu0  ;;  %v3155_v21 = vpop.f32.mrb[11].mxu1  ;;  %v6581_v37 = vadd.f32 %v3153_v41, %v7628_v20 }
 0x6ff   :  { %v6566_v45 = vadd.f32 %v3084_v35, %v8871_v18  ;;  %6820 = vtanh.f32 %v8213_v55  ;;  %v6582_v40 = vadd.f32 %v3155_v21, %v8872_v8 }
 0x700   :  { %v4799_v36 = vmul.f32 -1.442695, %v6565_v1 }
 0x701   :  { %v4800_v33 = vmul.f32 -1.442695, %v6566_v45  ;;  %v4801_v16 = vmul.f32 -1.442695, %v6582_v40 }
 0x702   :  { %6822 = vpow2.f32 %v4799_v36 }
 0x703   :  { %6824 = vpow2.f32 %v4800_v33 }
 0x704   :  { %6826 = vpow2.f32 %v4801_v16 }
 0x705   :  { %6828 = vtanh.f32 %v6581_v37  ;;  %v9113_v37 = vld [vmem:[#allocation18_spill] sm:$0xff] }
 0x709   :  { %v6821_v34 = vpop.eup %6820 }
 0x70a   :  { %v8220_v53 = vmul.f32 %v6821_v34, %v6819_v50 }
 0x70c   :  { %9112 = vst [vmem:[#allocation91_spill] sm:$0xff] %v8220_v53  ;;  %v6823_v25 = vpop.eup %6822  ;;  %3251 = vmatmul.mubr.f32.vlgmr.msra.gmra.mrb[26].mxu0 %v8220_v53  ;;  %3322 = vmatmul.mubr.f32.vlgmr.msra.gmra.mrb[26].mxu1 %v8220_v53  ;;  %v9127_v53 = vld [vmem:[#allocation32_spill] sm:$0xff] }
 0x70d   :  { %v6825_v27 = vpop.eup %6824  ;;  %v3165_v49 = vadd.f32 1.0, %v6823_v25  ;;  %6046 = vmatpush1.bf16.msra.mxu0 %v8933_v14  ;;  %6078 = vmatpush1.bf16.msra.mxu1 %v8934_v5  ;;  %v9114_v25 = vld [vmem:[#allocation19_spill] sm:$0xff] }
 0x70e   :  { %v3171_v1 = vadd.f32 1.0, %v6825_v27  ;;  %6048 = vmatprep.subr.bf16.mxu0 %v8935_v2  ;;  %6080 = vmatprep.subr.bf16.mxu1 %v8936_v61  ;;  %v6827_v41 = vpop.eup %6826  ;;  %v9115_v27 = vld [vmem:[#allocation20_spill] sm:$0xff] }
 0x70f   :  { %6830 = vrcp.f32 %v3165_v49  ;;  %3392 = vmatprep.mubr.f32.mxu0 %v8810_v43  ;;  %3463 = vmatprep.mubr.f32.mxu1 %v8810_v43  ;;  %v6829_v35 = vpop.eup %6828  ;;  %v3178_v33 = vadd.f32 1.0, %v6827_v41  ;;  %v9116_v49 = vld [vmem:[#allocation21_spill] sm:$0xff]  ;;  %v9118_v41 = vld [vmem:[#allocation23_spill] sm:$0xff] }
 0x710   :  { %6832 = vrcp.f32 %v3171_v1  ;;  %v9117_v1 = vld [vmem:[#allocation22_spill] sm:$0xff] }
 0x711   :  { %6050 = vmatpush1.bf16.msra.mxu0 %v8993_v44  ;;  %6082 = vmatpush1.bf16.msra.mxu1 %v8994_v62  ;;  %6834 = vrcp.f32 %v3178_v33  ;;  %v9123_v33 = vld [vmem:[#allocation28_spill] sm:$0xff] }
 0x712   :  { %6052 = vmatprep.subr.bf16.mxu0 %v8995_v12  ;;  %6084 = vmatprep.subr.bf16.mxu1 %v8996_v7 }
 0x715   :  { %6054 = vmatpush1.bf16.msra.mxu0 %v8997_v4  ;;  %6086 = vmatpush1.bf16.msra.mxu1 %v9053_v60 }
 0x716   :  { %6056 = vmatprep.subr.bf16.mxu0 %v8999_v30  ;;  %6088 = vmatprep.subr.bf16.mxu1 %v9000_v38 }
 0x719   :  { %v6831_v21 = vpop.eup %6830  ;;  %6058 = vmatpush1.bf16.msra.mxu0 %v9001_v17  ;;  %6090 = vmatpush1.bf16.msra.mxu1 %v8887_v9 }
 0x71a   :  { %v6833_v45 = vpop.eup %6832  ;;  %v3182_v36 = vmul.f32 %v6831_v21, %v6829_v35  ;;  %6060 = vmatprep.subr.bf16.mxu0 %v8888_v39  ;;  %6092 = vmatprep.subr.bf16.mxu1 %v8889_v10  ;;  %v9119_v35 = vld [vmem:[#allocation24_spill] sm:$0xff]  ;;  %v9120_v21 = vld [vmem:[#allocation25_spill] sm:$0xff] }
 0x71b   :  { %v3181_v40 = vmul.f32 %v6833_v45, %v8121_v56  ;;  %v6835_v56 = vpop.eup %6834  ;;  %v9121_v45 = vld [vmem:[#allocation26_spill] sm:$0xff] }
 0x71d   :  { %v8243_v50 = vadd.f32 %v3182_v36, %v3181_v40  ;;  %6062 = vmatpush1.bf16.msra.mxu0 %v8946_v54  ;;  %6094 = vmatpush1.bf16.msra.mxu1 %v8947_v13  ;;  %v9122_v36 = vld [vmem:[#allocation27_spill] sm:$0xff]  ;;  %v9124_v40 = vld [vmem:[#allocation29_spill] sm:$0xff] }
 0x71e   :  { %6064 = vmatprep.subr.bf16.mxu0 %v8948_v58  ;;  %6096 = vmatprep.subr.bf16.mxu1 %v8949_v3 }
 0x71f   :  { %6836 = vtanh.f32 %v8243_v50 }
 0x721   :  { %6066 = vmatpush1.bf16.msra.mxu0 %v8950_v29  ;;  %6098 = vmatpush1.bf16.msra.mxu1 %v8951_v48 }
 0x722   :  { %6068 = vmatprep.subr.bf16.mxu0 %v8952_v52  ;;  %6100 = vmatprep.subr.bf16.mxu1 %v8897_v0 }
 0x725   :  { %6070 = vmatpush1.bf16.msra.mxu0 %v8898_v63  ;;  %6102 = vmatpush1.bf16.msra.mxu1 %v8899_v6 }
 0x726   :  { %6072 = vmatprep.subr.bf16.mxu0 %v8900_v22  ;;  %6104 = vmatprep.subr.bf16.mxu1 %v8901_v42 }
 0x729   :  { %v6837_v34 = vpop.eup %6836  ;;  %6074 = vmatpush1.bf16.msra.mxu0 %v8902_v47  ;;  %6106 = vmatpush1.bf16.msra.mxu1 %v8903_v46 }
 0x72a   :  { %v3185_v16 = vmul.f32 %v6837_v34, %v6835_v56  ;;  %6108 = vmatprep.subr.bf16.mxu0 %v8904_v11  ;;  %6140 = vmatprep.subr.bf16.mxu1 %v8905_v31  ;;  %v9125_v56 = vld [vmem:[#allocation30_spill] sm:$0xff]  ;;  %v9126_v34 = vld [vmem:[#allocation31_spill] sm:$0xff] }
 0x72c   :  { %3393 = vmatmul.mubr.f32.vlgmr.msra.gmra.mrb[26].mxu0 %v3185_v16  ;;  %3464 = vmatmul.mubr.f32.vlgmr.msra.gmra.mrb[26].mxu1 %v3185_v16 }
 0x72d   :  { %6110 = vmatpush1.bf16.msra.mxu0 %v7257_v15  ;;  %6142 = vmatpush1.bf16.msra.mxu1 %v7266_v19 }
 0x72e   :  { %6112 = vmatprep.subr.bf16.mxu0 %v7269_v23  ;;  %6144 = vmatprep.subr.bf16.mxu1 %v7271_v24 }
 0x72f   :  { %3562 = vmatprep.mubr.f32.mxu0 %v8810_v43  ;;  %3633 = vmatprep.mubr.f32.mxu1 %v8810_v43 }
 0x731   :  { %6114 = vmatpush1.bf16.msra.mxu0 %v7275_v28  ;;  %6146 = vmatpush1.bf16.msra.mxu1 %v7282_v32 }
 0x732   :  { %6116 = vmatprep.subr.bf16.mxu0 %v9113_v37  ;;  %6148 = vmatprep.subr.bf16.mxu1 %v9114_v25 }
 0x735   :  { %6118 = vmatpush1.bf16.msra.mxu0 %v9115_v27  ;;  %6150 = vmatpush1.bf16.msra.mxu1 %v9116_v49 }
 0x736   :  { %6120 = vmatprep.subr.bf16.mxu0 %v9117_v1  ;;  %6152 = vmatprep.subr.bf16.mxu1 %v9118_v41  ;;  %v9128_v1 = vld [vmem:[#allocation33_spill] sm:$0xff]  ;;  %v9129_v41 = vld [vmem:[#allocation34_spill] sm:$0xff] }
 0x739   :  { %6122 = vmatpush1.bf16.msra.mxu0 %v9119_v35  ;;  %6154 = vmatpush1.bf16.msra.mxu1 %v9120_v21  ;;  %v9130_v35 = vld [vmem:[#allocation35_spill] sm:$0xff]  ;;  %v9131_v21 = vld [vmem:[#allocation36_spill] sm:$0xff] }
 0x73a   :  { %6124 = vmatprep.subr.bf16.mxu0 %v9121_v45  ;;  %6156 = vmatprep.subr.bf16.mxu1 %v9122_v36  ;;  %v9132_v45 = vld [vmem:[#allocation37_spill] sm:$0xff]  ;;  %v9133_v36 = vld [vmem:[#allocation38_spill] sm:$0xff] }
 0x73d   :  { %6126 = vmatpush1.bf16.msra.mxu0 %v9123_v33  ;;  %6158 = vmatpush1.bf16.msra.mxu1 %v9124_v40  ;;  %v9134_v33 = vld [vmem:[#allocation39_spill] sm:$0xff]  ;;  %v9135_v40 = vld [vmem:[#allocation40_spill] sm:$0xff] }
 0x73e   :  { %6128 = vmatprep.subr.bf16.mxu0 %v9125_v56  ;;  %6160 = vmatprep.subr.bf16.mxu1 %v9126_v34  ;;  %v9136_v56 = vld [vmem:[#allocation41_spill] sm:$0xff]  ;;  %v9137_v34 = vld [vmem:[#allocation42_spill] sm:$0xff] }
 0x741   :  { %6130 = vmatpush1.bf16.msra.mxu0 %v9127_v53  ;;  %6162 = vmatpush1.bf16.msra.mxu1 %v9128_v1  ;;  %v9138_v53 = vld [vmem:[#allocation43_spill] sm:$0xff]  ;;  %v9171_v1 = vld [vmem:[#allocation109_spill] sm:$0xff] }
 0x742   :  { %6132 = vmatprep.subr.bf16.mxu0 %v9129_v41  ;;  %6164 = vmatprep.subr.bf16.mxu1 %v9130_v35  ;;  %v9139_v41 = vld [vmem:[#allocation44_spill] sm:$0xff]  ;;  %v9140_v35 = vld [vmem:[#allocation45_spill] sm:$0xff] }
 0x745   :  { %6134 = vmatpush1.bf16.msra.mxu0 %v9131_v21  ;;  %6166 = vmatpush1.bf16.msra.mxu1 %v9132_v45  ;;  %v9141_v21 = vld [vmem:[#allocation46_spill] sm:$0xff]  ;;  %v9142_v45 = vld [vmem:[#allocation47_spill] sm:$0xff] }
 0x746   :  { %6136 = vmatprep.subr.bf16.mxu0 %v9133_v36  ;;  %6168 = vmatprep.subr.bf16.mxu1 %v9134_v33  ;;  %v9152_v33 = vld [vmem:[#allocation57_spill] sm:$0xff]  ;;  %v9153_v36 = vld [vmem:[#allocation58_spill] sm:$0xff] }
 0x749   :  { %6138 = vmatpush1.bf16.msra.mxu0 %v9135_v40  ;;  %6170 = vmatpush1.bf16.msra.mxu1 %v9136_v56  ;;  %v9143_v40 = vld [vmem:[#allocation48_spill] sm:$0xff]  ;;  %v9144_v56 = vld [vmem:[#allocation49_spill] sm:$0xff] }
 0x74a   :  { %6172 = vmatprep.subr.bf16.mxu0 %v9137_v34  ;;  %6204 = vmatprep.subr.bf16.mxu1 %v9138_v53  ;;  %v9145_v34 = vld [vmem:[#allocation50_spill] sm:$0xff]  ;;  %v9146_v53 = vld [vmem:[#allocation51_spill] sm:$0xff] }
 0x74c   :  { %3563 = vmatmul.mubr.f32.vlgmr.msra.gmra.mrb[12].mxu0 %v3185_v16  ;;  %3634 = vmatmul.mubr.f32.vlgmr.msra.gmra.mrb[12].mxu1 %v3185_v16  ;;  %v9147_v16 = vld [vmem:[#allocation52_spill] sm:$0xff] }
 0x74d   :  { %6174 = vmatpush1.bf16.msra.mxu0 %v9139_v41  ;;  %6206 = vmatpush1.bf16.msra.mxu1 %v9140_v35  ;;  %v9148_v41 = vld [vmem:[#allocation53_spill] sm:$0xff]  ;;  %v9149_v35 = vld [vmem:[#allocation54_spill] sm:$0xff] }
 0x74e   :  { %6176 = vmatprep.subr.bf16.mxu0 %v9141_v21  ;;  %6208 = vmatprep.subr.bf16.mxu1 %v9142_v45  ;;  %v9150_v21 = vld [vmem:[#allocation55_spill] sm:$0xff]  ;;  %v9151_v45 = vld [vmem:[#allocation56_spill] sm:$0xff] }
 0x74f   :  { %3732 = vmatprep.mubr.f32.mxu0 %v8810_v43  ;;  %3803 = vmatprep.mubr.f32.mxu1 %v8810_v43 }
 0x751   :  { %6178 = vmatpush1.bf16.msra.mxu0 %v9143_v40  ;;  %6210 = vmatpush1.bf16.msra.mxu1 %v9144_v56  ;;  %v9154_v40 = vld [vmem:[#allocation59_spill] sm:$0xff]  ;;  %v9155_v56 = vld [vmem:[#allocation60_spill] sm:$0xff] }
 0x752   :  { %6180 = vmatprep.subr.bf16.mxu0 %v9145_v34  ;;  %6212 = vmatprep.subr.bf16.mxu1 %v9146_v53  ;;  %v9156_v34 = vld [vmem:[#allocation61_spill] sm:$0xff]  ;;  %v9157_v53 = vld [vmem:[#allocation62_spill] sm:$0xff] }
 0x755   :  { %6182 = vmatpush1.bf16.msra.mxu0 %v9147_v16  ;;  %6214 = vmatpush1.bf16.msra.mxu1 %v9148_v41  ;;  %v9158_v16 = vld [vmem:[#allocation63_spill] sm:$0xff]  ;;  %v9159_v41 = vld [vmem:[#allocation64_spill] sm:$0xff] }
 0x756   :  { %6184 = vmatprep.subr.bf16.mxu0 %v9149_v35  ;;  %6216 = vmatprep.subr.bf16.mxu1 %v9150_v21  ;;  %v9160_v35 = vld [vmem:[#allocation65_spill] sm:$0xff]  ;;  %v9161_v21 = vld [vmem:[#allocation66_spill] sm:$0xff] }
 0x759   :  { %6186 = vmatpush1.bf16.msra.mxu0 %v9151_v45  ;;  %6218 = vmatpush1.bf16.msra.mxu1 %v9152_v33  ;;  %v9162_v45 = vld [vmem:[#allocation67_spill] sm:$0xff]  ;;  %v9163_v33 = vld [vmem:[#allocation68_spill] sm:$0xff] }
 0x75a   :  { %6188 = vmatprep.subr.bf16.mxu0 %v9153_v36  ;;  %6220 = vmatprep.subr.bf16.mxu1 %v9154_v40  ;;  %v9164_v36 = vld [vmem:[#allocation69_spill] sm:$0xff]  ;;  %v9165_v40 = vld [vmem:[#allocation70_spill] sm:$0xff] }
 0x75d   :  { %6190 = vmatpush1.bf16.msra.mxu0 %v9155_v56  ;;  %6222 = vmatpush1.bf16.msra.mxu1 %v9156_v34  ;;  %v9166_v56 = vld [vmem:[#allocation71_spill] sm:$0xff]  ;;  %v9167_v34 = vld [vmem:[#allocation72_spill] sm:$0xff] }
 0x75e   :  { %6192 = vmatprep.subr.bf16.mxu0 %v9157_v53  ;;  %6224 = vmatprep.subr.bf16.mxu1 %v9158_v16  ;;  %v9168_v53 = vld [vmem:[#allocation73_spill] sm:$0xff]  ;;  %v9169_v16 = vld [vmem:[#allocation74_spill] sm:$0xff] }
 0x761   :  { %6194 = vmatpush1.bf16.msra.mxu0 %v9159_v41  ;;  %6226 = vmatpush1.bf16.msra.mxu1 %v9160_v35  ;;  %v9170_v41 = vld [vmem:[#allocation75_spill] sm:$0xff] }
 0x762   :  { %6196 = vmatprep.subr.bf16.mxu0 %v9161_v21  ;;  %6228 = vmatprep.subr.bf16.mxu1 %v9162_v45 }
 0x765   :  { %6198 = vmatpush1.bf16.msra.mxu0 %v9163_v33  ;;  %6230 = vmatpush1.bf16.msra.mxu1 %v9164_v36 }
 0x766   :  { %6200 = vmatprep.subr.bf16.mxu0 %v9165_v40  ;;  %6232 = vmatprep.subr.bf16.mxu1 %v9166_v56 }
 0x769   :  { %6202 = vmatpush1.bf16.msra.mxu0 %v9167_v34  ;;  %6234 = vmatpush1.bf16.msra.mxu1 %v9168_v53 }
 0x76a   :  { %6236 = vmatprep.subr.bf16.mxu0 %v9169_v16  ;;  %6268 = vmatprep.subr.bf16.mxu1 %v9170_v41 }
 0x7ff   :  { %v3394_v35 = vpop.f32.mrb[26].mxu0  ;;  %v3465_v21 = vpop.f32.mrb[26].mxu1 }
 0x800   :  { %v3470_v45 = vadd.f32 %v3394_v35, %v9171_v1  ;;  %v3396_v49 = vpop.f32.mrb[27].mxu0  ;;  %v3467_v33 = vpop.f32.mrb[27].mxu1  ;;  %v3472_v53 = vadd.f32 %v3465_v21, %v8991_v26 }
 0x801   :  { %v3471_v36 = vadd.f32 %v3396_v49, %v7711_v57  ;;  %v3473_v34 = vadd.f32 %v3467_v33, %v8929_v51 }
 0x802   :  { %v4802_v27 = vmul.f32 -1.442695, %v3470_v45 }
 0x803   :  { %v4803_v40 = vmul.f32 -1.442695, %v3471_v36  ;;  %v4804_v56 = vmul.f32 -1.442695, %v3473_v34 }
 0x804   :  { %6838 = vpow2.f32 %v4802_v27 }
 0x805   :  { %6840 = vpow2.f32 %v4803_v40 }
 0x806   :  { %6842 = vpow2.f32 %v4804_v56 }
 0x807   :  { %6844 = vtanh.f32 %v3472_v53 }
 0x80e   :  { %v6839_v16 = vpop.eup %6838 }
 0x80f   :  { %v6841_v25 = vpop.eup %6840  ;;  %v3477_v41 = vadd.f32 1.0, %v6839_v16 }
 0x810   :  { %v3483_v37 = vadd.f32 1.0, %v6841_v25  ;;  %v6843_v35 = vpop.eup %6842 }
 0x811   :  { %6846 = vrcp.f32 %v3477_v41  ;;  %v6845_v1 = vpop.eup %6844  ;;  %v3490_v27 = vadd.f32 1.0, %v6843_v35 }
 0x812   :  { %6848 = vrcp.f32 %v3483_v37 }
 0x813   :  { %6850 = vrcp.f32 %v3490_v27 }
 0x81b   :  { %v6847_v49 = vpop.eup %6846 }
 0x81c   :  { %v6849_v45 = vpop.eup %6848  ;;  %v3494_v36 = vmul.f32 %v6847_v49, %v6845_v1 }
 0x81d   :  { %v3493_v40 = vmul.f32 %v6849_v45, %v8213_v55  ;;  %v6851_v55 = vpop.eup %6850 }
 0x81f   :  { %v8335_v33 = vadd.f32 %v3494_v36, %v3493_v40  ;;  %v3564_v34 = vpop.f32.mrb[12].mxu0  ;;  %v3635_v21 = vpop.f32.mrb[12].mxu1 }
 0x820   :  { %v6567_v16 = vadd.f32 %v3564_v34, %v8931_v59  ;;  %v3566_v56 = vpop.f32.mrb[13].mxu0  ;;  %v3637_v53 = vpop.f32.mrb[13].mxu1  ;;  %v6583_v45 = vadd.f32 %v3635_v21, %v7628_v20 }
 0x821   :  { %v6568_v25 = vadd.f32 %v3566_v56, %v8871_v18  ;;  %6852 = vtanh.f32 %v8335_v33  ;;  %v6584_v1 = vadd.f32 %v3637_v53, %v8872_v8 }
 0x822   :  { %v4805_v37 = vmul.f32 -1.442695, %v6567_v16 }
 0x823   :  { %v4806_v41 = vmul.f32 -1.442695, %v6568_v25  ;;  %v4807_v49 = vmul.f32 -1.442695, %v6584_v1 }
 0x824   :  { %6854 = vpow2.f32 %v4805_v37 }
 0x825   :  { %6856 = vpow2.f32 %v4806_v41 }
 0x826   :  { %6858 = vpow2.f32 %v4807_v49 }
 0x827   :  { %6860 = vtanh.f32 %v6583_v45  ;;  %v9174_v45 = vld [vmem:[#allocation20_spill] sm:$0xff] }
 0x82b   :  { %v6853_v35 = vpop.eup %6852 }
 0x82c   :  { %v8342_v36 = vmul.f32 %v6853_v35, %v6851_v55 }
 0x82e   :  { %v6855_v27 = vpop.eup %6854  ;;  %3733 = vmatmul.mubr.f32.vlgmr.msra.gmra.mrb[28].mxu0 %v8342_v36  ;;  %3804 = vmatmul.mubr.f32.vlgmr.msra.gmra.mrb[28].mxu1 %v8342_v36 }
 0x82f   :  { %v6857_v40 = vpop.eup %6856  ;;  %v3647_v34 = vadd.f32 1.0, %v6855_v27  ;;  %6238 = vmatpush1.bf16.msra.mxu0 %v8933_v14  ;;  %6270 = vmatpush1.bf16.msra.mxu1 %v8934_v5  ;;  %v9179_v27 = vld [vmem:[#allocation25_spill] sm:$0xff] }
 0x830   :  { %v3653_v16 = vadd.f32 1.0, %v6857_v40  ;;  %6240 = vmatprep.subr.bf16.mxu0 %v8935_v2  ;;  %6272 = vmatprep.subr.bf16.mxu1 %v8936_v61  ;;  %v6859_v21 = vpop.eup %6858  ;;  %v9180_v40 = vld [vmem:[#allocation26_spill] sm:$0xff] }
 0x831   :  { %6862 = vrcp.f32 %v3647_v34  ;;  %3874 = vmatprep.mubr.f32.mxu0 %v8810_v43  ;;  %3945 = vmatprep.mubr.f32.mxu1 %v8810_v43  ;;  %v6861_v56 = vpop.eup %6860  ;;  %v3660_v41 = vadd.f32 1.0, %v6859_v21  ;;  %v9183_v34 = vld [vmem:[#allocation29_spill] sm:$0xff]  ;;  %v9185_v21 = vld [vmem:[#allocation31_spill] sm:$0xff] }
 0x832   :  { %6864 = vrcp.f32 %v3653_v16  ;;  %v9184_v16 = vld [vmem:[#allocation30_spill] sm:$0xff] }
 0x833   :  { %6242 = vmatpush1.bf16.msra.mxu0 %v8993_v44  ;;  %6274 = vmatpush1.bf16.msra.mxu1 %v8994_v62  ;;  %6866 = vrcp.f32 %v3660_v41  ;;  %v9190_v41 = vld [vmem:[#allocation36_spill] sm:$0xff] }
 0x834   :  { %6244 = vmatprep.subr.bf16.mxu0 %v8995_v12  ;;  %6276 = vmatprep.subr.bf16.mxu1 %v8996_v7 }
 0x837   :  { %6246 = vmatpush1.bf16.msra.mxu0 %v8997_v4  ;;  %6278 = vmatpush1.bf16.msra.mxu1 %v9053_v60 }
 0x838   :  { %6248 = vmatprep.subr.bf16.mxu0 %v8999_v30  ;;  %6280 = vmatprep.subr.bf16.mxu1 %v9000_v38 }
 0x83b   :  { %v6863_v53 = vpop.eup %6862  ;;  %6250 = vmatpush1.bf16.msra.mxu0 %v9001_v17  ;;  %6282 = vmatpush1.bf16.msra.mxu1 %v8887_v9 }
 0x83c   :  { %v6865_v25 = vpop.eup %6864  ;;  %v3664_v37 = vmul.f32 %v6863_v53, %v6861_v56  ;;  %6252 = vmatprep.subr.bf16.mxu0 %v8888_v39  ;;  %6284 = vmatprep.subr.bf16.mxu1 %v8889_v10  ;;  %v9186_v56 = vld [vmem:[#allocation32_spill] sm:$0xff]  ;;  %v9187_v53 = vld [vmem:[#allocation33_spill] sm:$0xff] }
 0x83d   :  { %v3663_v1 = vmul.f32 %v6865_v25, %v8243_v50  ;;  %v6867_v50 = vpop.eup %6866  ;;  %v9188_v25 = vld [vmem:[#allocation34_spill] sm:$0xff] }
 0x83f   :  { %v8365_v55 = vadd.f32 %v3664_v37, %v3663_v1  ;;  %6254 = vmatpush1.bf16.msra.mxu0 %v8946_v54  ;;  %6286 = vmatpush1.bf16.msra.mxu1 %v8947_v13  ;;  %v9189_v37 = vld [vmem:[#allocation35_spill] sm:$0xff]  ;;  %v9191_v1 = vld [vmem:[#allocation37_spill] sm:$0xff] }
 0x840   :  { %6256 = vmatprep.subr.bf16.mxu0 %v8948_v58  ;;  %6288 = vmatprep.subr.bf16.mxu1 %v8949_v3 }
 0x841   :  { %6868 = vtanh.f32 %v8365_v55 }
 0x843   :  { %6258 = vmatpush1.bf16.msra.mxu0 %v8950_v29  ;;  %6290 = vmatpush1.bf16.msra.mxu1 %v8951_v48 }
 0x844   :  { %6260 = vmatprep.subr.bf16.mxu0 %v8952_v52  ;;  %6292 = vmatprep.subr.bf16.mxu1 %v8897_v0 }
 0x847   :  { %6262 = vmatpush1.bf16.msra.mxu0 %v8898_v63  ;;  %6294 = vmatpush1.bf16.msra.mxu1 %v8899_v6 }
 0x848   :  { %6264 = vmatprep.subr.bf16.mxu0 %v8900_v22  ;;  %6296 = vmatprep.subr.bf16.mxu1 %v8901_v42 }
 0x84b   :  { %v6869_v35 = vpop.eup %6868  ;;  %6266 = vmatpush1.bf16.msra.mxu0 %v8902_v47  ;;  %6298 = vmatpush1.bf16.msra.mxu1 %v8903_v46 }
 0x84c   :  { %6300 = vmatprep.subr.bf16.mxu0 %v8904_v11  ;;  %6332 = vmatprep.subr.bf16.mxu1 %v8905_v31  ;;  %v3667_v49 = vmul.f32 %v6869_v35, %v6867_v50  ;;  %v9172_v11 = vld [vmem:[#allocation18_spill] sm:$0xff]  ;;  %v9173_v31 = vld [vmem:[#allocation19_spill] sm:$0xff] }
 0x84d   :  { %v9192_v50 = vld [vmem:[#allocation38_spill] sm:$0xff]  ;;  %v9193_v35 = vld [vmem:[#allocation39_spill] sm:$0xff] }
 0x84e   :  { %3875 = vmatmul.mubr.f32.vlgmr.msra.gmra.mrb[28].mxu0 %v3667_v49  ;;  %3946 = vmatmul.mubr.f32.vlgmr.msra.gmra.mrb[28].mxu1 %v3667_v49 }
 0x84f   :  { %6302 = vmatpush1.bf16.msra.mxu0 %v7257_v15  ;;  %6334 = vmatpush1.bf16.msra.mxu1 %v7266_v19  ;;  %v9175_v15 = vld [vmem:[#allocation21_spill] sm:$0xff]  ;;  %v9176_v19 = vld [vmem:[#allocation22_spill] sm:$0xff] }
 0x850   :  { %6304 = vmatprep.subr.bf16.mxu0 %v7269_v23  ;;  %6336 = vmatprep.subr.bf16.mxu1 %v7271_v24  ;;  %v9177_v23 = vld [vmem:[#allocation23_spill] sm:$0xff]  ;;  %v9178_v24 = vld [vmem:[#allocation24_spill] sm:$0xff] }
 0x851   :  { %4044 = vmatprep.mubr.f32.mxu0 %v8810_v43  ;;  %4115 = vmatprep.mubr.f32.mxu1 %v8810_v43 }
 0x853   :  { %6306 = vmatpush1.bf16.msra.mxu0 %v7275_v28  ;;  %6338 = vmatpush1.bf16.msra.mxu1 %v7282_v32  ;;  %v9181_v28 = vld [vmem:[#allocation27_spill] sm:$0xff]  ;;  %v9182_v32 = vld [vmem:[#allocation28_spill] sm:$0xff] }
 0x854   :  { %6308 = vmatprep.subr.bf16.mxu0 %v9172_v11  ;;  %6340 = vmatprep.subr.bf16.mxu1 %v9173_v31  ;;  %v9194_v11 = vld [vmem:[#allocation40_spill] sm:$0xff]  ;;  %v9195_v31 = vld [vmem:[#allocation41_spill] sm:$0xff] }
 0x857   :  { %6310 = vmatpush1.bf16.msra.mxu0 %v9174_v45  ;;  %6342 = vmatpush1.bf16.msra.mxu1 %v9175_v15  ;;  %v9196_v45 = vld [vmem:[#allocation42_spill] sm:$0xff]  ;;  %v9197_v15 = vld [vmem:[#allocation43_spill] sm:$0xff] }
 0x858   :  { %6312 = vmatprep.subr.bf16.mxu0 %v9176_v19  ;;  %6344 = vmatprep.subr.bf16.mxu1 %v9177_v23  ;;  %v9198_v19 = vld [vmem:[#allocation44_spill] sm:$0xff]  ;;  %v9199_v23 = vld [vmem:[#allocation45_spill] sm:$0xff] }
 0x85b   :  { %6314 = vmatpush1.bf16.msra.mxu0 %v9178_v24  ;;  %6346 = vmatpush1.bf16.msra.mxu1 %v9179_v27  ;;  %v9200_v24 = vld [vmem:[#allocation46_spill] sm:$0xff]  ;;  %v9201_v27 = vld [vmem:[#allocation47_spill] sm:$0xff] }
 0x85c   :  { %6316 = vmatprep.subr.bf16.mxu0 %v9180_v40  ;;  %6348 = vmatprep.subr.bf16.mxu1 %v9181_v28  ;;  %v9202_v40 = vld [vmem:[#allocation48_spill] sm:$0xff]  ;;  %v9203_v28 = vld [vmem:[#allocation49_spill] sm:$0xff] }
 0x85f   :  { %6318 = vmatpush1.bf16.msra.mxu0 %v9182_v32  ;;  %6350 = vmatpush1.bf16.msra.mxu1 %v9183_v34  ;;  %v9204_v32 = vld [vmem:[#allocation50_spill] sm:$0xff]  ;;  %v9205_v34 = vld [vmem:[#allocation51_spill] sm:$0xff] }
 0x860   :  { %6320 = vmatprep.subr.bf16.mxu0 %v9184_v16  ;;  %6352 = vmatprep.subr.bf16.mxu1 %v9185_v21  ;;  %v9207_v16 = vld [vmem:[#allocation53_spill] sm:$0xff]  ;;  %v9208_v21 = vld [vmem:[#allocation54_spill] sm:$0xff] }
 0x863   :  { %6322 = vmatpush1.bf16.msra.mxu0 %v9186_v56  ;;  %6354 = vmatpush1.bf16.msra.mxu1 %v9187_v53  ;;  %v9209_v56 = vld [vmem:[#allocation55_spill] sm:$0xff]  ;;  %v9210_v53 = vld [vmem:[#allocation56_spill] sm:$0xff] }
 0x864   :  { %6324 = vmatprep.subr.bf16.mxu0 %v9188_v25  ;;  %6356 = vmatprep.subr.bf16.mxu1 %v9189_v37  ;;  %v9211_v25 = vld [vmem:[#allocation57_spill] sm:$0xff]  ;;  %v9212_v37 = vld [vmem:[#allocation58_spill] sm:$0xff] }
 0x867   :  { %6326 = vmatpush1.bf16.msra.mxu0 %v9190_v41  ;;  %6358 = vmatpush1.bf16.msra.mxu1 %v9191_v1  ;;  %v9213_v41 = vld [vmem:[#allocation59_spill] sm:$0xff]  ;;  %v9214_v1 = vld [vmem:[#allocation60_spill] sm:$0xff] }
 0x868   :  { %6328 = vmatprep.subr.bf16.mxu0 %v9192_v50  ;;  %6360 = vmatprep.subr.bf16.mxu1 %v9193_v35  ;;  %v9215_v50 = vld [vmem:[#allocation61_spill] sm:$0xff]  ;;  %v9216_v35 = vld [vmem:[#allocation62_spill] sm:$0xff] }
 0x86b   :  { %6330 = vmatpush1.bf16.msra.mxu0 %v9194_v11  ;;  %6362 = vmatpush1.bf16.msra.mxu1 %v9195_v31  ;;  %v9217_v11 = vld [vmem:[#allocation63_spill] sm:$0xff]  ;;  %v9218_v31 = vld [vmem:[#allocation64_spill] sm:$0xff] }
 0x86c   :  { %6364 = vmatprep.subr.bf16.mxu0 %v9196_v45  ;;  %6396 = vmatprep.subr.bf16.mxu1 %v9197_v15  ;;  %v9219_v45 = vld [vmem:[#allocation65_spill] sm:$0xff]  ;;  %v9220_v15 = vld [vmem:[#allocation66_spill] sm:$0xff] }
 0x86e   :  { %4045 = vmatmul.mubr.f32.vlgmr.msra.gmra.mrb[14].mxu0 %v3667_v49  ;;  %4116 = vmatmul.mubr.f32.vlgmr.msra.gmra.mrb[14].mxu1 %v3667_v49  ;;  %v9206_v49 = vld [vmem:[#allocation52_spill] sm:$0xff] }
 0x86f   :  { %6366 = vmatpush1.bf16.msra.mxu0 %v9198_v19  ;;  %6398 = vmatpush1.bf16.msra.mxu1 %v9199_v23  ;;  %v9221_v19 = vld [vmem:[#allocation67_spill] sm:$0xff]  ;;  %v9222_v23 = vld [vmem:[#allocation68_spill] sm:$0xff] }
 0x870   :  { %6368 = vmatprep.subr.bf16.mxu0 %v9200_v24  ;;  %6400 = vmatprep.subr.bf16.mxu1 %v9201_v27  ;;  %v9223_v24 = vld [vmem:[#allocation69_spill] sm:$0xff]  ;;  %v9224_v27 = vld [vmem:[#allocation70_spill] sm:$0xff] }
 0x871   :  { %4214 = vmatprep.mubr.f32.mxu0 %v8810_v43  ;;  %4285 = vmatprep.mubr.f32.mxu1 %v8810_v43 }
 0x873   :  { %6370 = vmatpush1.bf16.msra.mxu0 %v9202_v40  ;;  %6402 = vmatpush1.bf16.msra.mxu1 %v9203_v28  ;;  %v9225_v40 = vld [vmem:[#allocation71_spill] sm:$0xff]  ;;  %v9226_v28 = vld [vmem:[#allocation72_spill] sm:$0xff] }
 0x874   :  { %6372 = vmatprep.subr.bf16.mxu0 %v9204_v32  ;;  %6404 = vmatprep.subr.bf16.mxu1 %v9205_v34  ;;  %v9227_v32 = vld [vmem:[#allocation73_spill] sm:$0xff]  ;;  %v9228_v34 = vld [vmem:[#allocation74_spill] sm:$0xff] }
 0x877   :  { %6374 = vmatpush1.bf16.msra.mxu0 %v9206_v49  ;;  %6406 = vmatpush1.bf16.msra.mxu1 %v9207_v16  ;;  %v9229_v49 = vld [vmem:[#allocation75_spill] sm:$0xff] }
 0x878   :  { %6376 = vmatprep.subr.bf16.mxu0 %v9208_v21  ;;  %6408 = vmatprep.subr.bf16.mxu1 %v9209_v56  ;;  %v9230_v56 = vld [vmem:[#allocation109_spill] sm:$0xff] }
 0x87b   :  { %6378 = vmatpush1.bf16.msra.mxu0 %v9210_v53  ;;  %6410 = vmatpush1.bf16.msra.mxu1 %v9211_v25 }
 0x87c   :  { %6380 = vmatprep.subr.bf16.mxu0 %v9212_v37  ;;  %6412 = vmatprep.subr.bf16.mxu1 %v9213_v41 }
 0x87f   :  { %6382 = vmatpush1.bf16.msra.mxu0 %v9214_v1  ;;  %6414 = vmatpush1.bf16.msra.mxu1 %v9215_v50 }
 0x880   :  { %6384 = vmatprep.subr.bf16.mxu0 %v9216_v35  ;;  %6416 = vmatprep.subr.bf16.mxu1 %v9217_v11 }
 0x883   :  { %6386 = vmatpush1.bf16.msra.mxu0 %v9218_v31  ;;  %6418 = vmatpush1.bf16.msra.mxu1 %v9219_v45 }
 0x884   :  { %6388 = vmatprep.subr.bf16.mxu0 %v9220_v15  ;;  %6420 = vmatprep.subr.bf16.mxu1 %v9221_v19 }
 0x887   :  { %6390 = vmatpush1.bf16.msra.mxu0 %v9222_v23  ;;  %6422 = vmatpush1.bf16.msra.mxu1 %v9223_v24 }
 0x888   :  { %6392 = vmatprep.subr.bf16.mxu0 %v9224_v27  ;;  %6424 = vmatprep.subr.bf16.mxu1 %v9225_v40 }
 0x88b   :  { %6394 = vmatpush1.bf16.msra.mxu0 %v9226_v28  ;;  %6426 = vmatpush1.bf16.msra.mxu1 %v9227_v32 }
 0x88c   :  { %6428 = vmatprep.subr.bf16.mxu0 %v9228_v34  ;;  %6460 = vmatprep.subr.bf16.mxu1 %v9229_v49 }
 0x921   :  { %v3876_v16 = vpop.f32.mrb[28].mxu0  ;;  %v3947_v21 = vpop.f32.mrb[28].mxu1 }
 0x922   :  { %v3952_v53 = vadd.f32 %v3876_v16, %v9230_v56  ;;  %v3878_v25 = vpop.f32.mrb[29].mxu0  ;;  %v3949_v37 = vpop.f32.mrb[29].mxu1  ;;  %v3954_v31 = vadd.f32 %v3947_v21, %v8991_v26 }
 0x923   :  { %v3953_v41 = vadd.f32 %v3878_v25, %v7711_v57  ;;  %v3955_v35 = vadd.f32 %v3949_v37, %v8929_v51 }
 0x924   :  { %v4808_v1 = vmul.f32 -1.442695, %v3952_v53 }
 0x925   :  { %v4809_v50 = vmul.f32 -1.442695, %v3953_v41  ;;  %v4810_v11 = vmul.f32 -1.442695, %v3955_v35 }
 0x926   :  { %6870 = vpow2.f32 %v4808_v1 }
 0x927   :  { %6872 = vpow2.f32 %v4809_v50 }
 0x928   :  { %6874 = vpow2.f32 %v4810_v11 }
 0x929   :  { %6876 = vtanh.f32 %v3954_v31 }
 0x930   :  { %v6871_v45 = vpop.eup %6870 }
 0x931   :  { %v6873_v15 = vpop.eup %6872  ;;  %v3959_v19 = vadd.f32 1.0, %v6871_v45 }
 0x932   :  { %v3965_v23 = vadd.f32 1.0, %v6873_v15  ;;  %v6875_v24 = vpop.eup %6874 }
 0x933   :  { %6878 = vrcp.f32 %v3959_v19  ;;  %v6877_v27 = vpop.eup %6876  ;;  %v3972_v34 = vadd.f32 1.0, %v6875_v24  ;;  %v4476_v24 = vld [vmem:[#allocation8 + $0x70] sm:$0xff] }
 0x934   :  { %6880 = vrcp.f32 %v3965_v23 }
 0x935   :  { %6882 = vrcp.f32 %v3972_v34  ;;  %v9234_v34 = vld [vmem:[#allocation90_spill] sm:$0xff] }
 0x93d   :  { %v6879_v40 = vpop.eup %6878 }
 0x93e   :  { %v6881_v28 = vpop.eup %6880  ;;  %v3976_v32 = vmul.f32 %v6879_v40, %v6877_v27  ;;  %v4477_v27 = vld [vmem:[#allocation8 + $0x78] sm:$0xff] }
 0x93f   :  { %v3975_v49 = vmul.f32 %v6881_v28, %v8335_v33  ;;  %v6883_v33 = vpop.eup %6882  ;;  %v6519_v40 = vpack.c.bf16 %v4477_v27, %v4476_v24  ;;  %v9232_v28 = vld [vmem:[#allocation108_spill] sm:$0xff] }
 0x941   :  { %v8457_v16 = vadd.f32 %v3976_v32, %v3975_v49  ;;  %v4046_v53 = vpop.f32.mrb[14].mxu0  ;;  %v4117_v21 = vpop.f32.mrb[14].mxu1  ;;  %v9233_v32 = vld [vmem:[#allocation89_spill] sm:$0xff]  ;;  %v9235_v49 = vld [vmem:[#allocation91_spill] sm:$0xff] }
 0x942   :  { %v6569_v25 = vadd.f32 %v4046_v53, %v8931_v59  ;;  %v4048_v37 = vpop.f32.mrb[15].mxu0  ;;  %v4119_v41 = vpop.f32.mrb[15].mxu1  ;;  %v6585_v15 = vadd.f32 %v4117_v21, %v7628_v20  ;;  %v4598_v53 = vld [vmem:[#allocation10] sm:$0xff]  ;;  %v4599_v21 = vld [vmem:[#allocation10 + $0x8] sm:$0xff] }
 0x943   :  { %v6570_v1 = vadd.f32 %v4048_v37, %v8871_v18  ;;  %6884 = vtanh.f32 %v8457_v16  ;;  %v6586_v11 = vadd.f32 %v4119_v41, %v8872_v8  ;;  %v4600_v37 = vld [vmem:[#allocation10 + $0x10] sm:$0xff]  ;;  %v4601_v41 = vld [vmem:[#allocation10 + $0x18] sm:$0xff] }
 0x944   :  { %v4811_v50 = vmul.f32 -1.442695, %v6569_v25  ;;  %v6523_v25 = vpack.c.bf16 %v4599_v21, %v4598_v53 }
 0x945   :  { %v4812_v35 = vmul.f32 -1.442695, %v6570_v1  ;;  %v4813_v45 = vmul.f32 -1.442695, %v6586_v11  ;;  %v6527_v1 = vpack.c.bf16 %v4601_v41, %v4600_v37 }
 0x946   :  { %6886 = vpow2.f32 %v4811_v50  ;;  %v4602_v50 = vld [vmem:[#allocation10 + $0x20] sm:$0xff] }
 0x947   :  { %6888 = vpow2.f32 %v4812_v35  ;;  %v4603_v35 = vld [vmem:[#allocation10 + $0x28] sm:$0xff] }
 0x948   :  { %6890 = vpow2.f32 %v4813_v45  ;;  %v6531_v11 = vpack.c.bf16 %v4603_v35, %v4602_v50  ;;  %v4606_v45 = vld [vmem:[#allocation10 + $0x40] sm:$0xff] }
 0x949   :  { %6892 = vtanh.f32 %v6585_v15  ;;  %v4607_v15 = vld [vmem:[#allocation10 + $0x48] sm:$0xff] }
 0x94d   :  { %v6885_v31 = vpop.eup %6884 }
 0x94e   :  { %v8464_v19 = vmul.f32 %v6885_v31, %v6883_v33  ;;  %v4604_v33 = vld [vmem:[#allocation10 + $0x30] sm:$0xff]  ;;  %v4605_v31 = vld [vmem:[#allocation10 + $0x38] sm:$0xff] }
 0x950   :  { %v6887_v59 = vpop.eup %6886  ;;  %4215 = vmatmul.mubr.f32.vlgmr.msra.gmra.mrb[30].mxu0 %v8464_v19  ;;  %4286 = vmatmul.mubr.f32.vlgmr.msra.gmra.mrb[30].mxu1 %v8464_v19 }
 0x951   :  { %v6889_v18 = vpop.eup %6888  ;;  %v4129_v23 = vadd.f32 1.0, %v6887_v59  ;;  %6430 = vmatpush1.bf16.msra.mxu0 %v8933_v14  ;;  %6462 = vmatpush1.bf16.msra.mxu1 %v8934_v5  ;;  %v4608_v59 = vld [vmem:[#allocation10 + $0x50] sm:$0xff] }
 0x952   :  { %v4135_v8 = vadd.f32 1.0, %v6889_v18  ;;  %6432 = vmatprep.subr.bf16.mxu0 %v8935_v2  ;;  %6464 = vmatprep.subr.bf16.mxu1 %v8936_v61  ;;  %v6891_v20 = vpop.eup %6890  ;;  %v4609_v18 = vld [vmem:[#allocation10 + $0x58] sm:$0xff] }
 0x953   :  { %6894 = vrcp.f32 %v4129_v23  ;;  %4356 = vmatprep.mubr.f32.mxu0 %v8810_v43  ;;  %4427 = vmatprep.mubr.f32.mxu1 %v8810_v43  ;;  %v6893_v14 = vpop.eup %6892  ;;  %v4142_v61 = vadd.f32 1.0, %v6891_v20  ;;  %v6543_v23 = vpack.c.bf16 %v4609_v18, %v4608_v59  ;;  %v4611_v20 = vld [vmem:[#allocation10 + $0x68] sm:$0xff] }
 0x954   :  { %6896 = vrcp.f32 %v4135_v8  ;;  %v4610_v8 = vld [vmem:[#allocation10 + $0x60] sm:$0xff] }
 0x955   :  { %6434 = vmatpush1.bf16.msra.mxu0 %v8993_v44  ;;  %6466 = vmatpush1.bf16.msra.mxu1 %v8994_v62  ;;  %6898 = vrcp.f32 %v4142_v61 }
 0x956   :  { %6436 = vmatprep.subr.bf16.mxu0 %v8995_v12  ;;  %6468 = vmatprep.subr.bf16.mxu1 %v8996_v7  ;;  %v4471_v7 = vld [vmem:[#allocation8 + $0x48] sm:$0xff] }
 0x959   :  { %6438 = vmatpush1.bf16.msra.mxu0 %v8997_v4  ;;  %6470 = vmatpush1.bf16.msra.mxu1 %v9053_v60  ;;  %v4472_v4 = vld [vmem:[#allocation8 + $0x50] sm:$0xff]  ;;  %v4475_v60 = vld [vmem:[#allocation8 + $0x68] sm:$0xff] }
 0x95a   :  { %6440 = vmatprep.subr.bf16.mxu0 %v8999_v30  ;;  %6472 = vmatprep.subr.bf16.mxu1 %v9000_v38  ;;  %v4473_v30 = vld [vmem:[#allocation8 + $0x58] sm:$0xff] }
 0x95b   :  { %v6511_v38 = vpack.c.bf16 %v4473_v30, %v4472_v4 }
 0x95d   :  { %v6895_v43 = vpop.eup %6894  ;;  %6442 = vmatpush1.bf16.msra.mxu0 %v9001_v17  ;;  %6474 = vmatpush1.bf16.msra.mxu1 %v8887_v9  ;;  %v4463_v9 = vld [vmem:[#allocation8 + $0x8] sm:$0xff]  ;;  %v4474_v17 = vld [vmem:[#allocation8 + $0x60] sm:$0xff] }
 0x95e   :  { %v6897_v5 = vpop.eup %6896  ;;  %v4146_v2 = vmul.f32 %v6895_v43, %v6893_v14  ;;  %6444 = vmatprep.subr.bf16.mxu0 %v8888_v39  ;;  %6476 = vmatprep.subr.bf16.mxu1 %v8889_v10  ;;  %v4462_v39 = vld [vmem:[#allocation8] sm:$0xff]  ;;  %v6547_v14 = vpack.c.bf16 %v4611_v20, %v4610_v8  ;;  %v4612_v43 = vld [vmem:[#allocation10 + $0x70] sm:$0xff] }
 0x95f   :  { %v4145_v44 = vmul.f32 %v6897_v5, %v8365_v55  ;;  %v6491_v10 = vpack.c.bf16 %v4463_v9, %v4462_v39  ;;  %v6515_v55 = vpack.c.bf16 %v4475_v60, %v4474_v17  ;;  %v4613_v5 = vld [vmem:[#allocation10 + $0x78] sm:$0xff] }
 0x961   :  { %v4147_v62 = vadd.f32 %v4146_v2, %v4145_v44  ;;  %6446 = vmatpush1.bf16.msra.mxu0 %v8946_v54  ;;  %6478 = vmatpush1.bf16.msra.mxu1 %v8947_v13  ;;  %v4465_v54 = vld [vmem:[#allocation8 + $0x18] sm:$0xff]  ;;  %v6899_v13 = vpop.eup %6898  ;;  %v6551_v2 = vpack.c.bf16 %v4613_v5, %v4612_v43 }
 0x962   :  { %6448 = vmatprep.subr.bf16.mxu0 %v8948_v58  ;;  %6480 = vmatprep.subr.bf16.mxu1 %v8949_v3  ;;  %v4464_v58 = vld [vmem:[#allocation8 + $0x10] sm:$0xff] }
 0x963   :  { %6900 = vtanh.f32 %v4147_v62 }
 0x965   :  { %6450 = vmatpush1.bf16.msra.mxu0 %v8950_v29  ;;  %6482 = vmatpush1.bf16.msra.mxu1 %v8951_v48  ;;  %v6495_v29 = vpack.c.bf16 %v4465_v54, %v4464_v58  ;;  %v4466_v48 = vld [vmem:[#allocation8 + $0x20] sm:$0xff] }
 0x966   :  { %6452 = vmatprep.subr.bf16.mxu0 %v8952_v52  ;;  %6484 = vmatprep.subr.bf16.mxu1 %v8897_v0  ;;  %v4469_v52 = vld [vmem:[#allocation8 + $0x38] sm:$0xff] }
 0x969   :  { %6454 = vmatpush1.bf16.msra.mxu0 %v8898_v63  ;;  %6486 = vmatpush1.bf16.msra.mxu1 %v8899_v6  ;;  %v4467_v63 = vld [vmem:[#allocation8 + $0x28] sm:$0xff]  ;;  %v9231_v6 = vld [vmem:[#allocation107_spill] sm:$0xff] }
 0x96a   :  { %6456 = vmatprep.subr.bf16.mxu0 %v8900_v22  ;;  %6488 = vmatprep.subr.bf16.mxu1 %v8901_v42  ;;  %v6499_v22 = vpack.c.bf16 %v4467_v63, %v4466_v48  ;;  %v4468_v42 = vld [vmem:[#allocation8 + $0x30] sm:$0xff] }
 0x96b   :  { %v6503_v12 = vpack.c.bf16 %v4469_v52, %v4468_v42 }
 0x96d   :  { %v6901_v3 = vpop.eup %6900  ;;  %6458 = vmatpush1.bf16.msra.mxu0 %v8902_v47  ;;  %6490 = vmatpush1.bf16.msra.mxu1 %v8903_v46  ;;  %v4470_v47 = vld [vmem:[#allocation8 + $0x40] sm:$0xff] }
 0x96e   :  { %v4149_v0 = vmul.f32 %v6901_v3, %v6899_v13  ;;  %6492 = vmatprep.subr.bf16.mxu0 %v6491_v10  ;;  %v6507_v46 = vpack.c.bf16 %v4471_v7, %v4470_v47  ;;  %6524 = vmatprep.subr.bf16.mxu1 %v6523_v25 }
 0x970   :  { %4357 = vmatmul.mubr.f32.vlgmr.msra.gmra.mrb[30].mxu0 %v4149_v0  ;;  %4428 = vmatmul.mubr.f32.vlgmr.msra.gmra.mrb[30].mxu1 %v4149_v0 }
 0x971   :  { %6494 = vmatpush3.bf16.msra.mxu0 %v6491_v10  ;;  %4899 = vmatprep.mubr.f32.mxu0 %v9231_v6 }
 0x972   :  { %6496 = vmatprep.subr.bf16.mxu0 %v6495_v29  ;;  %6526 = vmatpush3.bf16.msra.mxu1 %v6523_v25 }
 0x973   :  { %6528 = vmatprep.subr.bf16.mxu1 %v6527_v1 }
 0x975   :  { %6498 = vmatpush3.bf16.msra.mxu0 %v6495_v29 }
 0x976   :  { %6500 = vmatprep.subr.bf16.mxu0 %v6499_v22  ;;  %6530 = vmatpush3.bf16.msra.mxu1 %v6527_v1  ;;  %v4818_v1 = vld [vmem:[%s8544_s10] ss:$0 sm:$0xff]  ;;  %s7084_s10 = smov [#allocation11]  }
 0x977   :  { %6532 = vmatprep.subr.bf16.mxu1 %v6531_v11  ;;  %s4739_s13 = sshll.u32 %s7084_s10, 4  ;;  %s4740_s13 = int_to_ptr.vmem [resolvable:$true] %s4739_s13 }
 0x978   :  { %s7044_s14 = scalar_lea.vmem %s4740_s13, 1024  ;;  %p7049_p13 = scmp.lt.s32.totalorder %s4740_s13, %s4740_s13 }
 0x979   :  { %6502 = vmatpush3.bf16.msra.mxu0 %v6499_v22  ;;  %p7045_p12 = scmp.ne.s32.totalorder %s4740_s13, %s7044_s14  ;;  %p7050_p0 = scmp.lt.s32.totalorder %s7044_s14, %s7044_s14 }
 0x97a   :  { %6504 = vmatprep.subr.bf16.mxu0 %v6503_v12  ;;  %6534 = vmatpush3.bf16.msra.mxu1 %v6531_v11 }
 0x97b   :  { %p7051_p1 = por %p7050_p0, %p7049_p13 }
 0x97d   :  { %6506 = vmatpush3.bf16.msra.mxu0 %v6503_v12  ;;  %p7052_p2 = pnand %p7051_p1, %p7045_p12 }
 0x97e   :  { %6508 = vmatprep.subr.bf16.mxu0 %v6507_v46 }
 0x981   :  { %6510 = vmatpush3.bf16.msra.mxu0 %v6507_v46 }
 0x982   :  { %6512 = vmatprep.subr.bf16.mxu0 %v6511_v38 }
 0x985   :  { %6514 = vmatpush3.bf16.msra.mxu0 %v6511_v38 }
 0x986   :  { %6516 = vmatprep.subr.bf16.mxu0 %v6515_v55 }
 0x989   :  { %6518 = vmatpush3.bf16.msra.mxu0 %v6515_v55 }
 0x98a   :  { %6520 = vmatprep.subr.bf16.mxu0 %v6519_v40 }
 0x98d   :  { %6522 = vmatpush3.bf16.msra.mxu0 %v6519_v40 }
 0x990   :  { %4900 = vmatmul.mubr.f32.vlgmr.msra.gmra.mrb[32].mxu0 %v9232_v28 }
 0x991   :  { %4902 = vmatprep.mubr.f32.mxu0 %v9233_v32 }
 0x994   :  { %4903 = vmatmul.mubr.f32.gmra.mrb[34].mxu0 %v9234_v34 }
 0x995   :  { %4905 = vmatprep.mubr.f32.mxu0 %v9235_v49 }
 0x998   :  { %4906 = vmatmul.mubr.f32.gmra.mrb[36].mxu0 %v8342_v36  ;;  %v6535_v36 = vpack.c.bf16 %v4605_v31, %v4604_v33 }
 0x999   :  { %4908 = vmatprep.mubr.f32.mxu0 %v8464_v19  ;;  %v6539_v19 = vpack.c.bf16 %v4607_v15, %v4606_v45 }
 0x99a   :  { %6536 = vmatprep.subr.bf16.mxu1 %v6535_v36 }
 0x99b   :  { %6538 = vmatpush3.bf16.msra.mxu1 %v6535_v36 }
 0x99c   :  { %6540 = vmatprep.subr.bf16.mxu1 %v6539_v19 }
 0x99f   :  { %6542 = vmatpush3.bf16.msra.mxu1 %v6539_v19 }
 0x9a0   :  { %6544 = vmatprep.subr.bf16.mxu1 %v6543_v23 }
 0x9a3   :  { %6546 = vmatpush3.bf16.msra.mxu1 %v6543_v23 }
 0x9a4   :  { %6548 = vmatprep.subr.bf16.mxu1 %v6547_v14 }
 0x9a7   :  { %6550 = vmatpush3.bf16.msra.mxu1 %v6547_v14 }
 0x9a8   :  { %6552 = vmatprep.subr.bf16.mxu1 %v6551_v2 }
 0x9ab   :  { %6554 = vmatpush3.bf16.msra.mxu1 %v6551_v2 }
 0xa43   :  { %v4358_v61 = vpop.f32.mrb[30].mxu0  ;;  %v4429_v44 = vpop.f32.mrb[30].mxu1 }
 0xa44   :  { %v4434_v62 = vadd.f32 %v4358_v61, %v9230_v56  ;;  %v4360_v39 = vpop.f32.mrb[31].mxu0  ;;  %v4431_v9 = vpop.f32.mrb[31].mxu1  ;;  %v4436_v0 = vadd.f32 %v4429_v44, %v8991_v26  ;;  %v4817_v26 = vld [vmem:[%s8542_s8] ss:$0 sm:$0xff] }
 0xa45   :  { %v4435_v10 = vadd.f32 %v4360_v39, %v7711_v57  ;;  %v4437_v13 = vadd.f32 %v4431_v9, %v8929_v51 }
 0xa46   :  { %v4814_v58 = vmul.f32 -1.442695, %v4434_v62 }
 0xa47   :  { %v4815_v54 = vmul.f32 -1.442695, %v4435_v10  ;;  %v4816_v3 = vmul.f32 -1.442695, %v4437_v13 }
 0xa48   :  { %6902 = vpow2.f32 %v4814_v58 }
 0xa49   :  { %6904 = vpow2.f32 %v4815_v54 }
 0xa4a   :  { %6906 = vpow2.f32 %v4816_v3 }
 0xa4b   :  { %6908 = vtanh.f32 %v4436_v0 }
 0xa52   :  { %v6903_v29 = vpop.eup %6902 }
 0xa53   :  { %v6905_v48 = vpop.eup %6904  ;;  %v4441_v63 = vadd.f32 1.0, %v6903_v29 }
 0xa54   :  { %v4447_v6 = vadd.f32 1.0, %v6905_v48  ;;  %v6907_v56 = vpop.eup %6906 }
 0xa55   :  { %6910 = vrcp.f32 %v4441_v63  ;;  %v6909_v22 = vpop.eup %6908  ;;  %v4454_v12 = vadd.f32 1.0, %v6907_v56 }
 0xa56   :  { %6912 = vrcp.f32 %v4447_v6 }
 0xa57   :  { %6914 = vrcp.f32 %v4454_v12 }
 0xa5f   :  { %v6911_v57 = vpop.eup %6910 }
 0xa60   :  { %v6913_v42 = vpop.eup %6912  ;;  %v4458_v52 = vmul.f32 %v6911_v57, %v6909_v22 }
 0xa61   :  { %v4457_v47 = vmul.f32 %v6913_v42, %v8457_v16  ;;  %v6915_v28 = vpop.eup %6914 }
 0xa63   :  { %v4901_v51 = vpop.f32.mrb[32].mxu0  ;;  %v4459_v7 = vadd.f32 %v4458_v52, %v4457_v47 }
 0xa64   :  { %v4557_v46 = vadd.f32 %v4901_v51, %v4817_v26  ;;  %v4551_v4 = vpop.f32.mrb[33].mxu0 }
 0xa65   :  { %v4552_v30 = vadd.f32 %v4817_v26, %v4551_v4  ;;  %6916 = vtanh.f32 %v4459_v7 }
 0xa67   :  { %6918 = vtanh.f32 %v4552_v30  ;;  %v4904_v38 = vpop.f32.mrb[34].mxu0 }
 0xa68   :  { %6920 = vtanh.f32 %v4557_v46  ;;  %v4567_v17 = vadd.f32 %v4904_v38, %v4817_v26  ;;  %v4561_v60 = vpop.f32.mrb[35].mxu0 }
 0xa69   :  { %v4562_v55 = vadd.f32 %v4817_v26, %v4561_v60 }
 0xa6b   :  { %6922 = vtanh.f32 %v4562_v55  ;;  %v4907_v24 = vpop.f32.mrb[36].mxu0 }
 0xa6c   :  { %6924 = vtanh.f32 %v4567_v17  ;;  %v4577_v16 = vadd.f32 %v4907_v24, %v4817_v26  ;;  %v4571_v27 = vpop.f32.mrb[37].mxu0 }
 0xa6d   :  { %v4572_v40 = vadd.f32 %v4817_v26, %v4571_v27 }
 0xa6f   :  { %v6917_v32 = vpop.eup %6916  ;;  %6926 = vtanh.f32 %v4572_v40 }
 0xa70   :  { %6928 = vtanh.f32 %v4577_v16  ;;  %v4461_v34 = vmul.f32 %v6917_v32, %v6915_v28 }
 0xa71   :  { %v6919_v49 = vpop.eup %6918 }
 0xa72   :  { %v6921_v53 = vpop.eup %6920  ;;  %4909 = vmatmul.mubr.f32.gmra.mrb[38].mxu0 %v4461_v34  ;;  %4943 = vmatprep.mubr.f32.mxu1 %v6919_v49 }
 0xa73   :  { %4944 = vmatmul.mubr.f32.vlgmr.msra.gmra.mrb[32].mxu1 %v6921_v53 }
 0xa75   :  { %v6923_v21 = vpop.eup %6922 }
 0xa76   :  { %v6925_v25 = vpop.eup %6924  ;;  %4946 = vmatprep.mubr.f32.mxu1 %v6923_v21 }
 0xa77   :  { %4947 = vmatmul.mubr.f32.gmra.mrb[34].mxu1 %v6925_v25 }
 0xa79   :  { %v6927_v37 = vpop.eup %6926 }
 0xa7a   :  { %v6929_v41 = vpop.eup %6928  ;;  %4949 = vmatprep.mubr.f32.mxu1 %v6927_v37 }
 0xa7b   :  { %4950 = vmatmul.mubr.f32.gmra.mrb[36].mxu1 %v6929_v41 }
 0xb45   :  { %v4910_v50 = vpop.f32.mrb[38].mxu0 }
 0xb46   :  { %v4587_v35 = vadd.f32 %v4910_v50, %v4817_v26  ;;  %v4581_v11 = vpop.f32.mrb[39].mxu0  ;;  %v4945_v33 = vpop.f32.mrb[32].mxu1 }
 0xb47   :  { %v4582_v31 = vadd.f32 %v4817_v26, %v4581_v11  ;;  %v4693_v36 = vadd.f32 %v4945_v33, %v4818_v1  ;;  %v4687_v45 = vpop.f32.mrb[33].mxu1 }
 0xb48   :  { %v4688_v15 = vadd.f32 %v4818_v1, %v4687_v45 }
 0xb49   :  { %6930 = vtanh.f32 %v4582_v31  ;;  %4727 = vst [vmem:[#allocation11 + $0x8] sm:$0xff] %v4693_v36 }
 0xb4a   :  { %6932 = vtanh.f32 %v4587_v35  ;;  %4726 = vst [vmem:[#allocation11] sm:$0xff] %v4688_v15  ;;  %v4948_v19 = vpop.f32.mrb[34].mxu1 }
 0xb4b   :  { %v4703_v59 = vadd.f32 %v4948_v19, %v4818_v1  ;;  %v4697_v18 = vpop.f32.mrb[35].mxu1 }
 0xb4c   :  { %v4698_v23 = vadd.f32 %v4818_v1, %v4697_v18 }
 0xb4d   :  { %4729 = vst [vmem:[#allocation11 + $0x18] sm:$0xff] %v4703_v59 }
 0xb4e   :  { %4728 = vst [vmem:[#allocation11 + $0x10] sm:$0xff] %v4698_v23  ;;  %v4951_v8 = vpop.f32.mrb[36].mxu1 }
 0xb4f   :  { %v4713_v20 = vadd.f32 %v4951_v8, %v4818_v1  ;;  %v4707_v14 = vpop.f32.mrb[37].mxu1 }
 0xb50   :  { %v4708_v43 = vadd.f32 %v4818_v1, %v4707_v14 }
 0xb51   :  { %4731 = vst [vmem:[#allocation11 + $0x28] sm:$0xff] %v4713_v20 }
 0xb52   :  { %4730 = vst [vmem:[#allocation11 + $0x20] sm:$0xff] %v4708_v43 }
 0xb53   :  { %v6931_v5 = vpop.eup %6930 }
 0xb54   :  { %v6933_v2 = vpop.eup %6932  ;;  %4952 = vmatprep.mubr.f32.mxu1 %v6931_v5 }
 0xb55   :  { %4953 = vmatmul.mubr.f32.gmra.mrb[38].mxu1 %v6933_v2 }
 0xc28   :  { %v4954_v61 = vpop.f32.mrb[38].mxu1 }
 0xc29   :  { %v4723_v44 = vadd.f32 %v4954_v61, %v4818_v1  ;;  %v4717_v62 = vpop.f32.mrb[39].mxu1 }
 0xc2a   :  { %v4718_v39 = vadd.f32 %v4818_v1, %v4717_v62 }
 0xc2b   :  { %4733 = vst [vmem:[#allocation11 + $0x38] sm:$0xff] %v4723_v44 }
 0xc2c   :  { %4732 = vst [vmem:[#allocation11 + $0x30] sm:$0xff] %v4718_v39 }
 0xc2d   :  { %7055 = shalt.err (!%p7052_p2)
}
 0xc2e   :  { %s7056_s27 = scalar_lea.hbm %s8545_s11, 1024 }
 0xc2f   :  { %p7057_p3 = scmp.ne.s32.totalorder %s8545_s11, %s7056_s27  ;;  %p7060_p4 = scmp.lt.u32.totalorder %s7056_s27, %s8545_s11 }
 0xc31   :  { %p7062_p5 = pnand %p7060_p4, %p7057_p3 }
 0xc33   :  { %7065 = shalt.err (!%p7062_p5)
}
 0xc34   :  { %4745 = dma.vmem_to_hbm [thread:$0]  %s4740_s13, 1024, %s8545_s11, [#allocation4], %s7078_s4, %s7078_s4, %s7079_s18  }
 0xc35   :  { %7072 = dma.done.wait [#allocation4], 1024  }
 0xc36   :  { %7073 = vsyncadd [#allocation4], 4294966272 }
 0xc37   :  { %4749 = vsyncpa [#allocation3], 1 }
 0xc38   :  { %4750 = vsyncpa [#allocation6], 1 }
 0xc39   :  { %4751 = vsyncpa [#allocation9], 1 }
 0xc3a   :  { %4752 = vsyncpa [#allocation4], 1 }

</bundles_post_ra>
